<compile_context>
chip_gen: v7x
topology: tpu7x:2x2x1
jax: 0.10.0
libtpu: 0.0.40
codegen_flags: <defaults>
</compile_context>

<pallas_src>
import functools

import numpy as np
import jax
import jax.numpy as jnp
from jax.experimental import pallas as pl
from jax.experimental.pallas import tpu as pltpu

KH = KW = 5     # conv kernel size
PAD = 2         # "same" padding for 5x5
N_CLASSES = 10
N_PAD = 128     # lane-dense classifier output width


# --------------------------------------------------------------------------
# Fused conv(5x5, same) + bias + ReLU + maxpool(2x2) Pallas kernel
# --------------------------------------------------------------------------
def _conv_relu_pool_kernel(x_ref, band_ref, bias_ref, o_ref, *, H, W, Cout, bt):
    """Processes `bt` images per grid step.

    x_ref    : (bt, H+4, (W+4)*Cin)     padded activations, lanes = (w, cin)
    band_ref : (KH, (W+4)*Cin, W*Cout)  banded weights, out lanes = (parity, wo, cout)
    bias_ref : (1, W*Cout)
    o_ref    : (bt, H//2, (W//2)*Cout)  pooled output, lanes = (wo, cout)
    """
    Ho, Wo = H // 2, W // 2
    N = W * Cout
    xv = x_ref[...]                                        # (bt, H+4, WpC)

    # 5x5 conv as 5 banded GEMMs (one per kernel row), accumulated in VMEM.
    acc = jnp.zeros((bt * H, N), jnp.float32)
    for kh in range(KH):
        slab = xv[:, kh:kh + H, :].reshape(bt * H, -1)     # (bt*H, WpC)
        acc = acc + jnp.dot(slab, band_ref[kh],
                            preferred_element_type=jnp.float32)

    # bias + ReLU epilogue
    acc = jnp.maximum(acc + bias_ref[...], 0.0)

    # 2x2 max-pool fused while the accumulator is in VMEM.
    # H is even, so consecutive-row pairs never straddle images.
    acc = acc.reshape(bt * Ho, 2, N)
    rows = jnp.maximum(acc[:, 0, :], acc[:, 1, :])         # pool along H
    half = Wo * Cout
    pooled = jnp.maximum(rows[:, :half], rows[:, half:])   # pool along W
    o_ref[...] = pooled.reshape(bt, Ho, half).astype(o_ref.dtype)


def conv5x5_relu_pool(x_pad, band, bias, *, H, W, Cout, bt):
    """x_pad: (B, H+4, (W+4)*Cin) -> (B, H//2, (W//2)*Cout)."""
    B, Hp, WpC = x_pad.shape
    Ho, Wo = H // 2, W // 2
    kern = functools.partial(_conv_relu_pool_kernel, H=H, W=W, Cout=Cout, bt=bt)
    return pl.pallas_call(
        kern,
        out_shape=jax.ShapeDtypeStruct((B, Ho, Wo * Cout), jnp.float32),
        grid=(B // bt,),
        in_specs=[
            pl.BlockSpec((bt, Hp, WpC), lambda i: (i, 0, 0)),
            pl.BlockSpec((KH, WpC, W * Cout), lambda i: (0, 0, 0)),
            pl.BlockSpec((1, W * Cout), lambda i: (0, 0)),
        ],
        out_specs=pl.BlockSpec((bt, Ho, Wo * Cout), lambda i: (i, 0, 0)),
        compiler_params=pltpu.CompilerParams(
            dimension_semantics=("parallel",)),
    )(x_pad, band, bias)


# --------------------------------------------------------------------------
# Classifier GEMM (bias fused, lane-dense padded N, tiled over M)
# --------------------------------------------------------------------------
def _linear_kernel(x_ref, w_ref, b_ref, o_ref):
    acc = jnp.dot(x_ref[...], w_ref[...], preferred_element_type=jnp.float32)
    o_ref[...] = (acc + b_ref[...]).astype(o_ref.dtype)


def linear(x, w, b, *, tm):
    M, K = x.shape
    _, N = w.shape
    return pl.pallas_call(
        _linear_kernel,
        out_shape=jax.ShapeDtypeStruct((M, N), jnp.float32),
        grid=(M // tm,),
        in_specs=[
            pl.BlockSpec((tm, K), lambda i: (i, 0)),
            pl.BlockSpec((K, N), lambda i: (0, 0)),
            pl.BlockSpec((1, N), lambda i: (0, 0)),
        ],
        out_specs=pl.BlockSpec((tm, N), lambda i: (i, 0)),
        compiler_params=pltpu.CompilerParams(
            dimension_semantics=("parallel",)),
    )(x, w, b)


# --------------------------------------------------------------------------
# One-time parameter re-layout (hoisted out of the jitted forward)
# --------------------------------------------------------------------------
def _make_band(w_oihw, W):
    """Banded per-kh weight matrix for the (H, Wp*Cin) @ (Wp*Cin, W*Cout) conv GEMM.

    Output columns are ordered (parity, wo, cout) so the 2x2 pool along W is a
    max of two contiguous lane halves inside the kernel.
    """
    w = np.asarray(w_oihw, np.float32)          # (Cout, Cin, KH, KW), torch layout
    Cout, Cin = w.shape[0], w.shape[1]
    Wp = W + 2 * PAD
    Wo = W // 2
    band = np.zeros((KH, Wp * Cin, W * Cout), np.float32)
    for kh in range(KH):
        for kw in range(KW):
            tap = w[:, :, kh, kw].T             # (Cin, Cout)
            for wc in range(W):
                col = (wc % 2) * (Wo * Cout) + (wc // 2) * Cout
                row = (wc + kw) * Cin
                band[kh, row:row + Cin, col:col + Cout] = tap
    return jnp.asarray(band)


def init_raw_params(key):
    k1, k2, k3, k4, k5, k6 = jax.random.split(key, 6)
    return {
        "w1": jax.random.normal(k1, (16, 1, 5, 5), jnp.float32) * 0.10,
        "b1": jax.random.normal(k2, (16,), jnp.float32) * 0.10,
        "w2": jax.random.normal(k3, (32, 16, 5, 5), jnp.float32) * 0.05,
        "b2": jax.random.normal(k4, (32,), jnp.float32) * 0.05,
        "w_out": jax.random.normal(k5, (10, 32 * 7 * 7), jnp.float32) * 0.02,
        "b_out": jax.random.normal(k6, (10,), jnp.float32) * 0.02,
    }


def prepare_params(raw):
    p = {}
    p["band1"] = _make_band(raw["w1"], W=28)                    # (5, 32, 448)
    p["bias1"] = jnp.tile(raw["b1"], 28).reshape(1, 28 * 16)
    p["band2"] = _make_band(raw["w2"], W=14)                    # (5, 288, 448)
    p["bias2"] = jnp.tile(raw["b2"], 14).reshape(1, 14 * 32)
    # torch flattens NCHW (c, h, w); our features are (h, w, c) -> permute the
    # weight rows once, and pad N: 10 -> 128 for a lane-dense store.
    w_lin = jnp.asarray(raw["w_out"]).reshape(N_CLASSES, 32, 7, 7)
    w_lin = jnp.transpose(w_lin, (2, 3, 1, 0)).reshape(7 * 7 * 32, N_CLASSES)
    p["w_out"] = jnp.zeros((7 * 7 * 32, N_PAD), jnp.float32).at[:, :N_CLASSES].set(w_lin)
    p["b_out"] = jnp.zeros((1, N_PAD), jnp.float32).at[0, :N_CLASSES].set(raw["b_out"])
    return p


# --------------------------------------------------------------------------
# Full forward pass (matches CNN.forward)
# --------------------------------------------------------------------------
def _largest_divisor(n, cap):
    for t in range(min(n, cap), 0, -1):
        if n % t == 0:
            return t
    return 1


def _pick_m_tile(B, cap=256):
    if B <= cap:
        return B
    for t in range(cap, 7, -1):
        if B % t == 0 and t % 8 == 0:
            return t
    return B


@jax.jit
def cnn_forward(x_nchw, params):
    B = x_nchw.shape[0]
    bt = _largest_divisor(B, 8)          # images per conv grid step
    tm = _pick_m_tile(B)                 # rows per classifier grid step

    # conv1: NCHW (B,1,28,28) -> padded flat (B, 32, 32)   (Cin = 1)
    x = jnp.pad(x_nchw[:, 0, :, :], ((0, 0), (PAD, PAD), (PAD, PAD)))
    y1 = conv5x5_relu_pool(x, params["band1"], params["bias1"],
                           H=28, W=28, Cout=16, bt=bt)          # (B, 14, 224)

    # conv2 input: pad H by 2 rows and W by 2 columns (= 2*Cin lanes each side)
    y1p = jnp.pad(y1, ((0, 0), (PAD, PAD), (PAD * 16, PAD * 16)))  # (B, 18, 288)
    y2 = conv5x5_relu_pool(y1p, params["band2"], params["bias2"],
                           H=14, W=14, Cout=32, bt=bt)          # (B, 7, 224)

    feat = y2.reshape(B, 7 * 7 * 32)                            # (h, w, c) order
    logits = linear(feat, params["w_out"], params["b_out"], tm=tm)  # (B, 128)
    return logits[:, :N_CLASSES]


# --------------------------------------------------------------------------
# Pure-JAX reference (same math as the PyTorch module) for a sanity check
# --------------------------------------------------------------------------
def _reference_forward(x_nchw, raw):
    def block(x, w, b):
        y = jax.lax.conv_general_dilated(
            x, w, window_strides=(1, 1), padding=((PAD, PAD), (PAD, PAD)),
            dimension_numbers=("NCHW", "OIHW", "NCHW"))
        y = jax.nn.relu(y + b[None, :, None, None])
        return jax.lax.reduce_window(y, -jnp.inf, jax.lax.max,
                                     (1, 1, 2, 2), (1, 1, 2, 2), "VALID")

    y = block(x_nchw, raw["w1"], raw["b1"])
    y = block(y, raw["w2"], raw["b2"])
    feat = y.reshape(y.shape[0], -1)
    return feat @ raw["w_out"].T + raw["b_out"]


if __name__ == "__main__":
    key = jax.random.PRNGKey(0)
    pkey, xkey = jax.random.split(key)
    raw = init_raw_params(pkey)
    params = prepare_params(raw)
    # Spatial size must be 28x28 so that 32*7*7 features feed the Linear.
    x = jax.random.normal(xkey, (2, 1, 28, 28), jnp.float32)

    out = jax.block_until_ready(cnn_forward(x, params))
    assert out.shape == (2, N_CLASSES), out.shape
    assert bool(jnp.all(jnp.isfinite(out)))

    ref = jax.block_until_ready(_reference_forward(x, raw))
    rel_err = float(jnp.max(jnp.abs(out - ref)) / (jnp.max(jnp.abs(ref)) + 1e-6))
    assert rel_err < 5e-2, f"mismatch vs reference: rel_err={rel_err}"

    print("KERNEL_OK")
</pallas_src>

<mosaic_0001>
module attributes {stable_mosaic.version = 11 : i64} {
  func.func @_conv_relu_pool_kernel(%arg0: i32, %arg1: memref<2x32x32xf32, #tpu.memory_space<vmem>>, %arg2: memref<5x32x448xf32, #tpu.memory_space<vmem>>, %arg3: memref<1x448xf32, #tpu.memory_space<vmem>>, %arg4: memref<2x14x224xf32, #tpu.memory_space<vmem>>) attributes {dimension_semantics = [#tpu.dimension_semantics<parallel>], iteration_bounds = array<i64: 1>, scalar_prefetch = 0 : i64, scratch_operands = 0 : i64, tpu.core_type = #tpu.core_type<tc>, window_params = [{transform_indices = @transform_0, window_bounds = array<i64: 2, 32, 32>}, {pipeline_mode = #tpu.pipeline_mode<synchronous>, transform_indices = @transform_1, window_bounds = array<i64: 5, 32, 448>}, {pipeline_mode = #tpu.pipeline_mode<synchronous>, transform_indices = @transform_2, window_bounds = array<i64: 1, 448>}, {transform_indices = @transform_3, window_bounds = array<i64: 2, 14, 224>}]} {
    %c0 = arith.constant 0 : index
    %c0_0 = arith.constant 0 : index
    %c0_1 = arith.constant 0 : index
    %0 = vector.load %arg1[%c0, %c0_0, %c0_1] : memref<2x32x32xf32, #tpu.memory_space<vmem>>, vector<2x32x32xf32>
    %cst = arith.constant 0.000000e+00 : f32
    %1 = vector.broadcast %cst : f32 to vector<56x448xf32>
    %2 = vector.extract_strided_slice %0 {offsets = [0, 0, 0], sizes = [2, 28, 32], strides = [1, 1, 1]} : vector<2x32x32xf32> to vector<2x28x32xf32>
    %3 = vector.shape_cast %2 : vector<2x28x32xf32> to vector<56x32xf32>
    %c0_2 = arith.constant 0 : index
    %c0_3 = arith.constant 0 : index
    %c0_4 = arith.constant 0 : index
    %4 = vector.load %arg2[%c0_2, %c0_3, %c0_4] : memref<5x32x448xf32, #tpu.memory_space<vmem>>, vector<1x32x448xf32>
    %5 = vector.shape_cast %4 : vector<1x32x448xf32> to vector<32x448xf32>
    %cst_5 = arith.constant dense<0.000000e+00> : vector<56x448xf32>
    %6 = tpu.matmul %3, %5, %cst_5 {dimension_numbers = #tpu.dot_dimension_numbers<[1], [0], [0], [1], [0, 0, 1, 1], [], []>} : vector<56x32xf32>, vector<32x448xf32>, vector<56x448xf32> -> vector<56x448xf32>
    %7 = arith.addf %1, %6 : vector<56x448xf32>
    %8 = vector.extract_strided_slice %0 {offsets = [0, 1, 0], sizes = [2, 28, 32], strides = [1, 1, 1]} : vector<2x32x32xf32> to vector<2x28x32xf32>
    %9 = vector.shape_cast %8 : vector<2x28x32xf32> to vector<56x32xf32>
    %c1 = arith.constant 1 : index
    %c0_6 = arith.constant 0 : index
    %c0_7 = arith.constant 0 : index
    %10 = vector.load %arg2[%c1, %c0_6, %c0_7] : memref<5x32x448xf32, #tpu.memory_space<vmem>>, vector<1x32x448xf32>
    %11 = vector.shape_cast %10 : vector<1x32x448xf32> to vector<32x448xf32>
    %cst_8 = arith.constant dense<0.000000e+00> : vector<56x448xf32>
    %12 = tpu.matmul %9, %11, %cst_8 {dimension_numbers = #tpu.dot_dimension_numbers<[1], [0], [0], [1], [0, 0, 1, 1], [], []>} : vector<56x32xf32>, vector<32x448xf32>, vector<56x448xf32> -> vector<56x448xf32>
    %13 = arith.addf %7, %12 : vector<56x448xf32>
    %14 = vector.extract_strided_slice %0 {offsets = [0, 2, 0], sizes = [2, 28, 32], strides = [1, 1, 1]} : vector<2x32x32xf32> to vector<2x28x32xf32>
    %15 = vector.shape_cast %14 : vector<2x28x32xf32> to vector<56x32xf32>
    %c2 = arith.constant 2 : index
    %c0_9 = arith.constant 0 : index
    %c0_10 = arith.constant 0 : index
    %16 = vector.load %arg2[%c2, %c0_9, %c0_10] : memref<5x32x448xf32, #tpu.memory_space<vmem>>, vector<1x32x448xf32>
    %17 = vector.shape_cast %16 : vector<1x32x448xf32> to vector<32x448xf32>
    %cst_11 = arith.constant dense<0.000000e+00> : vector<56x448xf32>
    %18 = tpu.matmul %15, %17, %cst_11 {dimension_numbers = #tpu.dot_dimension_numbers<[1], [0], [0], [1], [0, 0, 1, 1], [], []>} : vector<56x32xf32>, vector<32x448xf32>, vector<56x448xf32> -> vector<56x448xf32>
    %19 = arith.addf %13, %18 : vector<56x448xf32>
    %20 = vector.extract_strided_slice %0 {offsets = [0, 3, 0], sizes = [2, 28, 32], strides = [1, 1, 1]} : vector<2x32x32xf32> to vector<2x28x32xf32>
    %21 = vector.shape_cast %20 : vector<2x28x32xf32> to vector<56x32xf32>
    %c3 = arith.constant 3 : index
    %c0_12 = arith.constant 0 : index
    %c0_13 = arith.constant 0 : index
    %22 = vector.load %arg2[%c3, %c0_12, %c0_13] : memref<5x32x448xf32, #tpu.memory_space<vmem>>, vector<1x32x448xf32>
    %23 = vector.shape_cast %22 : vector<1x32x448xf32> to vector<32x448xf32>
    %cst_14 = arith.constant dense<0.000000e+00> : vector<56x448xf32>
    %24 = tpu.matmul %21, %23, %cst_14 {dimension_numbers = #tpu.dot_dimension_numbers<[1], [0], [0], [1], [0, 0, 1, 1], [], []>} : vector<56x32xf32>, vector<32x448xf32>, vector<56x448xf32> -> vector<56x448xf32>
    %25 = arith.addf %19, %24 : vector<56x448xf32>
    %26 = vector.extract_strided_slice %0 {offsets = [0, 4, 0], sizes = [2, 28, 32], strides = [1, 1, 1]} : vector<2x32x32xf32> to vector<2x28x32xf32>
    %27 = vector.shape_cast %26 : vector<2x28x32xf32> to vector<56x32xf32>
    %c4 = arith.constant 4 : index
    %c0_15 = arith.constant 0 : index
    %c0_16 = arith.constant 0 : index
    %28 = vector.load %arg2[%c4, %c0_15, %c0_16] : memref<5x32x448xf32, #tpu.memory_space<vmem>>, vector<1x32x448xf32>
    %29 = vector.shape_cast %28 : vector<1x32x448xf32> to vector<32x448xf32>
    %cst_17 = arith.constant dense<0.000000e+00> : vector<56x448xf32>
    %30 = tpu.matmul %27, %29, %cst_17 {dimension_numbers = #tpu.dot_dimension_numbers<[1], [0], [0], [1], [0, 0, 1, 1], [], []>} : vector<56x32xf32>, vector<32x448xf32>, vector<56x448xf32> -> vector<56x448xf32>
    %31 = arith.addf %25, %30 : vector<56x448xf32>
    %c0_18 = arith.constant 0 : index
    %c0_19 = arith.constant 0 : index
    %32 = vector.load %arg3[%c0_18, %c0_19] : memref<1x448xf32, #tpu.memory_space<vmem>>, vector<1x448xf32>
    %33 = vector.broadcast %32 : vector<1x448xf32> to vector<56x448xf32>
    %34 = arith.addf %31, %33 : vector<56x448xf32>
    %cst_20 = arith.constant 0.000000e+00 : f32
    %35 = vector.broadcast %cst_20 : f32 to vector<56x448xf32>
    %36 = arith.maximumf %34, %35 : vector<56x448xf32>
    %37 = vector.shape_cast %36 : vector<56x448xf32> to vector<28x2x448xf32>
    %38 = vector.extract_strided_slice %37 {offsets = [0, 0, 0], sizes = [28, 1, 448], strides = [1, 1, 1]} : vector<28x2x448xf32> to vector<28x1x448xf32>
    %39 = vector.shape_cast %38 : vector<28x1x448xf32> to vector<28x448xf32>
    %40 = vector.extract_strided_slice %37 {offsets = [0, 1, 0], sizes = [28, 1, 448], strides = [1, 1, 1]} : vector<28x2x448xf32> to vector<28x1x448xf32>
    %41 = vector.shape_cast %40 : vector<28x1x448xf32> to vector<28x448xf32>
    %42 = arith.maximumf %39, %41 : vector<28x448xf32>
    %43 = vector.extract_strided_slice %42 {offsets = [0, 0], sizes = [28, 224], strides = [1, 1]} : vector<28x448xf32> to vector<28x224xf32>
    %44 = vector.extract_strided_slice %42 {offsets = [0, 224], sizes = [28, 224], strides = [1, 1]} : vector<28x448xf32> to vector<28x224xf32>
    %45 = arith.maximumf %43, %44 : vector<28x224xf32>
    %46 = vector.shape_cast %45 : vector<28x224xf32> to vector<2x14x224xf32>
    %c0_21 = arith.constant 0 : index
    %c0_22 = arith.constant 0 : index
    %c0_23 = arith.constant 0 : index
    %47 = vector.load %arg4[%c0_21, %c0_22, %c0_23] : memref<2x14x224xf32, #tpu.memory_space<vmem>>, vector<2x14x224xf32>
    tpu.vector_store %arg4[%c0_21, %c0_22, %c0_23], %46 {strides = array<i32>} : memref<2x14x224xf32, #tpu.memory_space<vmem>>, vector<2x14x224xf32>,
    return
  }
  func.func @transform_0(%arg0: i32) -> (i32, i32, i32) {
    %c0_i32 = arith.constant 0 : i32
    %c0_i32_0 = arith.constant 0 : i32
    %c0_i32_1 = arith.constant 0 : i32
    return %arg0, %c0_i32, %c0_i32_0 : i32, i32, i32
  }
  func.func @transform_1(%arg0: i32) -> (i32, i32, i32) {
    %c0_i32 = arith.constant 0 : i32
    %c0_i32_0 = arith.constant 0 : i32
    %c0_i32_1 = arith.constant 0 : i32
    %c0_i32_2 = arith.constant 0 : i32
    return %c0_i32, %c0_i32_0, %c0_i32_1 : i32, i32, i32
  }
  func.func @transform_2(%arg0: i32) -> (i32, i32) {
    %c0_i32 = arith.constant 0 : i32
    %c0_i32_0 = arith.constant 0 : i32
    %c0_i32_1 = arith.constant 0 : i32
    return %c0_i32, %c0_i32_0 : i32, i32
  }
  func.func @transform_3(%arg0: i32) -> (i32, i32, i32) {
    %c0_i32 = arith.constant 0 : i32
    %c0_i32_0 = arith.constant 0 : i32
    %c0_i32_1 = arith.constant 0 : i32
    return %arg0, %c0_i32, %c0_i32_0 : i32, i32, i32
  }
}

module attributes {stable_mosaic.version = 11 : i64} {
  func.func @_linear_kernel(%arg0: i32, %arg1: memref<2x1568xf32, #tpu.memory_space<vmem>>, %arg2: memref<1568x128xf32, #tpu.memory_space<vmem>>, %arg3: memref<1x128xf32, #tpu.memory_space<vmem>>, %arg4: memref<2x128xf32, #tpu.memory_space<vmem>>) attributes {dimension_semantics = [#tpu.dimension_semantics<parallel>], iteration_bounds = array<i64: 1>, scalar_prefetch = 0 : i64, scratch_operands = 0 : i64, tpu.core_type = #tpu.core_type<tc>, window_params = [{transform_indices = @transform_0, window_bounds = array<i64: 2, 1568>}, {pipeline_mode = #tpu.pipeline_mode<synchronous>, transform_indices = @transform_1, window_bounds = array<i64: 1568, 128>}, {pipeline_mode = #tpu.pipeline_mode<synchronous>, transform_indices = @transform_2, window_bounds = array<i64: 1, 128>}, {transform_indices = @transform_3, window_bounds = array<i64: 2, 128>}]} {
    %c0 = arith.constant 0 : index
    %c0_0 = arith.constant 0 : index
    %0 = vector.load %arg1[%c0, %c0_0] : memref<2x1568xf32, #tpu.memory_space<vmem>>, vector<2x1568xf32>
    %c0_1 = arith.constant 0 : index
    %c0_2 = arith.constant 0 : index
    %1 = vector.load %arg2[%c0_1, %c0_2] : memref<1568x128xf32, #tpu.memory_space<vmem>>, vector<1568x128xf32>
    %cst = arith.constant dense<0.000000e+00> : vector<2x128xf32>
    %2 = tpu.matmul %0, %1, %cst {dimension_numbers = #tpu.dot_dimension_numbers<[1], [0], [0], [1], [0, 0, 1, 1], [], []>} : vector<2x1568xf32>, vector<1568x128xf32>, vector<2x128xf32> -> vector<2x128xf32>
    %c0_3 = arith.constant 0 : index
    %c0_4 = arith.constant 0 : index
    %3 = vector.load %arg3[%c0_3, %c0_4] : memref<1x128xf32, #tpu.memory_space<vmem>>, vector<1x128xf32>
    %4 = vector.broadcast %3 : vector<1x128xf32> to vector<2x128xf32>
    %5 = arith.addf %2, %4 : vector<2x128xf32>
    %c0_5 = arith.constant 0 : index
    %c0_6 = arith.constant 0 : index
    %6 = vector.load %arg4[%c0_5, %c0_6] : memref<2x128xf32, #tpu.memory_space<vmem>>, vector<2x128xf32>
    tpu.vector_store %arg4[%c0_5, %c0_6], %5 {strides = array<i32>} : memref<2x128xf32, #tpu.memory_space<vmem>>, vector<2x128xf32>,
    return
  }
  func.func @transform_0(%arg0: i32) -> (i32, i32) {
    %c0_i32 = arith.constant 0 : i32
    %c0_i32_0 = arith.constant 0 : i32
    return %arg0, %c0_i32 : i32, i32
  }
  func.func @transform_1(%arg0: i32) -> (i32, i32) {
    %c0_i32 = arith.constant 0 : i32
    %c0_i32_0 = arith.constant 0 : i32
    %c0_i32_1 = arith.constant 0 : i32
    return %c0_i32, %c0_i32_0 : i32, i32
  }
  func.func @transform_2(%arg0: i32) -> (i32, i32) {
    %c0_i32 = arith.constant 0 : i32
    %c0_i32_0 = arith.constant 0 : i32
    %c0_i32_1 = arith.constant 0 : i32
    return %c0_i32, %c0_i32_0 : i32, i32
  }
  func.func @transform_3(%arg0: i32) -> (i32, i32) {
    %c0_i32 = arith.constant 0 : i32
    %c0_i32_0 = arith.constant 0 : i32
    return %arg0, %c0_i32 : i32, i32
  }
}

module attributes {stable_mosaic.version = 11 : i64} {
  func.func @_conv_relu_pool_kernel(%arg0: i32, %arg1: memref<2x18x288xf32, #tpu.memory_space<vmem>>, %arg2: memref<5x288x448xf32, #tpu.memory_space<vmem>>, %arg3: memref<1x448xf32, #tpu.memory_space<vmem>>, %arg4: memref<2x7x224xf32, #tpu.memory_space<vmem>>) attributes {dimension_semantics = [#tpu.dimension_semantics<parallel>], iteration_bounds = array<i64: 1>, scalar_prefetch = 0 : i64, scratch_operands = 0 : i64, tpu.core_type = #tpu.core_type<tc>, window_params = [{transform_indices = @transform_0, window_bounds = array<i64: 2, 18, 288>}, {pipeline_mode = #tpu.pipeline_mode<synchronous>, transform_indices = @transform_1, window_bounds = array<i64: 5, 288, 448>}, {pipeline_mode = #tpu.pipeline_mode<synchronous>, transform_indices = @transform_2, window_bounds = array<i64: 1, 448>}, {transform_indices = @transform_3, window_bounds = array<i64: 2, 7, 224>}]} {
    %c0 = arith.constant 0 : index
    %c0_0 = arith.constant 0 : index
    %c0_1 = arith.constant 0 : index
    %0 = vector.load %arg1[%c0, %c0_0, %c0_1] : memref<2x18x288xf32, #tpu.memory_space<vmem>>, vector<2x18x288xf32>
    %cst = arith.constant 0.000000e+00 : f32
    %1 = vector.broadcast %cst : f32 to vector<28x448xf32>
    %2 = vector.extract_strided_slice %0 {offsets = [0, 0, 0], sizes = [2, 14, 288], strides = [1, 1, 1]} : vector<2x18x288xf32> to vector<2x14x288xf32>
    %3 = vector.shape_cast %2 : vector<2x14x288xf32> to vector<28x288xf32>
    %c0_2 = arith.constant 0 : index
    %c0_3 = arith.constant 0 : index
    %c0_4 = arith.constant 0 : index
    %4 = vector.load %arg2[%c0_2, %c0_3, %c0_4] : memref<5x288x448xf32, #tpu.memory_space<vmem>>, vector<1x288x448xf32>
    %5 = vector.shape_cast %4 : vector<1x288x448xf32> to vector<288x448xf32>
    %cst_5 = arith.constant dense<0.000000e+00> : vector<28x448xf32>
    %6 = tpu.matmul %3, %5, %cst_5 {dimension_numbers = #tpu.dot_dimension_numbers<[1], [0], [0], [1], [0, 0, 1, 1], [], []>} : vector<28x288xf32>, vector<288x448xf32>, vector<28x448xf32> -> vector<28x448xf32>
    %7 = arith.addf %1, %6 : vector<28x448xf32>
    %8 = vector.extract_strided_slice %0 {offsets = [0, 1, 0], sizes = [2, 14, 288], strides = [1, 1, 1]} : vector<2x18x288xf32> to vector<2x14x288xf32>
    %9 = vector.shape_cast %8 : vector<2x14x288xf32> to vector<28x288xf32>
    %c1 = arith.constant 1 : index
    %c0_6 = arith.constant 0 : index
    %c0_7 = arith.constant 0 : index
    %10 = vector.load %arg2[%c1, %c0_6, %c0_7] : memref<5x288x448xf32, #tpu.memory_space<vmem>>, vector<1x288x448xf32>
    %11 = vector.shape_cast %10 : vector<1x288x448xf32> to vector<288x448xf32>
    %cst_8 = arith.constant dense<0.000000e+00> : vector<28x448xf32>
    %12 = tpu.matmul %9, %11, %cst_8 {dimension_numbers = #tpu.dot_dimension_numbers<[1], [0], [0], [1], [0, 0, 1, 1], [], []>} : vector<28x288xf32>, vector<288x448xf32>, vector<28x448xf32> -> vector<28x448xf32>
    %13 = arith.addf %7, %12 : vector<28x448xf32>
    %14 = vector.extract_strided_slice %0 {offsets = [0, 2, 0], sizes = [2, 14, 288], strides = [1, 1, 1]} : vector<2x18x288xf32> to vector<2x14x288xf32>
    %15 = vector.shape_cast %14 : vector<2x14x288xf32> to vector<28x288xf32>
    %c2 = arith.constant 2 : index
    %c0_9 = arith.constant 0 : index
    %c0_10 = arith.constant 0 : index
    %16 = vector.load %arg2[%c2, %c0_9, %c0_10] : memref<5x288x448xf32, #tpu.memory_space<vmem>>, vector<1x288x448xf32>
    %17 = vector.shape_cast %16 : vector<1x288x448xf32> to vector<288x448xf32>
    %cst_11 = arith.constant dense<0.000000e+00> : vector<28x448xf32>
    %18 = tpu.matmul %15, %17, %cst_11 {dimension_numbers = #tpu.dot_dimension_numbers<[1], [0], [0], [1], [0, 0, 1, 1], [], []>} : vector<28x288xf32>, vector<288x448xf32>, vector<28x448xf32> -> vector<28x448xf32>
    %19 = arith.addf %13, %18 : vector<28x448xf32>
    %20 = vector.extract_strided_slice %0 {offsets = [0, 3, 0], sizes = [2, 14, 288], strides = [1, 1, 1]} : vector<2x18x288xf32> to vector<2x14x288xf32>
    %21 = vector.shape_cast %20 : vector<2x14x288xf32> to vector<28x288xf32>
    %c3 = arith.constant 3 : index
    %c0_12 = arith.constant 0 : index
    %c0_13 = arith.constant 0 : index
    %22 = vector.load %arg2[%c3, %c0_12, %c0_13] : memref<5x288x448xf32, #tpu.memory_space<vmem>>, vector<1x288x448xf32>
    %23 = vector.shape_cast %22 : vector<1x288x448xf32> to vector<288x448xf32>
    %cst_14 = arith.constant dense<0.000000e+00> : vector<28x448xf32>
    %24 = tpu.matmul %21, %23, %cst_14 {dimension_numbers = #tpu.dot_dimension_numbers<[1], [0], [0], [1], [0, 0, 1, 1], [], []>} : vector<28x288xf32>, vector<288x448xf32>, vector<28x448xf32> -> vector<28x448xf32>
    %25 = arith.addf %19, %24 : vector<28x448xf32>
    %26 = vector.extract_strided_slice %0 {offsets = [0, 4, 0], sizes = [2, 14, 288], strides = [1, 1, 1]} : vector<2x18x288xf32> to vector<2x14x288xf32>
    %27 = vector.shape_cast %26 : vector<2x14x288xf32> to vector<28x288xf32>
    %c4 = arith.constant 4 : index
    %c0_15 = arith.constant 0 : index
    %c0_16 = arith.constant 0 : index
    %28 = vector.load %arg2[%c4, %c0_15, %c0_16] : memref<5x288x448xf32, #tpu.memory_space<vmem>>, vector<1x288x448xf32>
    %29 = vector.shape_cast %28 : vector<1x288x448xf32> to vector<288x448xf32>
    %cst_17 = arith.constant dense<0.000000e+00> : vector<28x448xf32>
    %30 = tpu.matmul %27, %29, %cst_17 {dimension_numbers = #tpu.dot_dimension_numbers<[1], [0], [0], [1], [0, 0, 1, 1], [], []>} : vector<28x288xf32>, vector<288x448xf32>, vector<28x448xf32> -> vector<28x448xf32>
    %31 = arith.addf %25, %30 : vector<28x448xf32>
    %c0_18 = arith.constant 0 : index
    %c0_19 = arith.constant 0 : index
    %32 = vector.load %arg3[%c0_18, %c0_19] : memref<1x448xf32, #tpu.memory_space<vmem>>, vector<1x448xf32>
    %33 = vector.broadcast %32 : vector<1x448xf32> to vector<28x448xf32>
    %34 = arith.addf %31, %33 : vector<28x448xf32>
    %cst_20 = arith.constant 0.000000e+00 : f32
    %35 = vector.broadcast %cst_20 : f32 to vector<28x448xf32>
    %36 = arith.maximumf %34, %35 : vector<28x448xf32>
    %37 = vector.shape_cast %36 : vector<28x448xf32> to vector<14x2x448xf32>
    %38 = vector.extract_strided_slice %37 {offsets = [0, 0, 0], sizes = [14, 1, 448], strides = [1, 1, 1]} : vector<14x2x448xf32> to vector<14x1x448xf32>
    %39 = vector.shape_cast %38 : vector<14x1x448xf32> to vector<14x448xf32>
    %40 = vector.extract_strided_slice %37 {offsets = [0, 1, 0], sizes = [14, 1, 448], strides = [1, 1, 1]} : vector<14x2x448xf32> to vector<14x1x448xf32>
    %41 = vector.shape_cast %40 : vector<14x1x448xf32> to vector<14x448xf32>
    %42 = arith.maximumf %39, %41 : vector<14x448xf32>
    %43 = vector.extract_strided_slice %42 {offsets = [0, 0], sizes = [14, 224], strides = [1, 1]} : vector<14x448xf32> to vector<14x224xf32>
    %44 = vector.extract_strided_slice %42 {offsets = [0, 224], sizes = [14, 224], strides = [1, 1]} : vector<14x448xf32> to vector<14x224xf32>
    %45 = arith.maximumf %43, %44 : vector<14x224xf32>
    %46 = vector.shape_cast %45 : vector<14x224xf32> to vector<2x7x224xf32>
    %c0_21 = arith.constant 0 : index
    %c0_22 = arith.constant 0 : index
    %c0_23 = arith.constant 0 : index
    %47 = vector.load %arg4[%c0_21, %c0_22, %c0_23] : memref<2x7x224xf32, #tpu.memory_space<vmem>>, vector<2x7x224xf32>
    tpu.vector_store %arg4[%c0_21, %c0_22, %c0_23], %46 {strides = array<i32>} : memref<2x7x224xf32, #tpu.memory_space<vmem>>, vector<2x7x224xf32>,
    return
  }
  func.func @transform_0(%arg0: i32) -> (i32, i32, i32) {
    %c0_i32 = arith.constant 0 : i32
    %c0_i32_0 = arith.constant 0 : i32
    %c0_i32_1 = arith.constant 0 : i32
    return %arg0, %c0_i32, %c0_i32_0 : i32, i32, i32
  }
  func.func @transform_1(%arg0: i32) -> (i32, i32, i32) {
    %c0_i32 = arith.constant 0 : i32
    %c0_i32_0 = arith.constant 0 : i32
    %c0_i32_1 = arith.constant 0 : i32
    %c0_i32_2 = arith.constant 0 : i32
    return %c0_i32, %c0_i32_0, %c0_i32_1 : i32, i32, i32
  }
  func.func @transform_2(%arg0: i32) -> (i32, i32) {
    %c0_i32 = arith.constant 0 : i32
    %c0_i32_0 = arith.constant 0 : i32
    %c0_i32_1 = arith.constant 0 : i32
    return %c0_i32, %c0_i32_0 : i32, i32
  }
  func.func @transform_3(%arg0: i32) -> (i32, i32, i32) {
    %c0_i32 = arith.constant 0 : i32
    %c0_i32_0 = arith.constant 0 : i32
    %c0_i32_1 = arith.constant 0 : i32
    return %arg0, %c0_i32, %c0_i32_0 : i32, i32, i32
  }
}

</mosaic_0001>

<bundles_post_ra>
// kernel: cnn_forward.5
= control target key start
LH: loop header
LB: loop body
LE: loop exit
PB: predicated region body
PF: predicated region fallthrough
CT: control target
= control target key end

     0   :  { %v1263_v43 = vmov 1983009808   ;;  %v230_v45 = vlaneseq  ;;  %s1931_s0 = inlined_call_operand.vmem [shape: f32[2,1568], index: 0, kind: input, shape index: {}]   ;;  %s1932_s1 = inlined_call_operand.vmem [shape: f32[1568,128], index: 1, kind: input, shape index: {}]   ;;  %s1933_s2 = inlined_call_operand.vmem [shape: f32[1,128], index: 2, kind: input, shape index: {}]   ;;  %s1934_s3 = inlined_call_operand.hbm [shape: f32[2,128], index: 3, kind: output, shape index: {}]  }
   0x1   :  { %v35_v0 = vld [vmem:[%s1932_s1 + $0x80] sm:$0xff]  ;;  %v36_v1 = vld [vmem:[%s1932_s1 + $0x88] sm:$0xff]  ;;  %v37_v11 = vld [vmem:[%s1932_s1 + $0x90] sm:$0xff]  ;;  %v228_v44 = vunpack.c.l.s4 %v1263_v43 }
   0x2   :  { %v19_v2 = vld [vmem:[%s1932_s1] sm:$0xff]  ;;  %v1033_v3 = vpack.c.bf16 %v36_v1, %v35_v0  ;;  %v20_v4 = vld [vmem:[%s1932_s1 + $0x8] sm:$0xff]  ;;  %v38_v13 = vld [vmem:[%s1932_s1 + $0x98] sm:$0xff]  ;;  %v231_v60 = vshrl.u32 %v230_v45, 7 }
   0x3   :  { %v67_v5 = vld [vmem:[%s1932_s1 + $0x180] sm:$0xff]  ;;  %v68_v6 = vld [vmem:[%s1932_s1 + $0x188] sm:$0xff]  ;;  %v1035_v7 = vpack.c.bf16 %v20_v4, %v19_v2  ;;  %v21_v14 = vld [vmem:[%s1932_s1 + $0x10] sm:$0xff]  ;;  %v1037_v16 = vpack.c.bf16 %v38_v13, %v37_v11  ;;  %v229_v59 = vunpack.c.0.s8 %v228_v44 }
   0x4   :  { %v1065_v8 = vpack.c.bf16 %v68_v6, %v67_v5  ;;  %v51_v9 = vld [vmem:[%s1932_s1 + $0x100] sm:$0xff]  ;;  %v52_v10 = vld [vmem:[%s1932_s1 + $0x108] sm:$0xff]  ;;  %1034 = vmatprep.subr.bf16.mxu0 %v1033_v3  ;;  %v22_v15 = vld [vmem:[%s1932_s1 + $0x18] sm:$0xff] }
   0x5   :  { %v1067_v12 = vpack.c.bf16 %v52_v10, %v51_v9  ;;  %1036 = vmatpush3.bf16.msra.mxu0 %v1035_v7  ;;  %v1039_v17 = vpack.c.bf16 %v22_v15, %v21_v14  ;;  %v69_v18 = vld [vmem:[%s1932_s1 + $0x190] sm:$0xff]  ;;  %v70_v19 = vld [vmem:[%s1932_s1 + $0x198] sm:$0xff]  ;;  %v39_v23 = vld [vmem:[%s1932_s1 + $0xa0] sm:$0xff]  ;;  %v1432_v10 = vsub.s32 %v229_v59, %v231_v60 }
   0x6   :  { %1066 = vmatprep.subr.bf16.mxu1 %v1065_v8  ;;  %v53_v20 = vld [vmem:[%s1932_s1 + $0x110] sm:$0xff]  ;;  %v1069_v21 = vpack.c.bf16 %v70_v19, %v69_v18  ;;  %v54_v22 = vld [vmem:[%s1932_s1 + $0x118] sm:$0xff]  ;;  %v40_v24 = vld [vmem:[%s1932_s1 + $0xa8] sm:$0xff]  ;;  %1038 = vmatprep.subr.bf16.mxu0 %v1037_v16 }
   0x7   :  { %1068 = vmatpush3.bf16.msra.mxu1 %v1067_v12  ;;  %v1071_v25 = vpack.c.bf16 %v54_v22, %v53_v20  ;;  %v1041_v26 = vpack.c.bf16 %v40_v24, %v39_v23  ;;  %v23_v27 = vld [vmem:[%s1932_s1 + $0x20] sm:$0xff]  ;;  %v24_v28 = vld [vmem:[%s1932_s1 + $0x28] sm:$0xff]  ;;  %v41_v35 = vld [vmem:[%s1932_s1 + $0xb0] sm:$0xff] }
   0x8   :  { %v71_v29 = vld [vmem:[%s1932_s1 + $0x1a0] sm:$0xff]  ;;  %1070 = vmatprep.subr.bf16.mxu1 %v1069_v21  ;;  %v72_v30 = vld [vmem:[%s1932_s1 + $0x1a8] sm:$0xff]  ;;  %v1043_v33 = vpack.c.bf16 %v24_v28, %v23_v27  ;;  %v42_v36 = vld [vmem:[%s1932_s1 + $0xb8] sm:$0xff] }
   0x9   :  { %v55_v31 = vld [vmem:[%s1932_s1 + $0x120] sm:$0xff]  ;;  %v56_v32 = vld [vmem:[%s1932_s1 + $0x128] sm:$0xff]  ;;  %1040 = vmatpush3.bf16.msra.mxu0 %v1039_v17  ;;  %v1073_v34 = vpack.c.bf16 %v72_v30, %v71_v29  ;;  %v25_v37 = vld [vmem:[%s1932_s1 + $0x30] sm:$0xff]  ;;  %v1045_v39 = vpack.c.bf16 %v42_v36, %v41_v35 }
   0xa   :  { %1042 = vmatprep.subr.bf16.mxu0 %v1041_v26  ;;  %v1075_v38 = vpack.c.bf16 %v56_v32, %v55_v31  ;;  %v26_v40 = vld [vmem:[%s1932_s1 + $0x38] sm:$0xff]  ;;  %v73_v41 = vld [vmem:[%s1932_s1 + $0x1b0] sm:$0xff]  ;;  %v43_v49 = vld [vmem:[%s1932_s1 + $0xc0] sm:$0xff] }
   0xb   :  { %1072 = vmatpush3.bf16.msra.mxu1 %v1071_v25  ;;  %v74_v42 = vld [vmem:[%s1932_s1 + $0x1b8] sm:$0xff]  ;;  %v57_v47 = vld [vmem:[%s1932_s1 + $0x130] sm:$0xff]  ;;  %v44_v50 = vld [vmem:[%s1932_s1 + $0xc8] sm:$0xff]  ;;  %v1047_v51 = vpack.c.bf16 %v26_v40, %v25_v37 }
   0xc   :  { %1074 = vmatprep.subr.bf16.mxu1 %v1073_v34  ;;  %v1077_v46 = vpack.c.bf16 %v74_v42, %v73_v41  ;;  %v58_v48 = vld [vmem:[%s1932_s1 + $0x138] sm:$0xff]  ;;  %v75_v52 = vld [vmem:[%s1932_s1 + $0x1c0] sm:$0xff]  ;;  %v76_v53 = vld [vmem:[%s1932_s1 + $0x1c8] sm:$0xff]  ;;  %v1049_v55 = vpack.c.bf16 %v44_v50, %v43_v49 }
   0xd   :  { %1044 = vmatpush3.bf16.msra.mxu0 %v1043_v33  ;;  %v1079_v54 = vpack.c.bf16 %v58_v48, %v57_v47  ;;  %v27_v56 = vld [vmem:[%s1932_s1 + $0x40] sm:$0xff]  ;;  %v28_v57 = vld [vmem:[%s1932_s1 + $0x48] sm:$0xff]  ;;  %v1081_v61 = vpack.c.bf16 %v76_v53, %v75_v52  ;;  %v45_v63 = vld [vmem:[%s1932_s1 + $0xd0] sm:$0xff] }
   0xe   :  { %1046 = vmatprep.subr.bf16.mxu0 %v1045_v39  ;;  %v59_v58 = vld [vmem:[%s1932_s1 + $0x140] sm:$0xff]  ;;  %v60_v62 = vld [vmem:[%s1932_s1 + $0x148] sm:$0xff]  ;;  %v46_v0 = vld [vmem:[%s1932_s1 + $0xd8] sm:$0xff]  ;;  %v1051_v3 = vpack.c.bf16 %v28_v57, %v27_v56 }
   0xf   :  { %1076 = vmatpush3.bf16.msra.mxu1 %v1075_v38  ;;  %v77_v1 = vld [vmem:[%s1932_s1 + $0x1d0] sm:$0xff]  ;;  %v78_v2 = vld [vmem:[%s1932_s1 + $0x1d8] sm:$0xff]  ;;  %v1083_v5 = vpack.c.bf16 %v60_v62, %v59_v58  ;;  %v1053_v6 = vpack.c.bf16 %v46_v0, %v45_v63  ;;  %v47_v12 = vld [vmem:[%s1932_s1 + $0xe0] sm:$0xff] }
  0x10   :  { %1078 = vmatprep.subr.bf16.mxu1 %v1077_v46  ;;  %v29_v4 = vld [vmem:[%s1932_s1 + $0x50] sm:$0xff]  ;;  %v30_v7 = vld [vmem:[%s1932_s1 + $0x58] sm:$0xff]  ;;  %v1085_v11 = vpack.c.bf16 %v78_v2, %v77_v1  ;;  %v48_v13 = vld [vmem:[%s1932_s1 + $0xe8] sm:$0xff] }
  0x11   :  { %1048 = vmatpush3.bf16.msra.mxu0 %v1047_v51  ;;  %v61_v8 = vld [vmem:[%s1932_s1 + $0x150] sm:$0xff]  ;;  %v62_v9 = vld [vmem:[%s1932_s1 + $0x158] sm:$0xff]  ;;  %v79_v14 = vld [vmem:[%s1932_s1 + $0x1e0] sm:$0xff]  ;;  %v1055_v16 = vpack.c.bf16 %v30_v7, %v29_v4  ;;  %v1057_v19 = vpack.c.bf16 %v48_v13, %v47_v12 }
  0x12   :  { %1050 = vmatprep.subr.bf16.mxu0 %v1049_v55  ;;  %v80_v15 = vld [vmem:[%s1932_s1 + $0x1e8] sm:$0xff]  ;;  %v1087_v17 = vpack.c.bf16 %v62_v9, %v61_v8  ;;  %v15_v18 = vld [vmem:[%s1931_s0] sm:$0xff]  ;;  %v49_v27 = vld [vmem:[%s1932_s1 + $0xf0] sm:$0xff] }
  0x13   :  { %1080 = vmatpush3.bf16.msra.mxu1 %v1079_v54  ;;  %v31_v20 = vld [vmem:[%s1932_s1 + $0x60] sm:$0xff]  ;;  %v32_v21 = vld [vmem:[%s1932_s1 + $0x68] sm:$0xff]  ;;  %v233_v23 = vrot.slane %v15_v18, %v1432_v10  ;;  %v226_v24 = vcombine.high %v15_v18, %v15_v18  ;;  %v1089_v25 = vpack.c.bf16 %v80_v15, %v79_v14  ;;  %v50_v28 = vld [vmem:[%s1932_s1 + $0xf8] sm:$0xff] }
  0x14   :  { %1082 = vmatprep.subr.bf16.mxu1 %v1081_v61  ;;  %v63_v22 = vld [vmem:[%s1932_s1 + $0x160] sm:$0xff]  ;;  %v64_v26 = vld [vmem:[%s1932_s1 + $0x168] sm:$0xff]  ;;  %v81_v29 = vld [vmem:[%s1932_s1 + $0x1f0] sm:$0xff]  ;;  %v1059_v33 = vpack.c.bf16 %v32_v21, %v31_v20  ;;  %v1061_v35 = vpack.c.bf16 %v50_v28, %v49_v27 }
  0x15   :  { %1052 = vmatpush3.bf16.msra.mxu0 %v1051_v3  ;;  %v82_v30 = vld [vmem:[%s1932_s1 + $0x1f8] sm:$0xff]  ;;  %v241_v31 = vcombine.high %v233_v23, %v233_v23  ;;  %v240_v32 = vrot.slane %v226_v24, %v1432_v10  ;;  %v1091_v34 = vpack.c.bf16 %v64_v26, %v63_v22  ;;  %v33_v36 = vld [vmem:[%s1932_s1 + $0x70] sm:$0xff]  ;;  %v99_v42 = vld [vmem:[%s1932_s1 + $0x280] sm:$0xff] }
  0x16   :  { %1054 = vmatprep.subr.bf16.mxu0 %v1053_v6  ;;  %v34_v37 = vld [vmem:[%s1932_s1 + $0x78] sm:$0xff]  ;;  %v65_v38 = vld [vmem:[%s1932_s1 + $0x170] sm:$0xff]  ;;  %v1093_v40 = vpack.c.bf16 %v82_v30, %v81_v29  ;;  %v100_v43 = vld [vmem:[%s1932_s1 + $0x288] sm:$0xff] }
  0x17   :  { %1084 = vmatpush3.bf16.msra.mxu1 %v1083_v5  ;;  %v242_v39 = vcombine.high %v240_v32, %v240_v32  ;;  %363 = vmatprep.mubr.f32.mxu0 %v241_v31  ;;  %v66_v41 = vld [vmem:[%s1932_s1 + $0x178] sm:$0xff]  ;;  %v131_v44 = vld [vmem:[%s1932_s1 + $0x380] sm:$0xff]  ;;  %v132_v45 = vld [vmem:[%s1932_s1 + $0x388] sm:$0xff]  ;;  %v1063_v46 = vpack.c.bf16 %v34_v37, %v33_v36  ;;  %v1097_v48 = vpack.c.bf16 %v100_v43, %v99_v42 }
  0x18   :  { %1086 = vmatprep.subr.bf16.mxu1 %v1085_v11  ;;  %v1095_v47 = vpack.c.bf16 %v66_v41, %v65_v38  ;;  %v83_v49 = vld [vmem:[%s1932_s1 + $0x200] sm:$0xff]  ;;  %v84_v50 = vld [vmem:[%s1932_s1 + $0x208] sm:$0xff]  ;;  %v1129_v52 = vpack.c.bf16 %v132_v45, %v131_v44  ;;  %v101_v54 = vld [vmem:[%s1932_s1 + $0x290] sm:$0xff] }
  0x19   :  { %1056 = vmatpush3.bf16.msra.mxu0 %v1055_v16  ;;  %433 = vmatprep.mubr.f32.mxu1 %v242_v39  ;;  %v115_v51 = vld [vmem:[%s1932_s1 + $0x300] sm:$0xff]  ;;  %v116_v53 = vld [vmem:[%s1932_s1 + $0x308] sm:$0xff]  ;;  %v102_v55 = vld [vmem:[%s1932_s1 + $0x298] sm:$0xff]  ;;  %v1099_v58 = vpack.c.bf16 %v84_v50, %v83_v49 }
  0x1a   :  { %1058 = vmatprep.subr.bf16.mxu0 %v1057_v19  ;;  %v133_v56 = vld [vmem:[%s1932_s1 + $0x390] sm:$0xff]  ;;  %v134_v57 = vld [vmem:[%s1932_s1 + $0x398] sm:$0xff]  ;;  %v1131_v59 = vpack.c.bf16 %v116_v53, %v115_v51  ;;  %v1101_v60 = vpack.c.bf16 %v102_v55, %v101_v54  ;;  %v103_v2 = vld [vmem:[%s1932_s1 + $0x2a0] sm:$0xff] }
  0x1b   :  { %1088 = vmatpush3.bf16.msra.mxu1 %v1087_v17  ;;  %v85_v61 = vld [vmem:[%s1932_s1 + $0x210] sm:$0xff]  ;;  %v86_v62 = vld [vmem:[%s1932_s1 + $0x218] sm:$0xff]  ;;  %v1133_v0 = vpack.c.bf16 %v134_v57, %v133_v56  ;;  %v104_v3 = vld [vmem:[%s1932_s1 + $0x2a8] sm:$0xff] }
  0x1c   :  { %1090 = vmatprep.subr.bf16.mxu1 %v1089_v25  ;;  %v117_v63 = vld [vmem:[%s1932_s1 + $0x310] sm:$0xff]  ;;  %v118_v1 = vld [vmem:[%s1932_s1 + $0x318] sm:$0xff]  ;;  %v135_v4 = vld [vmem:[%s1932_s1 + $0x3a0] sm:$0xff]  ;;  %v1103_v6 = vpack.c.bf16 %v86_v62, %v85_v61  ;;  %v1105_v8 = vpack.c.bf16 %v104_v3, %v103_v2 }
  0x1d   :  { %1060 = vmatpush3.bf16.msra.mxu0 %v1059_v33  ;;  %v136_v5 = vld [vmem:[%s1932_s1 + $0x3a8] sm:$0xff]  ;;  %v1135_v7 = vpack.c.bf16 %v118_v1, %v117_v63  ;;  %v87_v9 = vld [vmem:[%s1932_s1 + $0x220] sm:$0xff]  ;;  %v105_v15 = vld [vmem:[%s1932_s1 + $0x2b0] sm:$0xff] }
  0x1e   :  { %1062 = vmatprep.subr.bf16.mxu0 %v1061_v35  ;;  %v88_v11 = vld [vmem:[%s1932_s1 + $0x228] sm:$0xff]  ;;  %v119_v12 = vld [vmem:[%s1932_s1 + $0x320] sm:$0xff]  ;;  %v1137_v13 = vpack.c.bf16 %v136_v5, %v135_v4  ;;  %v106_v16 = vld [vmem:[%s1932_s1 + $0x2b8] sm:$0xff] }
  0x1f   :  { %1092 = vmatpush3.bf16.msra.mxu1 %v1091_v34  ;;  %v120_v14 = vld [vmem:[%s1932_s1 + $0x328] sm:$0xff]  ;;  %v137_v17 = vld [vmem:[%s1932_s1 + $0x3b0] sm:$0xff]  ;;  %v138_v18 = vld [vmem:[%s1932_s1 + $0x3b8] sm:$0xff]  ;;  %v1107_v19 = vpack.c.bf16 %v88_v11, %v87_v9  ;;  %v1109_v22 = vpack.c.bf16 %v106_v16, %v105_v15 }
  0x20   :  { %1094 = vmatprep.subr.bf16.mxu1 %v1093_v40  ;;  %v89_v20 = vld [vmem:[%s1932_s1 + $0x230] sm:$0xff]  ;;  %v1139_v21 = vpack.c.bf16 %v120_v14, %v119_v12  ;;  %v122_v25 = vld [vmem:[%s1932_s1 + $0x338] sm:$0xff]  ;;  %v1141_v26 = vpack.c.bf16 %v138_v18, %v137_v17  ;;  %v107_v27 = vld [vmem:[%s1932_s1 + $0x2c0] sm:$0xff] }
  0x21   :  { %1064 = vmatpush3.bf16.msra.mxu0 %v1063_v46  ;;  %v121_v24 = vld [vmem:[%s1932_s1 + $0x330] sm:$0xff]  ;;  %v108_v28 = vld [vmem:[%s1932_s1 + $0x2c8] sm:$0xff]  ;;  %v139_v30 = vld [vmem:[%s1932_s1 + $0x3c0] sm:$0xff] }
  0x22   :  { %1098 = vmatprep.subr.bf16.mxu0 %v1097_v48  ;;  %v16_v29 = vld [vmem:[%s1931_s0 + $0x8] sm:$0xff]  ;;  %v1143_v35 = vpack.c.bf16 %v122_v25, %v121_v24  ;;  %v1113_v36 = vpack.c.bf16 %v108_v28, %v107_v27  ;;  %v91_v37 = vld [vmem:[%s1932_s1 + $0x240] sm:$0xff]  ;;  %v109_v44 = vld [vmem:[%s1932_s1 + $0x2d0] sm:$0xff] }
  0x23   :  { %1096 = vmatpush3.bf16.msra.mxu1 %v1095_v47  ;;  %v140_v31 = vld [vmem:[%s1932_s1 + $0x3c8] sm:$0xff]  ;;  %v243_v33 = vcombine.high %v16_v29, %v16_v29  ;;  %v123_v39 = vld [vmem:[%s1932_s1 + $0x340] sm:$0xff]  ;;  %v110_v45 = vld [vmem:[%s1932_s1 + $0x2d8] sm:$0xff] }
  0x24   :  { %1130 = vmatprep.subr.bf16.mxu1 %v1129_v52  ;;  %364 = vmatmul.mubr.f32.vlgmr.msra.gmra.mrb[0].mxu0 %v233_v23  ;;  %v90_v23 = vld [vmem:[%s1932_s1 + $0x238] sm:$0xff]  ;;  %v92_v38 = vld [vmem:[%s1932_s1 + $0x248] sm:$0xff]  ;;  %v1145_v42 = vpack.c.bf16 %v140_v31, %v139_v30  ;;  %v141_v46 = vld [vmem:[%s1932_s1 + $0x3d0] sm:$0xff]  ;;  %v1117_v51 = vpack.c.bf16 %v110_v45, %v109_v44 }
  0x25   :  { %1100 = vmatpush3.bf16.msra.mxu0 %v1099_v58  ;;  %v1111_v34 = vpack.c.bf16 %v90_v23, %v89_v20  ;;  %v1613_v41 = vrot.slane %v243_v33, %v1432_v10  ;;  %v124_v43 = vld [vmem:[%s1932_s1 + $0x348] sm:$0xff]  ;;  %v142_v47 = vld [vmem:[%s1932_s1 + $0x3d8] sm:$0xff]  ;;  %v1115_v49 = vpack.c.bf16 %v92_v38, %v91_v37  ;;  %v93_v52 = vld [vmem:[%s1932_s1 + $0x250] sm:$0xff] }
  0x26   :  { %434 = vmatmul.mubr.f32.vlgmr.msra.gmra.mrb[0].mxu1 %v240_v32  ;;  %1102 = vmatprep.subr.bf16.mxu0 %v1101_v60  ;;  %v1599_v32 = vrot.slane %v16_v29, %v1432_v10  ;;  %v1147_v50 = vpack.c.bf16 %v124_v43, %v123_v39  ;;  %v94_v53 = vld [vmem:[%s1932_s1 + $0x258] sm:$0xff]  ;;  %v125_v54 = vld [vmem:[%s1932_s1 + $0x350] sm:$0xff]  ;;  %v1149_v55 = vpack.c.bf16 %v142_v47, %v141_v46  ;;  %v111_v57 = vld [vmem:[%s1932_s1 + $0x2e0] sm:$0xff] }
  0x27   :  { %1132 = vmatpush3.bf16.msra.mxu1 %v1131_v59  ;;  %v259_v48 = vcombine.high %v1613_v41, %v1613_v41  ;;  %v126_v56 = vld [vmem:[%s1932_s1 + $0x358] sm:$0xff]  ;;  %v112_v58 = vld [vmem:[%s1932_s1 + $0x2e8] sm:$0xff]  ;;  %v143_v59 = vld [vmem:[%s1932_s1 + $0x3e0] sm:$0xff]  ;;  %v1119_v61 = vpack.c.bf16 %v94_v53, %v93_v52 }
  0x28   :  { %1134 = vmatprep.subr.bf16.mxu1 %v1133_v0  ;;  %v258_v40 = vcombine.high %v1599_v32, %v1599_v32  ;;  %v144_v60 = vld [vmem:[%s1932_s1 + $0x3e8] sm:$0xff]  ;;  %v1151_v62 = vpack.c.bf16 %v126_v56, %v125_v54  ;;  %v1121_v63 = vpack.c.bf16 %v112_v58, %v111_v57  ;;  %v95_v0 = vld [vmem:[%s1932_s1 + $0x260] sm:$0xff]  ;;  %v113_v5 = vld [vmem:[%s1932_s1 + $0x2f0] sm:$0xff] }
  0x29   :  { %1104 = vmatpush3.bf16.msra.mxu0 %v1103_v6  ;;  %573 = vmatprep.mubr.f32.mxu1 %v259_v48  ;;  %v96_v1 = vld [vmem:[%s1932_s1 + $0x268] sm:$0xff]  ;;  %v127_v2 = vld [vmem:[%s1932_s1 + $0x360] sm:$0xff]  ;;  %v1153_v3 = vpack.c.bf16 %v144_v60, %v143_v59  ;;  %v114_v6 = vld [vmem:[%s1932_s1 + $0x2f8] sm:$0xff] }
  0x2a   :  { %1106 = vmatprep.subr.bf16.mxu0 %v1105_v8  ;;  %503 = vmatprep.mubr.f32.mxu0 %v258_v40  ;;  %v128_v4 = vld [vmem:[%s1932_s1 + $0x368] sm:$0xff]  ;;  %v146_v8 = vld [vmem:[%s1932_s1 + $0x3f8] sm:$0xff]  ;;  %v1123_v9 = vpack.c.bf16 %v96_v1, %v95_v0  ;;  %v1125_v12 = vpack.c.bf16 %v114_v6, %v113_v5  ;;  %v129_v15 = vld [vmem:[%s1932_s1 + $0x370] sm:$0xff] }
  0x2b   :  { %1136 = vmatpush3.bf16.msra.mxu1 %v1135_v7  ;;  %v145_v7 = vld [vmem:[%s1932_s1 + $0x3f0] sm:$0xff]  ;;  %v1155_v11 = vpack.c.bf16 %v128_v4, %v127_v2  ;;  %v98_v14 = vld [vmem:[%s1932_s1 + $0x278] sm:$0xff]  ;;  %v163_v18 = vld [vmem:[%s1932_s1 + $0x480] sm:$0xff] }
  0x2c   :  { %1138 = vmatprep.subr.bf16.mxu1 %v1137_v13  ;;  %v97_v13 = vld [vmem:[%s1932_s1 + $0x270] sm:$0xff]  ;;  %v1157_v16 = vpack.c.bf16 %v146_v8, %v145_v7  ;;  %v130_v17 = vld [vmem:[%s1932_s1 + $0x378] sm:$0xff]  ;;  %v195_v20 = vld [vmem:[%s1932_s1 + $0x580] sm:$0xff] }
  0x2d   :  { %1108 = vmatpush3.bf16.msra.mxu0 %v1107_v19  ;;  %v164_v19 = vld [vmem:[%s1932_s1 + $0x488] sm:$0xff]  ;;  %v147_v23 = vld [vmem:[%s1932_s1 + $0x400] sm:$0xff]  ;;  %v1159_v24 = vpack.c.bf16 %v130_v17, %v129_v15  ;;  %v165_v30 = vld [vmem:[%s1932_s1 + $0x490] sm:$0xff] }
  0x2e   :  { %1110 = vmatprep.subr.bf16.mxu0 %v1109_v22  ;;  %v1127_v22 = vpack.c.bf16 %v98_v14, %v97_v13  ;;  %v1161_v25 = vpack.c.bf16 %v164_v19, %v163_v18  ;;  %v179_v27 = vld [vmem:[%s1932_s1 + $0x500] sm:$0xff]  ;;  %v180_v28 = vld [vmem:[%s1932_s1 + $0x508] sm:$0xff]  ;;  %v166_v31 = vld [vmem:[%s1932_s1 + $0x498] sm:$0xff] }
  0x2f   :  { %1140 = vmatpush3.bf16.msra.mxu1 %v1139_v21  ;;  %v196_v21 = vld [vmem:[%s1932_s1 + $0x588] sm:$0xff]  ;;  %v197_v33 = vld [vmem:[%s1932_s1 + $0x590] sm:$0xff]  ;;  %v1165_v38 = vpack.c.bf16 %v166_v31, %v165_v30  ;;  %v150_v40 = vld [vmem:[%s1932_s1 + $0x418] sm:$0xff] }
  0x30   :  { %1142 = vmatprep.subr.bf16.mxu1 %v1141_v26  ;;  %v148_v26 = vld [vmem:[%s1932_s1 + $0x408] sm:$0xff]  ;;  %v1193_v29 = vpack.c.bf16 %v196_v21, %v195_v20  ;;  %v17_v37 = vld [vmem:[%s1931_s0 + $0x10] sm:$0xff]  ;;  %v182_v46 = vld [vmem:[%s1932_s1 + $0x518] sm:$0xff] }
  0x31   :  { %1112 = vmatpush3.bf16.msra.mxu0 %v1111_v34  ;;  %v198_v34 = vld [vmem:[%s1932_s1 + $0x598] sm:$0xff]  ;;  %v149_v39 = vld [vmem:[%s1932_s1 + $0x410] sm:$0xff]  ;;  %v1741_v43 = vrot.slane %v17_v37, %v1432_v10  ;;  %v260_v44 = vcombine.high %v17_v37, %v17_v37  ;;  %v167_v47 = vld [vmem:[%s1932_s1 + $0x4a0] sm:$0xff] }
  0x32   :  { %1114 = vmatprep.subr.bf16.mxu0 %v1113_v36  ;;  %v1195_v36 = vpack.c.bf16 %v180_v28, %v179_v27  ;;  %v1197_v45 = vpack.c.bf16 %v198_v34, %v197_v33  ;;  %v168_v48 = vld [vmem:[%s1932_s1 + $0x4a8] sm:$0xff] }
  0x33   :  { %1144 = vmatpush3.bf16.msra.mxu1 %v1143_v35  ;;  %v1163_v35 = vpack.c.bf16 %v148_v26, %v147_v23  ;;  %v1762_v52 = vrot.slane %v260_v44, %v1432_v10 }
  0x34   :  { %1146 = vmatprep.subr.bf16.mxu1 %v1145_v42  ;;  %v181_v42 = vld [vmem:[%s1932_s1 + $0x510] sm:$0xff] }
  0x35   :  { %1116 = vmatpush3.bf16.msra.mxu0 %v1115_v49  ;;  %v199_v49 = vld [vmem:[%s1932_s1 + $0x5a0] sm:$0xff] }
  0x36   :  { %1118 = vmatprep.subr.bf16.mxu0 %v1117_v51  ;;  %v275_v51 = vcombine.high %v1741_v43, %v1741_v43 }
  0x37   :  { %1148 = vmatpush3.bf16.msra.mxu1 %v1147_v50  ;;  %v200_v50 = vld [vmem:[%s1932_s1 + $0x5a8] sm:$0xff] }
  0x38   :  { %1150 = vmatprep.subr.bf16.mxu1 %v1149_v55 }
  0x39   :  { %1120 = vmatpush3.bf16.msra.mxu0 %v1119_v61 }
  0x3a   :  { %1122 = vmatprep.subr.bf16.mxu0 %v1121_v63 }
  0x3b   :  { %1152 = vmatpush3.bf16.msra.mxu1 %v1151_v62 }
  0x3c   :  { %1154 = vmatprep.subr.bf16.mxu1 %v1153_v3 }
  0x3d   :  { %1124 = vmatpush3.bf16.msra.mxu0 %v1123_v9 }
  0x3e   :  { %1126 = vmatprep.subr.bf16.mxu0 %v1125_v12 }
  0x3f   :  { %1156 = vmatpush3.bf16.msra.mxu1 %v1155_v11 }
  0x40   :  { %1158 = vmatprep.subr.bf16.mxu1 %v1157_v16 }
  0x41   :  { %1128 = vmatpush3.bf16.msra.mxu0 %v1127_v22 }
  0x42   :  { %1162 = vmatprep.subr.bf16.mxu0 %v1161_v25 }
  0x43   :  { %1160 = vmatpush3.bf16.msra.mxu1 %v1159_v24 }
  0x44   :  { %1194 = vmatprep.subr.bf16.mxu1 %v1193_v29  ;;  %504 = vmatmul.mubr.f32.vlgmr.msra.gmra.mrb[2].mxu0 %v1599_v32 }
  0x45   :  { %8 = vsyncpa [#allocation3], 0  ;;  %1164 = vmatpush3.bf16.msra.mxu0 %v1163_v35  ;;  %v1167_v53 = vpack.c.bf16 %v150_v40, %v149_v39  ;;  %v1199_v32 = vpack.c.bf16 %v182_v46, %v181_v42  ;;  %v1169_v54 = vpack.c.bf16 %v168_v48, %v167_v47  ;;  %v151_v55 = vld [vmem:[%s1932_s1 + $0x420] sm:$0xff]  ;;  %v152_v56 = vld [vmem:[%s1932_s1 + $0x428] sm:$0xff]  ;;  %v1201_v57 = vpack.c.bf16 %v200_v50, %v199_v49 }
  0x46   :  { %574 = vmatmul.mubr.f32.vlgmr.msra.gmra.mrb[2].mxu1 %v1613_v41  ;;  %1166 = vmatprep.subr.bf16.mxu0 %v1165_v38  ;;  %v183_v10 = vld [vmem:[%s1932_s1 + $0x520] sm:$0xff]  ;;  %v276_v41 = vcombine.high %v1762_v52, %v1762_v52  ;;  %v184_v58 = vld [vmem:[%s1932_s1 + $0x528] sm:$0xff]  ;;  %v169_v59 = vld [vmem:[%s1932_s1 + $0x4b0] sm:$0xff]  ;;  %v1171_v63 = vpack.c.bf16 %v152_v56, %v151_v55  ;;  %vm1265_vm0 = vmmov 0   ;;  %vm296_vm1 = vcmask 261120  }
  0x47   :  { %1196 = vmatpush3.bf16.msra.mxu1 %v1195_v36  ;;  %v170_v60 = vld [vmem:[%s1932_s1 + $0x4b8] sm:$0xff]  ;;  %643 = vmatprep.mubr.f32.mxu0 %v275_v51  ;;  %v201_v61 = vld [vmem:[%s1932_s1 + $0x5b0] sm:$0xff]  ;;  %v1203_v0 = vpack.c.bf16 %v184_v58, %v183_v10  ;;  %v171_v7 = vld [vmem:[%s1932_s1 + $0x4c0] sm:$0xff] }
  0x48   :  { %1198 = vmatprep.subr.bf16.mxu1 %v1197_v45  ;;  %v202_v62 = vld [vmem:[%s1932_s1 + $0x5b8] sm:$0xff]  ;;  %713 = vmatprep.mubr.f32.mxu1 %v276_v41  ;;  %v1173_v1 = vpack.c.bf16 %v170_v60, %v169_v59  ;;  %v153_v2 = vld [vmem:[%s1932_s1 + $0x430] sm:$0xff]  ;;  %v172_v8 = vld [vmem:[%s1932_s1 + $0x4c8] sm:$0xff] }
  0x49   :  { %1168 = vmatpush3.bf16.msra.mxu0 %v1167_v53  ;;  %v154_v3 = vld [vmem:[%s1932_s1 + $0x438] sm:$0xff]  ;;  %v185_v4 = vld [vmem:[%s1932_s1 + $0x530] sm:$0xff]  ;;  %v1205_v5 = vpack.c.bf16 %v202_v62, %v201_v61  ;;  %v203_v9 = vld [vmem:[%s1932_s1 + $0x5c0] sm:$0xff]  ;;  %v1177_v14 = vpack.c.bf16 %v172_v8, %v171_v7  ;;  %v1264_v62 = vmov 0.0|0.0  }
  0x4a   :  { %1170 = vmatprep.subr.bf16.mxu0 %v1169_v54  ;;  %v186_v6 = vld [vmem:[%s1932_s1 + $0x538] sm:$0xff]  ;;  %v204_v11 = vld [vmem:[%s1932_s1 + $0x5c8] sm:$0xff]  ;;  %v1175_v12 = vpack.c.bf16 %v154_v3, %v153_v2  ;;  %v155_v15 = vld [vmem:[%s1932_s1 + $0x440] sm:$0xff]  ;;  %v1266_v2 = vmov 0.0  }
  0x4b   :  { %1200 = vmatpush3.bf16.msra.mxu1 %v1199_v32  ;;  %v1207_v13 = vpack.c.bf16 %v186_v6, %v185_v4  ;;  %v156_v16 = vld [vmem:[%s1932_s1 + $0x448] sm:$0xff]  ;;  %v187_v17 = vld [vmem:[%s1932_s1 + $0x540] sm:$0xff]  ;;  %v1209_v18 = vpack.c.bf16 %v204_v11, %v203_v9  ;;  %v173_v20 = vld [vmem:[%s1932_s1 + $0x4d0] sm:$0xff] }
  0x4c   :  { %1202 = vmatprep.subr.bf16.mxu1 %v1201_v57  ;;  %v188_v19 = vld [vmem:[%s1932_s1 + $0x548] sm:$0xff]  ;;  %v174_v21 = vld [vmem:[%s1932_s1 + $0x4d8] sm:$0xff]  ;;  %v205_v22 = vld [vmem:[%s1932_s1 + $0x5d0] sm:$0xff]  ;;  %v1179_v24 = vpack.c.bf16 %v156_v16, %v155_v15 }
  0x4d   :  { %1172 = vmatpush3.bf16.msra.mxu0 %v1171_v63  ;;  %v206_v23 = vld [vmem:[%s1932_s1 + $0x5d8] sm:$0xff]  ;;  %v1211_v25 = vpack.c.bf16 %v188_v19, %v187_v17  ;;  %v1181_v26 = vpack.c.bf16 %v174_v21, %v173_v20  ;;  %v157_v27 = vld [vmem:[%s1932_s1 + $0x450] sm:$0xff]  ;;  %v175_v33 = vld [vmem:[%s1932_s1 + $0x4e0] sm:$0xff] }
  0x4e   :  { %1174 = vmatprep.subr.bf16.mxu0 %v1173_v1  ;;  %v158_v28 = vld [vmem:[%s1932_s1 + $0x458] sm:$0xff]  ;;  %v189_v29 = vld [vmem:[%s1932_s1 + $0x550] sm:$0xff]  ;;  %v1213_v30 = vpack.c.bf16 %v206_v23, %v205_v22  ;;  %v176_v34 = vld [vmem:[%s1932_s1 + $0x4e8] sm:$0xff] }
  0x4f   :  { %1204 = vmatpush3.bf16.msra.mxu1 %v1203_v0  ;;  %v190_v31 = vld [vmem:[%s1932_s1 + $0x558] sm:$0xff]  ;;  %v207_v35 = vld [vmem:[%s1932_s1 + $0x5e0] sm:$0xff]  ;;  %v208_v36 = vld [vmem:[%s1932_s1 + $0x5e8] sm:$0xff]  ;;  %v1183_v37 = vpack.c.bf16 %v158_v28, %v157_v27  ;;  %v1185_v39 = vpack.c.bf16 %v176_v34, %v175_v33 }
  0x50   :  { %1206 = vmatprep.subr.bf16.mxu1 %v1205_v5  ;;  %v1215_v38 = vpack.c.bf16 %v190_v31, %v189_v29  ;;  %v159_v40 = vld [vmem:[%s1932_s1 + $0x460] sm:$0xff]  ;;  %v160_v42 = vld [vmem:[%s1932_s1 + $0x468] sm:$0xff]  ;;  %v1217_v45 = vpack.c.bf16 %v208_v36, %v207_v35  ;;  %v177_v47 = vld [vmem:[%s1932_s1 + $0x4f0] sm:$0xff] }
  0x51   :  { %1176 = vmatpush3.bf16.msra.mxu0 %v1175_v12  ;;  %v191_v44 = vld [vmem:[%s1932_s1 + $0x560] sm:$0xff]  ;;  %v192_v46 = vld [vmem:[%s1932_s1 + $0x568] sm:$0xff]  ;;  %v178_v48 = vld [vmem:[%s1932_s1 + $0x4f8] sm:$0xff]  ;;  %v1187_v51 = vpack.c.bf16 %v160_v42, %v159_v40 }
  0x52   :  { %1178 = vmatprep.subr.bf16.mxu0 %v1177_v14  ;;  %v209_v49 = vld [vmem:[%s1932_s1 + $0x5f0] sm:$0xff]  ;;  %v210_v50 = vld [vmem:[%s1932_s1 + $0x5f8] sm:$0xff]  ;;  %v1219_v53 = vpack.c.bf16 %v192_v46, %v191_v44  ;;  %v1189_v32 = vpack.c.bf16 %v178_v48, %v177_v47  ;;  %v211_v59 = vld [vmem:[%s1932_s1 + $0x600] sm:$0xff] }
  0x53   :  { %1208 = vmatpush3.bf16.msra.mxu1 %v1207_v13  ;;  %v161_v54 = vld [vmem:[%s1932_s1 + $0x470] sm:$0xff]  ;;  %v162_v55 = vld [vmem:[%s1932_s1 + $0x478] sm:$0xff]  ;;  %v1221_v56 = vpack.c.bf16 %v210_v50, %v209_v49  ;;  %v212_v60 = vld [vmem:[%s1932_s1 + $0x608] sm:$0xff] }
  0x54   :  { %1210 = vmatprep.subr.bf16.mxu1 %v1209_v18  ;;  %v193_v10 = vld [vmem:[%s1932_s1 + $0x570] sm:$0xff]  ;;  %v194_v41 = vld [vmem:[%s1932_s1 + $0x578] sm:$0xff]  ;;  %v1191_v57 = vpack.c.bf16 %v162_v55, %v161_v54  ;;  %v1226_v61 = vpack.c.bf16 %v212_v60, %v211_v59 }
  0x55   :  { %1180 = vmatpush3.bf16.msra.mxu0 %v1179_v24  ;;  %v1223_v58 = vpack.c.bf16 %v194_v41, %v193_v10  ;;  %v213_v63 = vld [vmem:[%s1932_s1 + $0x610] sm:$0xff]  ;;  %v214_v0 = vld [vmem:[%s1932_s1 + $0x618] sm:$0xff] }
  0x56   :  { %1182 = vmatprep.subr.bf16.mxu0 %v1181_v26  ;;  %v1229_v1 = vpack.c.bf16 %v214_v0, %v213_v63  ;;  %v805_v3 = vld.sshfl [vmem:[%s1931_s0 + $0x18] sm:$0x3 pattern:$0x76325410]  ;;  %s1267_s0 = smov [#allocation2]  }
  0x57   :  { %1212 = vmatpush3.bf16.msra.mxu1 %v1211_v25 }
  0x58   :  { %1214 = vmatprep.subr.bf16.mxu1 %v1213_v30 }
  0x59   :  { %1184 = vmatpush3.bf16.msra.mxu0 %v1183_v37 }
  0x5a   :  { %1186 = vmatprep.subr.bf16.mxu0 %v1185_v39 }
  0x5b   :  { %1216 = vmatpush3.bf16.msra.mxu1 %v1215_v38 }
  0x5c   :  { %1218 = vmatprep.subr.bf16.mxu1 %v1217_v45 }
  0x5d   :  { %1188 = vmatpush3.bf16.msra.mxu0 %v1187_v51 }
  0x5e   :  { %1190 = vmatprep.subr.bf16.mxu0 %v1189_v32 }
  0x5f   :  { %1220 = vmatpush3.bf16.msra.mxu1 %v1219_v53 }
  0x60   :  { %1222 = vmatprep.subr.bf16.mxu1 %v1221_v56 }
  0x61   :  { %1192 = vmatpush3.bf16.msra.mxu0 %v1191_v57 }
  0x62   :  { %1225 = vmatprep.subr.bf16.mxu0 %v1264_v62 }
  0x63   :  { %1224 = vmatpush3.bf16.msra.mxu1 %v1223_v58 }
  0x64   :  { %644 = vmatmul.mubr.f32.vlgmr.msra.gmra.mrb[4].mxu0 %v1741_v43  ;;  %v804_v43 = vld [vmem:[%s1933_s2] ss:$0 sm:$0xff]  ;;  %s796_s2 = sshll.u32 %s1267_s0, 4  ;;  %s797_s2 = int_to_ptr.vmem [resolvable:$true] %s796_s2 }
  0x65   :  { %1227 = vmatpush3.bf16.msra.mxu0 %v1226_v61  ;;  %1030 = vmatprep.mubr.msk.f32.mxu0 %vm1265_vm0, %v1266_v2  ;;  %s1239_s8 = scalar_lea.vmem %s797_s2, 32  ;;  %p1244_p1 = scmp.lt.s32.totalorder %s797_s2, %s797_s2 }
  0x66   :  { %714 = vmatmul.mubr.f32.vlgmr.msra.gmra.mrb[4].mxu1 %v1762_v52  ;;  %1228 = vmatprep.subr.bf16.mxu0 %v1264_v62  ;;  %p1240_p0 = scmp.ne.s32.totalorder %s797_s2, %s1239_s8  ;;  %p1245_p2 = scmp.lt.s32.totalorder %s1239_s8, %s1239_s8 }
  0x68   :  { %p1246_p3 = por %p1245_p2, %p1244_p1 }
  0x69   :  { %1230 = vmatpush3.bf16.msra.mxu0 %v1229_v1 }
  0x6a   :  { %p1247_p4 = pnand %p1246_p3, %p1240_p0 }
  0x6c   :  { %1031 = vmatmul.mubr.msk.f32.vlgmr.msra.gmra.mrb[6].mxu0 %vm296_vm1, %v805_v3 }
  0xf7   :  { %v839_v4 = vpop.f32.mrb[0].mxu0 }
  0xf8   :  { %v840_v5 = vpop.f32.mrb[1].mxu0 }
  0xf9   :  { %v874_v6 = vpop.f32.mrb[0].mxu1  ;;  %v841_v52 = vadd.f32 %v840_v5, %v839_v4 }
  0xfa   :  { %v875_v7 = vpop.f32.mrb[1].mxu1 }
  0xfb   :  { %v876_v8 = vadd.f32 %v875_v7, %v874_v6  ;;  %v366_v9 = vadd.f32 %v841_v52, %v804_v43 }
  0xfd   :  { %v436_v11 = vadd.f32 %v876_v8, %v366_v9 }
 0x117   :  { %v909_v12 = vpop.f32.mrb[2].mxu0 }
 0x118   :  { %v910_v13 = vpop.f32.mrb[3].mxu0 }
 0x119   :  { %v944_v14 = vpop.f32.mrb[2].mxu1  ;;  %v911_v15 = vadd.f32 %v910_v13, %v909_v12 }
 0x11a   :  { %v945_v16 = vpop.f32.mrb[3].mxu1 }
 0x11b   :  { %v946_v17 = vadd.f32 %v945_v16, %v944_v14  ;;  %v506_v18 = vadd.f32 %v911_v15, %v436_v11 }
 0x11d   :  { %v576_v19 = vadd.f32 %v946_v17, %v506_v18 }
 0x137   :  { %v979_v20 = vpop.f32.mrb[4].mxu0 }
 0x138   :  { %v980_v21 = vpop.f32.mrb[5].mxu0 }
 0x139   :  { %v1014_v22 = vpop.f32.mrb[4].mxu1  ;;  %v981_v23 = vadd.f32 %v980_v21, %v979_v20 }
 0x13a   :  { %v1015_v24 = vpop.f32.mrb[5].mxu1 }
 0x13b   :  { %v1016_v25 = vadd.f32 %v1015_v24, %v1014_v22  ;;  %v646_v26 = vadd.f32 %v981_v23, %v576_v19 }
 0x13d   :  { %v716_v27 = vadd.f32 %v1016_v25, %v646_v26 }
 0x13f   :  { %v785_v28 = vpop.f32.mrb[6].mxu0 }
 0x140   :  { %v786_v29 = vadd.f32 %v785_v28, %v716_v27  ;;  %v1032_v30 = vpop.f32.mrb[7].mxu0 }
 0x142   :  { %789 = vst [vmem:[#allocation2] sm:$0x3] %v786_v29 }
 0x143   :  { %1250 = shalt.err (!%p1247_p4)
}
 0x144   :  { %s1251_s11 = scalar_lea.hbm %s1934_s3, 32 }
 0x145   :  { %p1252_p5 = scmp.ne.s32.totalorder %s1934_s3, %s1251_s11  ;;  %p1255_p6 = scmp.lt.u32.totalorder %s1251_s11, %s1934_s3 }
 0x147   :  { %p1257_p7 = pnand %p1255_p6, %p1252_p5 }
 0x149   :  { %1260 = shalt.err (!%p1257_p7)
}
 0x14a   :  { %799 = dma.vmem_to_hbm [thread:$0]  %s797_s2, 32, %s1934_s3, [#allocation3]  }
 0x14b   :  { %1261 = dma.done.wait [#allocation3], 32  }
 0x14c   :  { %1262 = vsyncadd [#allocation3], 4294967264 }
 0x14d   :  { %803 = vsyncpa [#allocation3], 1 }

// kernel: cnn_forward.3
= control target key start
LH: loop header
LB: loop body
LE: loop exit
PB: predicated region body
PF: predicated region fallthrough
CT: control target
= control target key end

     0   :  { %8 = vsyncpa [#allocation3], 0  ;;  %s3890_s0 = inlined_call_operand.vmem [shape: f32[2,32,32], index: 0, kind: input, shape index: {}]   ;;  %s3891_s1 = inlined_call_operand.hbm [shape: f32[5,32,448], index: 1, kind: input, shape index: {}]   ;;  %s3892_s2 = inlined_call_operand.hbm [shape: f32[1,448], index: 2, kind: input, shape index: {}]   ;;  %s3893_s3 = inlined_call_operand.vmem [shape: f32[2,14,224], index: 3, kind: output, shape index: {}]  }
   0x1   :  { %9 = vsyncpa [#allocation5], 0  ;;  %s2962_s12 = smov [#allocation2]   ;;  %s2914_s16 = scalar_lea.hbm %s3891_s1, 10240 }
   0x2   :  { %s17_s13 = sshll.u32 %s2962_s12, 4  ;;  %p2915_p0 = scmp.ne.s32.totalorder %s3891_s1, %s2914_s16  ;;  %s18_s13 = int_to_ptr.vmem [resolvable:$true] %s17_s13 }
   0x3   :  { %p2918_p1 = scmp.lt.u32.totalorder %s2914_s16, %s3891_s1 }
   0x5   :  { %p2920_p2 = pnand %p2918_p1, %p2915_p0 }
   0x7   :  { %2923 = shalt.err (!%p2920_p2)
}
   0x8   :  { %s2924_s21 = scalar_lea.vmem %s18_s13, 10240  ;;  %p2929_p4 = scmp.lt.s32.totalorder %s18_s13, %s18_s13 }
   0x9   :  { %p2925_p3 = scmp.ne.s32.totalorder %s18_s13, %s2924_s21  ;;  %p2930_p5 = scmp.lt.s32.totalorder %s2924_s21, %s2924_s21 }
   0xb   :  { %p2931_p6 = por %p2930_p5, %p2929_p4 }
   0xd   :  { %p2932_p7 = pnand %p2931_p6, %p2925_p3 }
   0xf   :  { %2935 = shalt.err (!%p2932_p7)
}
  0x10   :  { %s2963_s22 = smov 512   ;;  %s2964_s23 = smov 32  }
  0x11   :  { %23 = dma.hbm_to_vmem [thread:$0]  %s3891_s1, 10240, %s18_s13, [#allocation3], %s2963_s22, %s2963_s22, %s2964_s23  }
  0x12   :  { %s2965_s26 = smov [#allocation4]   ;;  %s2936_s30 = scalar_lea.hbm %s3892_s2, 64 }
  0x13   :  { %s30_s27 = sshll.u32 %s2965_s26, 4  ;;  %p2937_p8 = scmp.ne.s32.totalorder %s3892_s2, %s2936_s30  ;;  %s31_s27 = int_to_ptr.vmem [resolvable:$true] %s30_s27 }
  0x14   :  { %p2940_p9 = scmp.lt.u32.totalorder %s2936_s30, %s3892_s2 }
  0x16   :  { %p2942_p10 = pnand %p2940_p9, %p2937_p8 }
  0x18   :  { %2945 = shalt.err (!%p2942_p10)
}
  0x19   :  { %s2946_s8 = scalar_lea.vmem %s31_s27, 64  ;;  %p2951_p12 = scmp.lt.s32.totalorder %s31_s27, %s31_s27 }
  0x1a   :  { %p2947_p11 = scmp.ne.s32.totalorder %s31_s27, %s2946_s8  ;;  %p2952_p13 = scmp.lt.s32.totalorder %s2946_s8, %s2946_s8 }
  0x1c   :  { %p2953_p0 = por %p2952_p13, %p2951_p12 }
  0x1e   :  { %p2954_p1 = pnand %p2953_p0, %p2947_p11 }
  0x20   :  { %2957 = shalt.err (!%p2954_p1)
}
  0x21   :  { %33 = dma.hbm_to_vmem [thread:$0]  %s3892_s2, 64, %s31_s27, [#allocation5]  }
  0x22   :  { %2958 = dma.done.wait [#allocation3], 10240  }
  0x23   :  { %2959 = vsyncadd [#allocation3], 4294957056 }
  0x24   :  { %2960 = dma.done.wait [#allocation5], 64  }
  0x25   :  { %2961 = vsyncadd [#allocation5], 4294967232  ;;  %v2966_v0 = vmov 0.0   ;;  %vm80_vm0 = vcmask 1042432   ;;  %vm81_vm1 = vcmask 1046532   ;;  %v129_v2 = vld [vmem:[#allocation2 + $0x88] sm:$0xff] }
  0x26   :  { %230 = vmatprep.mubr.f32.mxu0 %v2966_v0  ;;  %337 = vmatprep.mubr.f32.mxu1 %v2966_v0  ;;  %vm3015_vm2 = vmor %vm80_vm0, %vm81_vm1  ;;  %v133_v3 = vld [vmem:[#allocation2 + $0xa8] sm:$0xff]  ;;  %v131_v4 = vld [vmem:[#allocation2 + $0x98] sm:$0xff]  ;;  %vm151_vm3 = vcmask 261120   ;;  %vm942_vm4 = vcmask 1040384   ;;  %vm943_vm5 = vcmask 1044484   ;;  %vm615_vm7 = vcmask 1041408  }
  0x27   :  { %v2706_v5 = vpack.c.bf16 %v133_v3, %v129_v2  ;;  %v135_v6 = vld [vmem:[#allocation2 + $0xb8] sm:$0xff]  ;;  %v128_v7 = vld [vmem:[#allocation2 + $0x80] sm:$0xff]  ;;  %v130_v11 = vld [vmem:[#allocation2 + $0x90] sm:$0xff]  ;;  %vm616_vm8 = vcmask 1045508   ;;  %vm2523_vm10 = vcmask 1041409   ;;  %vm2525_vm11 = vcmask 1042434  }
  0x28   :  { %v132_v8 = vld [vmem:[#allocation2 + $0xa0] sm:$0xff]  ;;  %v2714_v9 = vpack.c.bf16 %v135_v6, %v131_v4  ;;  %v134_v12 = vld [vmem:[#allocation2 + $0xb0] sm:$0xff]  ;;  %v137_v13 = vld [vmem:[#allocation2 + $0xc8] sm:$0xff]  ;;  %vm2527_vm12 = vcmask 1043459   ;;  %vm2530_vm13 = vcmask 1045509   ;;  %vm2532_vm14 = vcmask 1046534  }
  0x29   :  { %v2708_v10 = vpack.c.bf16 %v132_v8, %v128_v7  ;;  %2707 = vmatprep.subr.bf16.mxu0 %v2706_v5  ;;  %v2716_v14 = vpack.c.bf16 %v134_v12, %v130_v11  ;;  %v141_v15 = vld [vmem:[#allocation2 + $0xe8] sm:$0xff]  ;;  %v139_v16 = vld [vmem:[#allocation2 + $0xd8] sm:$0xff]  ;;  %v136_v20 = vld [vmem:[#allocation2 + $0xc0] sm:$0xff]  ;;  %vm2534_vm15 = vcmask 1047559   ;;  %vm2586_vm0 = vcmask 785408  }
  0x2a   :  { %v143_v17 = vld [vmem:[#allocation2 + $0xf8] sm:$0xff]  ;;  %2715 = vmatprep.subr.bf16.mxu1 %v2714_v9  ;;  %v2710_v18 = vpack.c.bf16 %v141_v15, %v137_v13  ;;  %v140_v21 = vld [vmem:[#allocation2 + $0xe0] sm:$0xff]  ;;  %v138_v22 = vld [vmem:[#allocation2 + $0xd0] sm:$0xff]  ;;  %vm2589_vm1 = vcmask 783360  }
  0x2b   :  { %2709 = vmatpush1.bf16.msra.mxu0 %v2708_v10  ;;  %v2718_v19 = vpack.c.bf16 %v143_v17, %v139_v16  ;;  %2717 = vmatpush1.bf16.msra.mxu1 %v2716_v14  ;;  %v2712_v23 = vpack.c.bf16 %v140_v21, %v136_v20  ;;  %v142_v24 = vld [vmem:[#allocation2 + $0xf0] sm:$0xff]  ;;  %v3022_v25 = vld [vmem:[%s3890_s0] sm:$0xff]  ;;  %v3027_v26 = vld [vmem:[%s3890_s0 + $0x8] sm:$0xff] }
  0x2c   :  { %2711 = vmatprep.subr.bf16.mxu0 %v2710_v18  ;;  %v2720_v27 = vpack.c.bf16 %v142_v24, %v138_v22  ;;  %v3031_v28 = vcombine.high %v3022_v25, %v3022_v25  ;;  %v2601_v29 = vrot.slane %v3022_v25, 9  ;;  %v88_v30 = vrot.slane %v3027_v26, 5  ;;  %v63_v31 = vld [vmem:[#allocation2 + $0x8] sm:$0xff]  ;;  %v65_v33 = vld [vmem:[#allocation2 + $0x18] sm:$0xff]  ;;  %v62_v36 = vld [vmem:[#allocation2] sm:$0xff] }
  0x2d   :  { %2719 = vmatprep.subr.bf16.mxu1 %v2718_v19  ;;  %v67_v32 = vld [vmem:[#allocation2 + $0x28] sm:$0xff]  ;;  %v69_v35 = vld [vmem:[#allocation2 + $0x38] sm:$0xff]  ;;  %v66_v37 = vld [vmem:[#allocation2 + $0x20] sm:$0xff]  ;;  %v3037_v38 = vcombine.high %v3027_v26, %v3027_v26 }
  0x2e   :  { %v2722_v34 = vpack.c.bf16 %v67_v32, %v63_v31  ;;  %v85_v39 = vrot.slane %v3031_v28, 5  ;;  %v2730_v40 = vpack.c.bf16 %v69_v35, %v65_v33  ;;  %v64_v41 = vld [vmem:[#allocation2 + $0x10] sm:$0xff]  ;;  %v90_v43 = vrot.slane %v88_v30, 4  ;;  %v3050_v48 = vld [vmem:[%s3890_s0 + $0x18] sm:$0xff]  ;;  %v3059_v50 = vld [vmem:[%s3890_s0 + $0x20] sm:$0xff] }
  0x2f   :  { %2713 = vmatpush1.bf16.msra.mxu0 %v2712_v23  ;;  %v3043_v42 = vld [vmem:[%s3890_s0 + $0x10] sm:$0xff]  ;;  %2721 = vmatpush1.bf16.msra.mxu1 %v2720_v27  ;;  %v2724_v44 = vpack.c.bf16 %v66_v37, %v62_v36  ;;  %v91_v46 = vrot.slane %v3037_v38, 5  ;;  %v100_v53 = vrot.slane %v3050_v48, 5  ;;  %v3066_v54 = vcombine.high %v3059_v50, %v3059_v50  ;;  %v71_v59 = vld [vmem:[#allocation2 + $0x48] sm:$0xff]  ;;  %v73_v3 = vld [vmem:[#allocation2 + $0x58] sm:$0xff] }
  0x30   :  { %2723 = vmatprep.subr.bf16.mxu0 %v2722_v34  ;;  %v68_v45 = vld [vmem:[#allocation2 + $0x30] sm:$0xff]  ;;  %v94_v47 = vrot.slane %v3043_v42, 5  ;;  %v3054_v49 = vcombine.high %v3043_v42, %v3043_v42  ;;  %v86_v51 = vsel %vm3015_vm2, %v2601_v29, %v85_v39  ;;  %v87_v52 = vrot.slane %v85_v39, 4  ;;  %2731 = vmatprep.subr.bf16.mxu1 %v2730_v40  ;;  %v75_v60 = vld [vmem:[#allocation2 + $0x68] sm:$0xff]  ;;  %v77_v4 = vld [vmem:[#allocation2 + $0x78] sm:$0xff] }
  0x31   :  { %v92_v55 = vsel %vm3015_vm2, %v90_v43, %v91_v46  ;;  %v93_v56 = vrot.slane %v91_v46, 4  ;;  %v2732_v62 = vpack.c.bf16 %v68_v45, %v64_v41  ;;  %v3075_v63 = vcombine.high %v3050_v48, %v3050_v48  ;;  %v3080_v5 = vld [vmem:[%s3890_s0 + $0x28] sm:$0xff]  ;;  %v70_v10 = vld [vmem:[#allocation2 + $0x40] sm:$0xff]  ;;  %v72_v16 = vld [vmem:[#allocation2 + $0x50] sm:$0xff] }
  0x32   :  { %v96_v57 = vrot.slane %v94_v47, 4  ;;  %v97_v58 = vrot.slane %v3054_v49, 5  ;;  %v89_v61 = vsel %vm3015_vm2, %v87_v52, %v88_v30  ;;  %v102_v2 = vrot.slane %v100_v53, 4  ;;  %v74_v15 = vld [vmem:[#allocation2 + $0x60] sm:$0xff]  ;;  %v76_v17 = vld [vmem:[#allocation2 + $0x70] sm:$0xff]  ;;  %v664_v22 = vld [vmem:[#allocation2 + $0x108] sm:$0xff] }
  0x33   :  { %v144_v6 = vcombine.low %v86_v51, %v89_v61  ;;  %v95_v7 = vsel %vm3015_vm2, %v93_v56, %v94_v47  ;;  %v2602_v9 = vrot.slane %v3059_v50, 9  ;;  %v103_v13 = vrot.slane %v3075_v63, 5  ;;  %v668_v23 = vld [vmem:[#allocation2 + $0x128] sm:$0xff]  ;;  %v3103_v30 = vld [vmem:[%s3890_s0 + $0x30] sm:$0xff]  ;;  %v666_v31 = vld [vmem:[#allocation2 + $0x118] sm:$0xff] }
  0x34   :  { %v99_v8 = vrot.slane %v97_v58, 4  ;;  %v145_v11 = vcombine.low %v92_v55, %v95_v7  ;;  %v98_v12 = vsel %vm3015_vm2, %v96_v57, %v97_v58  ;;  %v2726_v14 = vpack.c.bf16 %v75_v60, %v71_v59  ;;  %v670_v32 = vld [vmem:[#allocation2 + $0x138] sm:$0xff]  ;;  %vm3158_vm6 = vmor %vm942_vm4, %vm943_vm5  ;;  %v665_v1 = vld [vmem:[#allocation2 + $0x110] sm:$0xff] }
  0x35   :  { %2603 = vmatmul.mubr.msk.f32.vlgmr.msra.gmra.mrb[0].mxu0 %vm151_vm3, %v144_v6  ;;  %2610 = vmatmul.mubr.msk.f32.vlgmr.msra.gmra.mrb[0].mxu1 %vm151_vm3, %v144_v6  ;;  %v107_v19 = vrot.slane %v3066_v54, 5  ;;  %v2734_v20 = vpack.c.bf16 %v77_v4, %v73_v3  ;;  %v110_v21 = vrot.slane %v3080_v5, 5  ;;  %v2728_v24 = vpack.c.bf16 %v74_v15, %v70_v10  ;;  %v667_v10 = vld [vmem:[#allocation2 + $0x120] sm:$0xff]  ;;  %v674_v15 = vld [vmem:[#allocation2 + $0x158] sm:$0xff]  ;;  %vm3291_vm9 = vmor %vm615_vm7, %vm616_vm8 }
  0x36   :  { %v101_v18 = vsel %vm3015_vm2, %v99_v8, %v100_v53  ;;  %2725 = vmatpush1.bf16.msra.mxu0 %v2724_v44  ;;  %2733 = vmatpush1.bf16.msra.mxu1 %v2732_v62  ;;  %v2736_v27 = vpack.c.bf16 %v76_v17, %v72_v16  ;;  %v3098_v29 = vcombine.high %v3080_v5, %v3080_v5  ;;  %v116_v43 = vrot.slane %v3103_v30, 5  ;;  %v3122_v44 = vld [vmem:[%s3890_s0 + $0x38] sm:$0xff]  ;;  %v3165_v17 = vld [vmem:[#allocation2 + $0x140] sm:$0xff] }
  0x37   :  { %236 = vmatprep.mubr.f32.mxu0 %v2966_v0  ;;  %343 = vmatprep.mubr.f32.mxu1 %v2966_v0  ;;  %v146_v33 = vcombine.low %v98_v12, %v101_v18  ;;  %v104_v34 = vsel %vm3015_vm2, %v102_v2, %v103_v13  ;;  %v108_v35 = vsel %vm3015_vm2, %v2602_v9, %v107_v19  ;;  %v109_v36 = vrot.slane %v107_v19, 4  ;;  %v663_v9 = vld [vmem:[#allocation2 + $0x100] sm:$0xff]  ;;  %v672_v12 = vld [vmem:[#allocation2 + $0x148] sm:$0xff]  ;;  %v678_v16 = vld [vmem:[#allocation2 + $0x178] sm:$0xff] }
  0x38   :  { %2727 = vmatprep.subr.bf16.mxu0 %v2726_v14  ;;  %2735 = vmatprep.subr.bf16.mxu1 %v2734_v20  ;;  %v112_v37 = vrot.slane %v110_v21, 4  ;;  %v2738_v39 = vpack.c.bf16 %v668_v23, %v664_v22  ;;  %v113_v40 = vrot.slane %v3098_v29, 5  ;;  %v3116_v41 = vcombine.high %v3103_v30, %v3103_v30  ;;  %v676_v13 = vld [vmem:[#allocation2 + $0x168] sm:$0xff]  ;;  %v675_v20 = vld [vmem:[#allocation2 + $0x160] sm:$0xff]  ;;  %v677_v22 = vld [vmem:[#allocation2 + $0x170] sm:$0xff] }
  0x39   :  { %2604 = vmatmul.mubr.msk.f32.gmra.mrb[2].mxu0 %vm151_vm3, %v145_v11  ;;  %2611 = vmatmul.mubr.msk.f32.gmra.mrb[2].mxu1 %vm151_vm3, %v145_v11  ;;  %v2746_v45 = vpack.c.bf16 %v670_v32, %v666_v31  ;;  %v147_v46 = vcombine.low %v104_v34, %v108_v35  ;;  %v111_v47 = vsel %vm3015_vm2, %v109_v36, %v110_v21  ;;  %v122_v52 = vrot.slane %v3122_v44, 5  ;;  %v669_v11 = vld [vmem:[#allocation2 + $0x130] sm:$0xff] }
  0x3a   :  { %242 = vmatprep.mubr.f32.mxu0 %v2966_v0  ;;  %349 = vmatprep.mubr.f32.mxu1 %v2966_v0  ;;  %v3130_v51 = vcombine.high %v3122_v44, %v3122_v44  ;;  %v114_v53 = vsel %vm3015_vm2, %v112_v37, %v113_v40  ;;  %v115_v55 = vrot.slane %v113_v40, 4  ;;  %v118_v56 = vrot.slane %v116_v43, 4  ;;  %v673_v21 = vld [vmem:[#allocation2 + $0x150] sm:$0xff]  ;;  %v991_v40 = vld [vmem:[#allocation2 + $0x188] sm:$0xff] }
  0x3b   :  { %2729 = vmatpush1.bf16.msra.mxu0 %v2728_v24  ;;  %2737 = vmatpush1.bf16.msra.mxu1 %v2736_v27  ;;  %v119_v57 = vrot.slane %v3116_v41, 5  ;;  %v148_v58 = vcombine.low %v111_v47, %v114_v53  ;;  %v124_v2 = vrot.slane %v122_v52, 4  ;;  %v2647_v14 = vrot.slane %v3022_v25, 11  ;;  %v997_v47 = vld [vmem:[#allocation2 + $0x1b8] sm:$0xff] }
  0x3c   :  { %2739 = vmatprep.subr.bf16.mxu0 %v2738_v39  ;;  %2747 = vmatprep.subr.bf16.mxu1 %v2746_v45  ;;  %v125_v59 = vrot.slane %v3130_v51, 5  ;;  %v117_v60 = vsel %vm3015_vm2, %v115_v55, %v116_v43  ;;  %v947_v18 = vrot.slane %v3031_v28, 7  ;;  %v380_v19 = vcombine.low %v3022_v25, %v3031_v28  ;;  %v995_v45 = vld [vmem:[#allocation2 + $0x1a8] sm:$0xff] }
  0x3d   :  { %2605 = vmatmul.mubr.msk.f32.gmra.mrb[4].mxu0 %vm151_vm3, %v146_v33  ;;  %2612 = vmatmul.mubr.msk.f32.gmra.mrb[4].mxu1 %vm151_vm3, %v146_v33  ;;  %v120_v61 = vsel %vm3015_vm2, %v118_v56, %v119_v57  ;;  %v121_v62 = vrot.slane %v119_v57, 4  ;;  %v950_v23 = vrot.slane %v3027_v26, 7  ;;  %v2740_v24 = vpack.c.bf16 %v667_v10, %v663_v9 }
  0x3e   :  { %248 = vmatprep.mubr.f32.mxu0 %v2966_v0  ;;  %355 = vmatprep.mubr.f32.mxu1 %v2966_v0  ;;  %v149_v3 = vcombine.low %v117_v60, %v120_v61  ;;  %v126_v6 = vsel %vm3015_vm2, %v124_v2, %v125_v59  ;;  %v2748_v27 = vpack.c.bf16 %v669_v11, %v665_v1  ;;  %v949_v31 = vrot.slane %v947_v18, 4 }
  0x3f   :  { %v123_v4 = vsel %vm3015_vm2, %v121_v62, %v122_v52  ;;  %v381_v32 = vcombine.low %v3027_v26, %v3037_v38  ;;  %v382_v33 = vcombine.low %v3043_v42, %v3054_v49  ;;  %v2742_v34 = vpack.c.bf16 %v676_v13, %v672_v12 }
  0x40   :  { %v150_v7 = vcombine.low %v123_v4, %v126_v6  ;;  %v948_v35 = vsel %vm3158_vm6, %v2647_v14, %v947_v18  ;;  %v2750_v36 = vpack.c.bf16 %v678_v16, %v674_v15  ;;  %v2744_v37 = vpack.c.bf16 %v675_v20, %v3165_v17 }
  0x41   :  { %2606 = vmatmul.mubr.msk.f32.gmra.mrb[6].mxu0 %vm151_vm3, %v147_v46  ;;  %2613 = vmatmul.mubr.msk.f32.gmra.mrb[6].mxu1 %vm151_vm3, %v147_v46  ;;  %v2752_v39 = vpack.c.bf16 %v677_v22, %v673_v21  ;;  %v951_v43 = vsel %vm3158_vm6, %v949_v31, %v950_v23  ;;  %v993_v46 = vld [vmem:[#allocation2 + $0x198] sm:$0xff]  ;;  %v952_v53 = vrot.slane %v950_v23, 4  ;;  %v953_v55 = vrot.slane %v3037_v38, 7 }
  0x42   :  { %254 = vmatprep.mubr.f32.mxu0 %v2966_v0  ;;  %361 = vmatprep.mubr.f32.mxu1 %v2966_v0  ;;  %v3186_v52 = vcombine.low %v948_v35, %v951_v43  ;;  %v956_v56 = vrot.slane %v3043_v42, 7  ;;  %v959_v57 = vrot.slane %v3054_v49, 7  ;;  %v965_v59 = vrot.slane %v3075_v63, 7 }
  0x43   :  { %v2648_v60 = vrot.slane %v3059_v50, 11  ;;  %v954_v61 = vsel %vm3158_vm6, %v952_v53, %v953_v55  ;;  %v955_v62 = vrot.slane %v953_v55, 4  ;;  %v2754_v4 = vpack.c.bf16 %v995_v45, %v991_v40 }
  0x44   :  { %v958_v2 = vrot.slane %v956_v56, 4  ;;  %v2762_v6 = vpack.c.bf16 %v997_v47, %v993_v46  ;;  %v972_v16 = vrot.slane %v3080_v5, 7  ;;  %v383_v17 = vcombine.low %v3050_v48, %v3059_v50 }
  0x45   :  { %2607 = vmatmul.mubr.msk.f32.gmra.mrb[8].mxu0 %vm151_vm3, %v148_v58  ;;  %2614 = vmatmul.mubr.msk.f32.gmra.mrb[8].mxu1 %vm151_vm3, %v148_v58  ;;  %v962_v58 = vrot.slane %v3050_v48, 7  ;;  %v957_v10 = vsel %vm3158_vm6, %v955_v62, %v956_v56  ;;  %v975_v20 = vrot.slane %v3098_v29, 7  ;;  %v384_v21 = vcombine.low %v3066_v54, %v3080_v5 }
  0x46   :  { %260 = vmatprep.mubr.f32.mxu0 %v2966_v0  ;;  %367 = vmatprep.mubr.f32.mxu1 %v2966_v0  ;;  %v960_v1 = vsel %vm3158_vm6, %v958_v2, %v959_v57  ;;  %v3209_v13 = vcombine.low %v954_v61, %v957_v10  ;;  %v974_v23 = vrot.slane %v972_v16, 4  ;;  %v981_v31 = vrot.slane %v3116_v41, 7  ;;  %v1283_v2 = vld [vmem:[#allocation2 + $0x268] sm:$0xff] }
  0x47   :  { %v964_v9 = vrot.slane %v962_v58, 4  ;;  %v3253_v47 = vcombine.low %v3054_v49, %v3050_v48  ;;  %v3257_v53 = vcombine.high %v3050_v48, %v3059_v50  ;;  %v3261_v55 = vcombine.low %v3080_v5, %v3098_v29 }
  0x48   :  { %v976_v35 = vsel %vm3158_vm6, %v974_v23, %v975_v20  ;;  %v983_v43 = vrot.slane %v981_v31, 4  ;;  %v3278_v61 = vcombine.low %v3103_v30, %v3116_v41  ;;  %v3282_v62 = vcombine.low %v3122_v44, %v3130_v51  ;;  %v1003_v23 = vld [vmem:[#allocation2 + $0x1e8] sm:$0xff] }
  0x49   :  { %2608 = vmatmul.mubr.msk.f32.gmra.mrb[10].mxu0 %vm151_vm3, %v149_v3  ;;  %2615 = vmatmul.mubr.msk.f32.gmra.mrb[10].mxu1 %vm151_vm3, %v149_v3  ;;  %v969_v3 = vrot.slane %v3066_v54, 7  ;;  %v966_v15 = vsel %vm3158_vm6, %v964_v9, %v965_v59  ;;  %v620_v59 = vrot.slane %v3031_v28, 6  ;;  %v385_v8 = vcombine.low %v3098_v29, %v3103_v30  ;;  %v990_v9 = vld [vmem:[#allocation2 + $0x180] sm:$0xff] }
  0x4a   :  { %266 = vmatprep.mubr.f32.mxu0 %v2966_v0  ;;  %373 = vmatprep.mubr.f32.mxu1 %v2966_v0 }
  0x4b   :  { %v970_v11 = vsel %vm3158_vm6, %v2648_v60, %v969_v3  ;;  %v971_v12 = vrot.slane %v969_v3, 4  ;;  %v622_v3 = vrot.slane %v620_v59, 4 }
  0x4d   :  { %2609 = vmatmul.mubr.msk.f32.gmra.mrb[12].mxu0 %vm151_vm3, %v150_v7  ;;  %2616 = vmatmul.mubr.msk.f32.gmra.mrb[12].mxu1 %vm151_vm3, %v150_v7  ;;  %v961_v7 = vrot.slane %v959_v57, 4  ;;  %v973_v22 = vsel %vm3158_vm6, %v971_v12, %v972_v16  ;;  %v999_v16 = vld [vmem:[#allocation2 + $0x1c8] sm:$0xff] }
  0x4e   :  { %465 = vmatprep.mubr.f32.mxu0 %v2966_v0  ;;  %572 = vmatprep.mubr.f32.mxu1 %v2966_v0 }
  0x4f   :  { %v963_v14 = vsel %vm3158_vm6, %v961_v7, %v962_v58 }
  0x50   :  { %v3218_v18 = vcombine.low %v960_v1, %v963_v14  ;;  %v992_v1 = vld [vmem:[#allocation2 + $0x190] sm:$0xff]  ;;  %v629_v14 = vrot.slane %v3043_v42, 6 }
  0x51   :  { %2617 = vmatmul.mubr.msk.f32.vlgmr.msra.gmra.mrb[0].mxu0 %vm151_vm3, %v380_v19  ;;  %2624 = vmatmul.mubr.msk.f32.vlgmr.msra.gmra.mrb[0].mxu1 %vm151_vm3, %v380_v19  ;;  %v3220_v19 = vcombine.low %v966_v15, %v970_v11  ;;  %v996_v11 = vld [vmem:[#allocation2 + $0x1b0] sm:$0xff]  ;;  %v632_v15 = vrot.slane %v3054_v49, 6 }
  0x52   :  { %2741 = vmatpush1.bf16.msra.mxu0 %v2740_v24  ;;  %2749 = vmatpush1.bf16.msra.mxu1 %v2748_v27  ;;  %v978_v24 = vrot.slane %v3103_v30, 7  ;;  %v977_v27 = vrot.slane %v975_v20, 4 }
  0x53   :  { %471 = vmatprep.mubr.f32.mxu0 %v2966_v0  ;;  %578 = vmatprep.mubr.f32.mxu1 %v2966_v0 }
  0x54   :  { %2743 = vmatprep.subr.bf16.mxu0 %v2742_v34  ;;  %2751 = vmatprep.subr.bf16.mxu1 %v2750_v36  ;;  %v987_v34 = vrot.slane %v3130_v51, 7  ;;  %v980_v36 = vrot.slane %v978_v24, 4  ;;  %v979_v40 = vsel %vm3158_vm6, %v977_v27, %v978_v24  ;;  %v1001_v24 = vld [vmem:[#allocation2 + $0x1d8] sm:$0xff] }
  0x55   :  { %2618 = vmatmul.mubr.msk.f32.gmra.mrb[2].mxu0 %vm151_vm3, %v381_v32  ;;  %2625 = vmatmul.mubr.msk.f32.gmra.mrb[2].mxu1 %vm151_vm3, %v381_v32  ;;  %v984_v32 = vrot.slane %v3122_v44, 7  ;;  %v1005_v27 = vld [vmem:[#allocation2 + $0x1f8] sm:$0xff] }
  0x56   :  { %477 = vmatprep.mubr.f32.mxu0 %v2966_v0  ;;  %584 = vmatprep.mubr.f32.mxu1 %v2966_v0  ;;  %v982_v46 = vsel %vm3158_vm6, %v980_v36, %v981_v31  ;;  %v631_v31 = vrot.slane %v629_v14, 4  ;;  %v638_v36 = vrot.slane %v3075_v63, 6 }
  0x57   :  { %2745 = vmatpush1.bf16.msra.mxu0 %v2744_v37  ;;  %2753 = vmatpush1.bf16.msra.mxu1 %v2752_v39  ;;  %v3239_v37 = vcombine.low %v3031_v28, %v3027_v26  ;;  %v3245_v39 = vcombine.low %v973_v22, %v976_v35  ;;  %v986_v45 = vrot.slane %v984_v32, 4  ;;  %v3265_v56 = vcombine.low %v979_v40, %v982_v46  ;;  %v1002_v35 = vld [vmem:[#allocation2 + $0x1e0] sm:$0xff]  ;;  %v1271_v46 = vld [vmem:[#allocation2 + $0x208] sm:$0xff] }
  0x58   :  { %2755 = vmatprep.subr.bf16.mxu0 %v2754_v4  ;;  %2763 = vmatprep.subr.bf16.mxu1 %v2762_v6  ;;  %v985_v57 = vsel %vm3158_vm6, %v983_v43, %v984_v32  ;;  %v2631_v28 = vrot.slane %v3022_v25, 10  ;;  %v623_v4 = vrot.slane %v3027_v26, 6  ;;  %v626_v6 = vrot.slane %v3037_v38, 6  ;;  %v1000_v43 = vld [vmem:[#allocation2 + $0x1d0] sm:$0xff] }
  0x59   :  { %2619 = vmatmul.mubr.msk.f32.gmra.mrb[4].mxu0 %vm151_vm3, %v382_v33  ;;  %2626 = vmatmul.mubr.msk.f32.gmra.mrb[4].mxu1 %vm151_vm3, %v382_v33  ;;  %v3243_v33 = vcombine.low %v3037_v38, %v3043_v42  ;;  %v988_v58 = vsel %vm3158_vm6, %v986_v45, %v987_v34  ;;  %v386_v25 = vcombine.low %v3116_v41, %v3122_v44  ;;  %v994_v38 = vld [vmem:[#allocation2 + $0x1a0] sm:$0xff]  ;;  %v635_v22 = vrot.slane %v3050_v48, 6  ;;  %v1004_v45 = vld [vmem:[#allocation2 + $0x1f0] sm:$0xff] }
  0x5a   :  { %483 = vmatprep.mubr.f32.mxu0 %v2966_v0  ;;  %590 = vmatprep.mubr.f32.mxu1 %v2966_v0  ;;  %v3274_v60 = vcombine.low %v985_v57, %v988_v58  ;;  %v621_v7 = vsel %vm3291_vm9, %v2631_v28, %v620_v59  ;;  %v625_v10 = vrot.slane %v623_v4, 4  ;;  %v624_v26 = vsel %vm3291_vm9, %v622_v3, %v623_v4  ;;  %v998_v34 = vld [vmem:[#allocation2 + $0x1c0] sm:$0xff]  ;;  %v1275_v28 = vld [vmem:[#allocation2 + $0x228] sm:$0xff]  ;;  %v1273_v3 = vld [vmem:[#allocation2 + $0x218] sm:$0xff] }
  0x5b   :  { %v628_v12 = vrot.slane %v626_v6, 4  ;;  %v2756_v20 = vpack.c.bf16 %v994_v38, %v990_v9  ;;  %v634_v32 = vrot.slane %v632_v15, 4  ;;  %v2758_v48 = vpack.c.bf16 %v1003_v23, %v999_v16  ;;  %v1277_v4 = vld [vmem:[#allocation2 + $0x238] sm:$0xff] }
  0x5c   :  { %v627_v42 = vsel %vm3291_vm9, %v625_v10, %v626_v6  ;;  %v2766_v40 = vpack.c.bf16 %v1005_v27, %v1001_v24  ;;  %v637_v58 = vrot.slane %v635_v22, 4  ;;  %v2632_v59 = vrot.slane %v3059_v50, 10 }
  0x5d   :  { %2620 = vmatmul.mubr.msk.f32.gmra.mrb[6].mxu0 %vm151_vm3, %v383_v17  ;;  %2627 = vmatmul.mubr.msk.f32.gmra.mrb[6].mxu1 %vm151_vm3, %v383_v17  ;;  %v679_v17 = vcombine.low %v621_v7, %v624_v26  ;;  %v630_v49 = vsel %vm3291_vm9, %v628_v12, %v629_v14  ;;  %v633_v63 = vsel %vm3291_vm9, %v631_v31, %v632_v15  ;;  %v651_v12 = vrot.slane %v3103_v30, 6  ;;  %v1270_v31 = vld [vmem:[#allocation2 + $0x200] sm:$0xff] }
  0x5e   :  { %489 = vmatprep.mubr.f32.mxu0 %v2966_v0  ;;  %596 = vmatprep.mubr.f32.mxu1 %v2966_v0  ;;  %v680_v57 = vcombine.low %v627_v42, %v630_v49  ;;  %v636_v6 = vsel %vm3291_vm9, %v634_v32, %v635_v22  ;;  %v2760_v50 = vpack.c.bf16 %v1002_v35, %v998_v34  ;;  %v654_v15 = vrot.slane %v3116_v41, 6  ;;  %v1274_v32 = vld [vmem:[#allocation2 + $0x220] sm:$0xff]  ;;  %v1272_v34 = vld [vmem:[#allocation2 + $0x210] sm:$0xff] }
  0x5f   :  { %v2768_v7 = vpack.c.bf16 %v1004_v45, %v1000_v43  ;;  %v2778_v9 = vpack.c.bf16 %v1277_v4, %v1273_v3  ;;  %v681_v10 = vcombine.low %v633_v63, %v636_v6  ;;  %v639_v26 = vsel %vm3291_vm9, %v637_v58, %v638_v36  ;;  %v1276_v35 = vld [vmem:[#allocation2 + $0x230] sm:$0xff]  ;;  %v1279_v36 = vld [vmem:[#allocation2 + $0x248] sm:$0xff] }
  0x60   :  { %v657_v16 = vrot.slane %v3122_v44, 6  ;;  %v660_v41 = vrot.slane %v3130_v51, 6  ;;  %v656_v23 = vrot.slane %v654_v15, 4  ;;  %v2772_v43 = vpack.c.bf16 %v1274_v32, %v1270_v31 }
  0x61   :  { %2621 = vmatmul.mubr.msk.f32.gmra.mrb[8].mxu0 %vm151_vm3, %v384_v21  ;;  %2628 = vmatmul.mubr.msk.f32.gmra.mrb[8].mxu1 %vm151_vm3, %v384_v21  ;;  %v2764_v21 = vpack.c.bf16 %v996_v11, %v992_v1  ;;  %v648_v11 = vrot.slane %v3098_v29, 6  ;;  %v2780_v45 = vpack.c.bf16 %v1276_v35, %v1272_v34 }
  0x62   :  { %495 = vmatprep.mubr.f32.mxu0 %v2966_v0  ;;  %602 = vmatprep.mubr.f32.mxu1 %v2966_v0  ;;  %v659_v24 = vrot.slane %v657_v16, 4  ;;  %v658_v51 = vsel %vm3291_vm9, %v656_v23, %v657_v16 }
  0x64   :  { %v661_v42 = vsel %vm3291_vm9, %v659_v24, %v660_v41 }
  0x65   :  { %2622 = vmatmul.mubr.msk.f32.gmra.mrb[10].mxu0 %vm151_vm3, %v385_v8  ;;  %2629 = vmatmul.mubr.msk.f32.gmra.mrb[10].mxu1 %vm151_vm3, %v385_v8  ;;  %v642_v8 = vrot.slane %v3066_v54, 6  ;;  %v2770_v54 = vpack.c.bf16 %v1275_v28, %v1271_v46  ;;  %v685_v49 = vcombine.low %v658_v51, %v661_v42  ;;  %v1278_v46 = vld [vmem:[#allocation2 + $0x240] sm:$0xff]  ;;  %v1284_v28 = vld [vmem:[#allocation2 + $0x270] sm:$0xff] }
  0x66   :  { %501 = vmatprep.mubr.f32.mxu0 %v2966_v0  ;;  %608 = vmatprep.mubr.f32.mxu1 %v2966_v0 }
  0x67   :  { %v644_v38 = vrot.slane %v642_v8, 4 }
  0x69   :  { %2623 = vmatmul.mubr.msk.f32.gmra.mrb[12].mxu0 %vm151_vm3, %v386_v25  ;;  %2630 = vmatmul.mubr.msk.f32.gmra.mrb[12].mxu1 %vm151_vm3, %v386_v25  ;;  %v645_v25 = vrot.slane %v3080_v5, 6  ;;  %v643_v5 = vsel %vm3291_vm9, %v2632_v59, %v642_v8  ;;  %v1282_v59 = vld [vmem:[#allocation2 + $0x260] sm:$0xff]  ;;  %v1280_v8 = vld [vmem:[#allocation2 + $0x250] sm:$0xff] }
  0x6a   :  { %764 = vmatprep.mubr.f32.mxu0 %v2966_v0  ;;  %871 = vmatprep.mubr.f32.mxu1 %v2966_v0  ;;  %v682_v14 = vcombine.low %v639_v26, %v643_v5  ;;  %v2776_v3 = vpack.c.bf16 %v1282_v59, %v1278_v46  ;;  %v2784_v4 = vpack.c.bf16 %v1284_v28, %v1280_v8 }
  0x6b   :  { %v647_v1 = vrot.slane %v645_v25, 4  ;;  %v646_v29 = vsel %vm3291_vm9, %v644_v38, %v645_v25 }
  0x6d   :  { %2633 = vmatmul.mubr.msk.f32.vlgmr.msra.gmra.mrb[0].mxu0 %vm151_vm3, %v679_v17  ;;  %2640 = vmatmul.mubr.msk.f32.vlgmr.msra.gmra.mrb[0].mxu1 %vm151_vm3, %v679_v17  ;;  %v649_v30 = vsel %vm3291_vm9, %v647_v1, %v648_v11  ;;  %v650_v17 = vrot.slane %v648_v11, 4 }
  0x6e   :  { %2757 = vmatpush1.bf16.msra.mxu0 %v2756_v20  ;;  %2765 = vmatpush1.bf16.msra.mxu1 %v2764_v21  ;;  %v653_v20 = vrot.slane %v651_v12, 4  ;;  %v683_v21 = vcombine.low %v646_v29, %v649_v30 }
  0x6f   :  { %770 = vmatprep.mubr.f32.mxu0 %v2966_v0  ;;  %877 = vmatprep.mubr.f32.mxu1 %v2966_v0  ;;  %v652_v44 = vsel %vm3291_vm9, %v650_v17, %v651_v12 }
  0x70   :  { %2759 = vmatprep.subr.bf16.mxu0 %v2758_v48  ;;  %2767 = vmatprep.subr.bf16.mxu1 %v2766_v40  ;;  %v655_v22 = vsel %vm3291_vm9, %v653_v20, %v654_v15  ;;  %v1281_v48 = vld [vmem:[#allocation2 + $0x258] sm:$0xff] }
  0x71   :  { %2634 = vmatmul.mubr.msk.f32.gmra.mrb[2].mxu0 %vm151_vm3, %v680_v57  ;;  %2641 = vmatmul.mubr.msk.f32.gmra.mrb[2].mxu1 %vm151_vm3, %v680_v57  ;;  %v684_v27 = vcombine.low %v652_v44, %v655_v22  ;;  %v1285_v40 = vld [vmem:[#allocation2 + $0x278] sm:$0xff]  ;;  %v2774_v57 = vpack.c.bf16 %v1283_v2, %v1279_v36 }
  0x72   :  { %776 = vmatprep.mubr.f32.mxu0 %v2966_v0  ;;  %883 = vmatprep.mubr.f32.mxu1 %v2966_v0  ;;  %v2782_v58 = vpack.c.bf16 %v1285_v40, %v1281_v48 }
  0x73   :  { %2761 = vmatpush1.bf16.msra.mxu0 %v2760_v50  ;;  %2769 = vmatpush1.bf16.msra.mxu1 %v2768_v7 }
  0x74   :  { %2771 = vmatprep.subr.bf16.mxu0 %v2770_v54  ;;  %2779 = vmatprep.subr.bf16.mxu1 %v2778_v9 }
  0x75   :  { %2635 = vmatmul.mubr.msk.f32.gmra.mrb[4].mxu0 %vm151_vm3, %v681_v10  ;;  %2642 = vmatmul.mubr.msk.f32.gmra.mrb[4].mxu1 %vm151_vm3, %v681_v10 }
  0x76   :  { %782 = vmatprep.mubr.f32.mxu0 %v2966_v0  ;;  %889 = vmatprep.mubr.f32.mxu1 %v2966_v0 }
  0x79   :  { %2636 = vmatmul.mubr.msk.f32.gmra.mrb[6].mxu0 %vm151_vm3, %v682_v14  ;;  %2643 = vmatmul.mubr.msk.f32.gmra.mrb[6].mxu1 %vm151_vm3, %v682_v14 }
  0x7a   :  { %788 = vmatprep.mubr.f32.mxu0 %v2966_v0  ;;  %895 = vmatprep.mubr.f32.mxu1 %v2966_v0 }
  0x7d   :  { %2637 = vmatmul.mubr.msk.f32.gmra.mrb[8].mxu0 %vm151_vm3, %v683_v21  ;;  %2644 = vmatmul.mubr.msk.f32.gmra.mrb[8].mxu1 %vm151_vm3, %v683_v21 }
  0x7e   :  { %794 = vmatprep.mubr.f32.mxu0 %v2966_v0  ;;  %901 = vmatprep.mubr.f32.mxu1 %v2966_v0 }
  0x81   :  { %2638 = vmatmul.mubr.msk.f32.gmra.mrb[10].mxu0 %vm151_vm3, %v684_v27  ;;  %2645 = vmatmul.mubr.msk.f32.gmra.mrb[10].mxu1 %vm151_vm3, %v684_v27 }
  0x82   :  { %800 = vmatprep.mubr.f32.mxu0 %v2966_v0  ;;  %907 = vmatprep.mubr.f32.mxu1 %v2966_v0 }
  0x85   :  { %2639 = vmatmul.mubr.msk.f32.gmra.mrb[12].mxu0 %vm151_vm3, %v685_v49  ;;  %2646 = vmatmul.mubr.msk.f32.gmra.mrb[12].mxu1 %vm151_vm3, %v685_v49 }
  0x86   :  { %1091 = vmatprep.mubr.f32.mxu0 %v2966_v0  ;;  %1198 = vmatprep.mubr.f32.mxu1 %v2966_v0 }
  0x89   :  { %2649 = vmatmul.mubr.msk.f32.vlgmr.msra.gmra.mrb[0].mxu0 %vm151_vm3, %v3186_v52  ;;  %2656 = vmatmul.mubr.msk.f32.vlgmr.msra.gmra.mrb[0].mxu1 %vm151_vm3, %v3186_v52  ;;  %v1551_v52 = vlaneseq }
  0x8a   :  { %2773 = vmatpush1.bf16.msra.mxu0 %v2772_v43  ;;  %2781 = vmatpush1.bf16.msra.mxu1 %v2780_v45 }
  0x8b   :  { %1097 = vmatprep.mubr.f32.mxu0 %v2966_v0  ;;  %1204 = vmatprep.mubr.f32.mxu1 %v2966_v0 }
  0x8c   :  { %2775 = vmatprep.subr.bf16.mxu0 %v2774_v57  ;;  %2783 = vmatprep.subr.bf16.mxu1 %v2782_v58 }
  0x8d   :  { %2650 = vmatmul.mubr.msk.f32.gmra.mrb[2].mxu0 %vm151_vm3, %v3209_v13  ;;  %2657 = vmatmul.mubr.msk.f32.gmra.mrb[2].mxu1 %vm151_vm3, %v3209_v13  ;;  %v1552_v13 = vshrl.u32 %v1551_v52, 7 }
  0x8e   :  { %1103 = vmatprep.mubr.f32.mxu0 %v2966_v0  ;;  %1210 = vmatprep.mubr.f32.mxu1 %v2966_v0 }
  0x8f   :  { %2777 = vmatpush1.bf16.msra.mxu0 %v2776_v3  ;;  %2785 = vmatpush1.bf16.msra.mxu1 %v2784_v4 }
  0x91   :  { %2651 = vmatmul.mubr.msk.f32.gmra.mrb[4].mxu0 %vm151_vm3, %v3218_v18  ;;  %2658 = vmatmul.mubr.msk.f32.gmra.mrb[4].mxu1 %vm151_vm3, %v3218_v18  ;;  %v3457_v18 = vsub.s32 0, %v1552_v13 }
  0x92   :  { %1109 = vmatprep.mubr.f32.mxu0 %v2966_v0  ;;  %1216 = vmatprep.mubr.f32.mxu1 %v2966_v0 }
  0x95   :  { %2652 = vmatmul.mubr.msk.f32.gmra.mrb[6].mxu0 %vm151_vm3, %v3220_v19  ;;  %2659 = vmatmul.mubr.msk.f32.gmra.mrb[6].mxu1 %vm151_vm3, %v3220_v19  ;;  %v3459_v19 = vsub.s32 2, %v1552_v13 }
  0x96   :  { %1115 = vmatprep.mubr.f32.mxu0 %v2966_v0  ;;  %1222 = vmatprep.mubr.f32.mxu1 %v2966_v0 }
  0x99   :  { %2653 = vmatmul.mubr.msk.f32.gmra.mrb[8].mxu0 %vm151_vm3, %v3245_v39  ;;  %2660 = vmatmul.mubr.msk.f32.gmra.mrb[8].mxu1 %vm151_vm3, %v3245_v39  ;;  %v1565_v39 = vsub.s32 3, %v1552_v13 }
  0x9a   :  { %1121 = vmatprep.mubr.f32.mxu0 %v2966_v0  ;;  %1228 = vmatprep.mubr.f32.mxu1 %v2966_v0 }
  0x9d   :  { %2654 = vmatmul.mubr.msk.f32.gmra.mrb[10].mxu0 %vm151_vm3, %v3265_v56  ;;  %2661 = vmatmul.mubr.msk.f32.gmra.mrb[10].mxu1 %vm151_vm3, %v3265_v56 }
  0x9e   :  { %1127 = vmatprep.mubr.f32.mxu0 %v2966_v0  ;;  %1234 = vmatprep.mubr.f32.mxu1 %v2966_v0 }
  0xa1   :  { %2655 = vmatmul.mubr.msk.f32.gmra.mrb[12].mxu0 %vm151_vm3, %v3274_v60  ;;  %2662 = vmatmul.mubr.msk.f32.gmra.mrb[12].mxu1 %vm151_vm3, %v3274_v60 }
  0xa2   :  { %1371 = vmatprep.mubr.f32.mxu0 %v2966_v0  ;;  %1478 = vmatprep.mubr.f32.mxu1 %v2966_v0 }
  0xa5   :  { %2664 = vmatmul.mubr.msk.f32.vlgmr.msra.gmra.mrb[0].mxu0 %vm151_vm3, %v3239_v37  ;;  %2671 = vmatmul.mubr.msk.f32.vlgmr.msra.gmra.mrb[0].mxu1 %vm151_vm3, %v3239_v37  ;;  %v1549_v37 = vld [vmem:[#allocation4] sm:$0xf] }
  0xa6   :  { %1377 = vmatprep.mubr.f32.mxu0 %v2966_v0  ;;  %1484 = vmatprep.mubr.f32.mxu1 %v2966_v0  ;;  %v3469_v60 = vrot.slane %v1549_v37, %v1565_v39 }
  0xa9   :  { %2665 = vmatmul.mubr.msk.f32.gmra.mrb[2].mxu0 %vm151_vm3, %v3243_v33  ;;  %2672 = vmatmul.mubr.msk.f32.gmra.mrb[2].mxu1 %vm151_vm3, %v3243_v33  ;;  %v1557_v33 = vsub.s32 1, %v1552_v13 }
  0xaa   :  { %1383 = vmatprep.mubr.f32.mxu0 %v2966_v0  ;;  %1490 = vmatprep.mubr.f32.mxu1 %v2966_v0 }
  0xab   :  { %v3467_v56 = vrot.slane %v1549_v37, %v1557_v33 }
  0xad   :  { %2666 = vmatmul.mubr.msk.f32.gmra.mrb[4].mxu0 %vm151_vm3, %v3253_v47  ;;  %2673 = vmatmul.mubr.msk.f32.gmra.mrb[4].mxu1 %vm151_vm3, %v3253_v47  ;;  %v2967_v47 = vmov 1983009808  }
  0xae   :  { %1389 = vmatprep.mubr.f32.mxu0 %v2966_v0  ;;  %1496 = vmatprep.mubr.f32.mxu1 %v2966_v0 }
  0xb1   :  { %2667 = vmatmul.mubr.msk.f32.gmra.mrb[6].mxu0 %vm151_vm3, %v3257_v53  ;;  %2674 = vmatmul.mubr.msk.f32.gmra.mrb[6].mxu1 %vm151_vm3, %v3257_v53  ;;  %v1660_v53 = vunpack.c.l.s4 %v2967_v47 }
  0xb2   :  { %1395 = vmatprep.mubr.f32.mxu0 %v2966_v0  ;;  %1502 = vmatprep.mubr.f32.mxu1 %v2966_v0 }
  0xb3   :  { %v1661_v63 = vunpack.c.0.s8 %v1660_v53 }
  0xb5   :  { %2668 = vmatmul.mubr.msk.f32.gmra.mrb[8].mxu0 %vm151_vm3, %v3261_v55  ;;  %2675 = vmatmul.mubr.msk.f32.gmra.mrb[8].mxu1 %vm151_vm3, %v3261_v55  ;;  %v3462_v55 = vrot.slane %v1549_v37, %v3457_v18  ;;  %v3475_v38 = vsub.s32 %v1661_v63, %v1552_v13 }
  0xb6   :  { %1401 = vmatprep.mubr.f32.mxu0 %v2966_v0  ;;  %1508 = vmatprep.mubr.f32.mxu1 %v2966_v0 }
  0xb9   :  { %2669 = vmatmul.mubr.msk.f32.gmra.mrb[10].mxu0 %vm151_vm3, %v3278_v61  ;;  %2676 = vmatmul.mubr.msk.f32.gmra.mrb[10].mxu1 %vm151_vm3, %v3278_v61 }
  0xba   :  { %1407 = vmatprep.mubr.f32.mxu0 %v2966_v0  ;;  %1514 = vmatprep.mubr.f32.mxu1 %v2966_v0  ;;  %v3465_v0 = vrot.slane %v1549_v37, %v3459_v19 }
  0xbd   :  { %2670 = vmatmul.mubr.msk.f32.gmra.mrb[12].mxu0 %vm151_vm3, %v3282_v62  ;;  %2677 = vmatmul.mubr.msk.f32.gmra.mrb[12].mxu1 %vm151_vm3, %v3282_v62 }
 0x178   :  { %v1373_v61 = vpop.f32.mrb[0].mxu0  ;;  %v1480_v62 = vpop.f32.mrb[0].mxu1 }
 0x179   :  { %v1571_v6 = vadd.f32 %v3462_v55, %v1373_v61  ;;  %v1573_v25 = vadd.f32 %v3465_v0, %v1480_v62  ;;  %v1375_v50 = vpop.f32.mrb[1].mxu0  ;;  %v1482_v7 = vpop.f32.mrb[1].mxu1 }
 0x17a   :  { %v1572_v54 = vadd.f32 %v3467_v56, %v1375_v50  ;;  %v1574_v9 = vadd.f32 %v3469_v60, %v1482_v7 }
 0x17b   :  { %v1599_v10 = vmax.f32 %v1571_v6, 0.0  ;;  %v1601_v26 = vmax.f32 %v1573_v25, 0.0 }
 0x17c   :  { %v1600_v5 = vmax.f32 %v1572_v54, 0.0  ;;  %v1602_v1 = vmax.f32 %v1574_v9, 0.0  ;;  %v1379_v11 = vpop.f32.mrb[2].mxu0  ;;  %v1486_v12 = vpop.f32.mrb[2].mxu1 }
 0x17d   :  { %v1575_v14 = vadd.f32 %v3462_v55, %v1379_v11  ;;  %v1577_v15 = vadd.f32 %v3465_v0, %v1486_v12  ;;  %v1381_v16 = vpop.f32.mrb[3].mxu0  ;;  %v1488_v29 = vpop.f32.mrb[3].mxu1 }
 0x17e   :  { %v1655_v30 = vcombine.low %v1599_v10, %v1600_v5  ;;  %v1656_v17 = vcombine.high %v1599_v10, %v1600_v5  ;;  %v1657_v20 = vcombine.low %v1601_v26, %v1602_v1  ;;  %v1658_v21 = vcombine.high %v1601_v26, %v1602_v1 }
 0x17f   :  { %v1603_v41 = vmax.f32 %v1575_v14, 0.0  ;;  %v1605_v44 = vmax.f32 %v1577_v15, 0.0  ;;  %v1576_v22 = vadd.f32 %v3467_v56, %v1381_v16  ;;  %v1578_v23 = vadd.f32 %v3469_v60, %v1488_v29 }
 0x180   :  { %v1665_v24 = vrot.slane %v1655_v30, %v3475_v38  ;;  %v1679_v27 = vrot.slane %v1657_v20, %v3475_v38  ;;  %v1385_v51 = vpop.f32.mrb[4].mxu0  ;;  %v1492_v42 = vpop.f32.mrb[4].mxu1  ;;  %v3498_v25 = vrot.slane %v1656_v17, %v3475_v38  ;;  %v3501_v50 = vrot.slane %v1658_v21, %v3475_v38 }
 0x181   :  { %v1604_v49 = vmax.f32 %v1576_v22, 0.0  ;;  %v1606_v31 = vmax.f32 %v1578_v23, 0.0  ;;  %v1579_v32 = vadd.f32 %v3462_v55, %v1385_v51  ;;  %v1581_v34 = vadd.f32 %v3465_v0, %v1492_v42  ;;  %v1387_v35 = vpop.f32.mrb[5].mxu0  ;;  %v1494_v36 = vpop.f32.mrb[5].mxu1 }
 0x182   :  { %v1580_v2 = vadd.f32 %v3467_v56, %v1387_v35  ;;  %v1582_v48 = vadd.f32 %v3469_v60, %v1494_v36  ;;  %v1687_v40 = vcombine.low %v1665_v24, %v1679_v27  ;;  %v3487_v43 = vcombine.high %v1665_v24, %v1679_v27 }
 0x183   :  { %v1691_v45 = vcombine.low %v1603_v41, %v1604_v49  ;;  %v3489_v46 = vcombine.high %v1603_v41, %v1604_v49  ;;  %v1693_v57 = vcombine.low %v1605_v44, %v1606_v31  ;;  %v3491_v58 = vcombine.high %v1605_v44, %v1606_v31 }
 0x184   :  { %v1607_v59 = vmax.f32 %v1579_v32, 0.0  ;;  %v1609_v8 = vmax.f32 %v1581_v34, 0.0  ;;  %v1608_v28 = vmax.f32 %v1580_v2, 0.0  ;;  %v1610_v3 = vmax.f32 %v1582_v48, 0.0  ;;  %v1391_v4 = vpop.f32.mrb[6].mxu0  ;;  %v1498_v52 = vpop.f32.mrb[6].mxu1 }
 0x185   :  { %v1393_v13 = vpop.f32.mrb[7].mxu0  ;;  %v1500_v37 = vpop.f32.mrb[7].mxu1  ;;  %v1583_v61 = vadd.f32 %v3462_v55, %v1391_v4  ;;  %v1585_v62 = vadd.f32 %v3465_v0, %v1498_v52  ;;  %v2678_v14 = vrot.slane %v1687_v40, 9  ;;  %v3509_v21 = vrot.slane %v1691_v45, %v3475_v38 }
 0x186   :  { %v1727_v33 = vcombine.low %v1607_v59, %v1608_v28  ;;  %v1728_v39 = vcombine.high %v1607_v59, %v1608_v28  ;;  %v1729_v47 = vcombine.low %v1609_v8, %v1610_v3  ;;  %v1730_v53 = vcombine.high %v1609_v8, %v1610_v3 }
 0x187   :  { %v1584_v63 = vadd.f32 %v3467_v56, %v1393_v13  ;;  %v1586_v6 = vadd.f32 %v3469_v60, %v1500_v37  ;;  %v1611_v9 = vmax.f32 %v1583_v61, 0.0  ;;  %v1613_v10 = vmax.f32 %v1585_v62, 0.0 }
 0x188   :  { %v1504_v7 = vpop.f32.mrb[8].mxu1  ;;  %v1397_v54 = vpop.f32.mrb[8].mxu0  ;;  %v3511_v41 = vmax.f32 %v1687_v40, %v2678_v14  ;;  %v3514_v27 = vrot.slane %v1693_v57, %v3475_v38  ;;  %v3517_v51 = vrot.slane %v1727_v33, %v3475_v38  ;;  %v1744_v42 = vrot.slane %v1728_v39, %v3475_v38 }
 0x189   :  { %v1612_v26 = vmax.f32 %v1584_v63, 0.0  ;;  %v1614_v5 = vmax.f32 %v1586_v6, 0.0  ;;  %v1399_v1 = vpop.f32.mrb[9].mxu0  ;;  %v1506_v11 = vpop.f32.mrb[9].mxu1  ;;  %v1589_v12 = vadd.f32 %v3465_v0, %v1504_v7  ;;  %v1587_v15 = vadd.f32 %v3462_v55, %v1397_v54 }
 0x18a   :  { %v1588_v16 = vadd.f32 %v3467_v56, %v1399_v1  ;;  %2075 = vrot.lane.b32.xlu0 %v3511_v41, %s2964_s23  ;;  %v1590_v36 = vadd.f32 %v3469_v60, %v1506_v11  ;;  %v2679_v48 = vrot.slane %v3487_v43, 9  ;;  %v3529_v59 = vrot.slane %v1729_v47, %v3475_v38 }
 0x18b   :  { %v1763_v29 = vcombine.low %v1611_v9, %v1612_v26  ;;  %v1764_v30 = vcombine.high %v1611_v9, %v1612_v26  ;;  %v3506_v17 = vcombine.low %v1613_v10, %v1614_v5  ;;  %v1766_v20 = vcombine.high %v1613_v10, %v1614_v5 }
 0x18c   :  { %v1615_v44 = vmax.f32 %v1587_v15, 0.0  ;;  %v1616_v22 = vmax.f32 %v1588_v16, 0.0  ;;  %v1510_v23 = vpop.f32.mrb[10].mxu1  ;;  %v1403_v24 = vpop.f32.mrb[10].mxu0  ;;  %v1617_v49 = vmax.f32 %v1589_v12, 0.0  ;;  %v1758_v8 = vrot.slane %v1730_v53, %v3475_v38 }
 0x18d   :  { %v1405_v31 = vpop.f32.mrb[11].mxu0  ;;  %v1512_v32 = vpop.f32.mrb[11].mxu1  ;;  %v1593_v2 = vadd.f32 %v3465_v0, %v1510_v23  ;;  %v1591_v40 = vadd.f32 %v3462_v55, %v1403_v24  ;;  %v1618_v28 = vmax.f32 %v1590_v36, 0.0  ;;  %v3533_v13 = vmax.f32 %v3487_v43, %v2679_v48 }
 0x18e   :  { %v1799_v34 = vcombine.low %v1615_v44, %v1616_v22  ;;  %v1800_v35 = vcombine.high %v1615_v44, %v1616_v22  ;;  %v1592_v45 = vadd.f32 %v3467_v56, %v1405_v31  ;;  %v1594_v57 = vadd.f32 %v3469_v60, %v1512_v32 }
 0x18f   :  { %v1621_v3 = vmax.f32 %v1593_v2, 0.0  ;;  %v1619_v37 = vmax.f32 %v1591_v40, 0.0  ;;  %v1801_v63 = vcombine.low %v1617_v49, %v1618_v28  ;;  %v1802_v6 = vcombine.high %v1617_v49, %v1618_v28  ;;  %2077 = vrot.lane.b32.xlu0 %v3533_v13, %s2964_s23 }
 0x190   :  { %v1516_v4 = vpop.f32.mrb[12].mxu1  ;;  %v1409_v52 = vpop.f32.mrb[12].mxu0  ;;  %v1620_v33 = vmax.f32 %v1592_v45, 0.0  ;;  %v1622_v39 = vmax.f32 %v1594_v57, 0.0  ;;  %v1689_v47 = vcombine.low %v3498_v25, %v3501_v50  ;;  %v1708_v10 = vrot.slane %v3489_v46, %v3475_v38 }
 0x191   :  { %v1411_v61 = vpop.f32.mrb[13].mxu0  ;;  %v1518_v62 = vpop.f32.mrb[13].mxu1  ;;  %v1597_v7 = vadd.f32 %v3465_v0, %v1516_v4  ;;  %v1722_v5 = vrot.slane %v3491_v58, %v3475_v38  ;;  %v1773_v1 = vrot.slane %v1763_v29, %v3475_v38  ;;  %v1780_v0 = vrot.slane %v1764_v30, %v3475_v38 }
 0x192   :  { %v1835_v53 = vcombine.low %v1619_v37, %v1620_v33  ;;  %v1836_v54 = vcombine.high %v1619_v37, %v1620_v33  ;;  %v1837_v9 = vcombine.low %v1621_v3, %v1622_v39  ;;  %v1838_v43 = vcombine.high %v1621_v3, %v1622_v39 }
 0x193   :  { %v2680_v26 = vrot.slane %v1689_v47, 9  ;;  %v1625_v11 = vmax.f32 %v1597_v7, 0.0  ;;  %v1759_v14 = vcombine.low %v3517_v51, %v3529_v59  ;;  %v1595_v15 = vadd.f32 %v3462_v55, %v1409_v52 }
 0x194   :  { %v1596_v16 = vadd.f32 %v3467_v56, %v1411_v61  ;;  %v1598_v46 = vadd.f32 %v3469_v60, %v1518_v62  ;;  %v1690_v44 = vcombine.high %v3498_v25, %v3501_v50  ;;  %v1761_v58 = vcombine.low %v1744_v42, %v1758_v8 }
 0x195   :  { %v3546_v12 = vmax.f32 %v1689_v47, %v2680_v26  ;;  %v1723_v29 = vcombine.low %v3509_v21, %v3514_v27  ;;  %v2686_v30 = vrot.slane %v1759_v14, 9  ;;  %v1623_v22 = vmax.f32 %v1595_v15, 0.0 }
 0x196   :  { %v1624_v23 = vmax.f32 %v1596_v16, 0.0  ;;  %v1762_v24 = vcombine.high %v1744_v42, %v1758_v8  ;;  %v1794_v55 = vrot.slane %v1766_v20, %v3475_v38  ;;  %v1626_v49 = vmax.f32 %v1598_v46, 0.0 }
 0x197   :  { %2079 = vrot.lane.b32.xlu0 %v3546_v12, %s2964_s23  ;;  %v2681_v56 = vrot.slane %v1690_v44, 9  ;;  %v2688_v31 = vrot.slane %v1761_v58, 9  ;;  %v1787_v60 = vrot.slane %v3506_v17, %v3475_v38  ;;  %v3562_v25 = vmax.f32 %v1759_v14, %v2686_v30 }
 0x198   :  { %v1871_v50 = vcombine.low %v1623_v22, %v1624_v23  ;;  %v1872_v32 = vcombine.high %v1623_v22, %v1624_v23  ;;  %v1873_v36 = vcombine.low %v1625_v11, %v1626_v49  ;;  %v1874_v2 = vcombine.high %v1625_v11, %v1626_v49 }
 0x199   :  { %v3564_v48 = vmax.f32 %v1690_v44, %v2681_v56  ;;  %v2682_v40 = vrot.slane %v1723_v29, 9  ;;  %v1809_v45 = vrot.slane %v1799_v34, %v3475_v38  ;;  %v1816_v42 = vrot.slane %v1800_v35, %v3475_v38  ;;  %2091 = vrot.lane.b32.xlu1 %v3562_v25, %s2964_s23 }
 0x19a   :  { %v1823_v20 = vrot.slane %v1801_v63, %v3475_v38  ;;  %v1830_v57 = vrot.slane %v1802_v6, %v3475_v38  ;;  %v3574_v17 = vmax.f32 %v1761_v58, %v2688_v31  ;;  %v2689_v8 = vrot.slane %v1762_v24, 9 }
 0x19b   :  { %2081 = vrot.lane.b32.xlu0 %v3564_v48, %s2964_s23  ;;  %v1724_v28 = vcombine.high %v3509_v21, %v3514_v27  ;;  %v1797_v3 = vcombine.low %v1780_v0, %v1794_v55  ;;  %v1725_v34 = vcombine.low %v1708_v10, %v1722_v5  ;;  %v1798_v4 = vcombine.high %v1780_v0, %v1794_v55 }
 0x19c   :  { %v1726_v35 = vcombine.high %v1708_v10, %v1722_v5  ;;  %v1795_v52 = vcombine.low %v1773_v1, %v1787_v60  ;;  %v3578_v37 = vmax.f32 %v1723_v29, %v2682_v40  ;;  %v1760_v39 = vcombine.high %v3517_v51, %v3529_v59 }
 0x19d   :  { %v2683_v33 = vrot.slane %v1724_v28, 9  ;;  %v1796_v61 = vcombine.high %v1773_v1, %v1787_v60  ;;  %v1852_v62 = vrot.slane %v1836_v54, %v3475_v38  ;;  %v1866_v63 = vrot.slane %v1838_v43, %v3475_v38  ;;  %2095 = vrot.lane.b32.xlu1 %v3574_v17, %s2964_s23 }
 0x19e   :  { %v1845_v21 = vrot.slane %v1835_v53, %v3475_v38  ;;  %v1859_v27 = vrot.slane %v1837_v9, %v3475_v38  ;;  %v1881_v6 = vrot.slane %v1871_v50, %v3475_v38  ;;  %v1895_v7 = vrot.slane %v1873_v36, %v3475_v38 }
 0x19f   :  { %2083 = vrot.lane.b32.xlu0 %v3578_v37, %s2964_s23  ;;  %v3592_v51 = vmax.f32 %v1762_v24, %v2689_v8  ;;  %v2692_v59 = vrot.slane %v1797_v3, 9  ;;  %v3594_v47 = vmax.f32 %v1724_v28, %v2683_v33  ;;  %v2684_v54 = vrot.slane %v1725_v34, 9 }
 0x1a0   :  { %v1833_v43 = vcombine.low %v1816_v42, %v1830_v57  ;;  %v1831_v10 = vcombine.low %v1809_v45, %v1823_v20  ;;  %v1834_v53 = vcombine.high %v1816_v42, %v1830_v57  ;;  %v1832_v9 = vcombine.high %v1809_v45, %v1823_v20 }
 0x1a1   :  { %2097 = vrot.lane.b32.xlu1 %v3592_v51, %s2964_s23  ;;  %v1870_v26 = vcombine.high %v1852_v62, %v1866_v63  ;;  %v1869_v5 = vcombine.low %v1852_v62, %v1866_v63  ;;  %v1867_v1 = vcombine.low %v1845_v21, %v1859_v27  ;;  %v1903_v0 = vcombine.low %v1881_v6, %v1895_v7 }
 0x1a2   :  { %v1888_v11 = vrot.slane %v1872_v32, %v3475_v38  ;;  %v1902_v14 = vrot.slane %v1874_v2, %v3475_v38  ;;  %v3602_v15 = vmax.f32 %v1797_v3, %v2692_v59  ;;  %v2693_v16 = vrot.slane %v1798_v4, 9 }
 0x1a3   :  { %2085 = vrot.lane.b32.xlu0 %v3594_v47, %s2964_s23  ;;  %v3604_v46 = vmax.f32 %v1725_v34, %v2684_v54  ;;  %v2685_v44 = vrot.slane %v1726_v35, 9  ;;  %v1868_v58 = vcombine.high %v1845_v21, %v1859_v27  ;;  %v1904_v29 = vcombine.high %v1881_v6, %v1895_v7 }
 0x1a4   :  { %v3610_v30 = vmax.f32 %v1798_v4, %v2693_v16  ;;  %v2690_v22 = vrot.slane %v1795_v52, 9  ;;  %v1905_v23 = vcombine.low %v1888_v11, %v1902_v14  ;;  %v1906_v24 = vcombine.high %v1888_v11, %v1902_v14 }
 0x1a5   :  { %2103 = vrot.lane.b32.xlu1 %v3602_v15, %s2964_s23  ;;  %v3612_v38 = vmax.f32 %v1726_v35, %v2685_v44  ;;  %v2687_v55 = vrot.slane %v1760_v39, 9  ;;  %v2691_v56 = vrot.slane %v1796_v61, 9  ;;  %v2696_v60 = vrot.slane %v1833_v43, 9 }
 0x1a6   :  { %v3618_v49 = vmax.f32 %v1795_v52, %v2690_v22  ;;  %v2694_v32 = vrot.slane %v1831_v10, 9  ;;  %v2697_v2 = vrot.slane %v1834_v53, 9  ;;  %v2695_v45 = vrot.slane %v1832_v9, 9 }
 0x1a7   :  { %2087 = vrot.lane.b32.xlu0 %v3604_v46, %s2964_s23  ;;  %v3620_v31 = vmax.f32 %v1760_v39, %v2687_v55  ;;  %v3626_v50 = vmax.f32 %v1796_v61, %v2691_v56  ;;  %v3628_v36 = vmax.f32 %v1833_v43, %v2696_v60  ;;  %v2700_v20 = vrot.slane %v1869_v5, 9 }
 0x1a8   :  { %v3634_v40 = vmax.f32 %v1831_v10, %v2694_v32  ;;  %v3636_v42 = vmax.f32 %v1834_v53, %v2697_v2  ;;  %v3642_v57 = vmax.f32 %v1832_v9, %v2695_v45  ;;  %v2701_v8 = vrot.slane %v1870_v26, 9 }
 0x1a9   :  { %2105 = vrot.lane.b32.xlu1 %v3610_v30, %s2964_s23  ;;  %v3644_v28 = vmax.f32 %v1869_v5, %v2700_v20  ;;  %v2698_v3 = vrot.slane %v1867_v1, 9  ;;  %v2702_v4 = vrot.slane %v1903_v0, 9  ;;  %v2699_v52 = vrot.slane %v1868_v58, 9 }
 0x1aa   :  { %v3650_v34 = vmax.f32 %v1870_v26, %v2701_v8  ;;  %v2703_v39 = vrot.slane %v1904_v29, 9  ;;  %v2704_v63 = vrot.slane %v1905_v23, 9  ;;  %v2705_v27 = vrot.slane %v1906_v24, 9 }
 0x1ab   :  { %2089 = vrot.lane.b32.xlu0 %v3612_v38, %s2964_s23  ;;  %v3652_v35 = vmax.f32 %v1867_v1, %v2698_v3  ;;  %v3658_v33 = vmax.f32 %v1903_v0, %v2702_v4  ;;  %v3660_v61 = vmax.f32 %v1868_v58, %v2699_v52 }
 0x1ac   :  { %v3666_v62 = vmax.f32 %v1904_v29, %v2703_v39  ;;  %v3670_v21 = vmax.f32 %v1905_v23, %v2704_v63  ;;  %v3674_v6 = vmax.f32 %v1906_v24, %v2705_v27 }
 0x1ad   :  { %2099 = vrot.lane.b32.xlu1 %v3618_v49, %s2964_s23 }
 0x1af   :  { %2093 = vrot.lane.b32.xlu0 %v3620_v31, %s2964_s23 }
 0x1b1   :  { %2101 = vrot.lane.b32.xlu1 %v3626_v50, %s2964_s23 }
 0x1b3   :  { %2111 = vrot.lane.b32.xlu0 %v3628_v36, %s2964_s23 }
 0x1b5   :  { %2107 = vrot.lane.b32.xlu1 %v3634_v40, %s2964_s23 }
 0x1b7   :  { %2113 = vrot.lane.b32.xlu0 %v3636_v42, %s2964_s23 }
 0x1b9   :  { %2109 = vrot.lane.b32.xlu1 %v3642_v57, %s2964_s23 }
 0x1bb   :  { %2119 = vrot.lane.b32.xlu0 %v3644_v28, %s2964_s23 }
 0x1bd   :  { %2121 = vrot.lane.b32.xlu1 %v3650_v34, %s2964_s23 }
 0x1bf   :  { %2115 = vrot.lane.b32.xlu0 %v3652_v35, %s2964_s23 }
 0x1c1   :  { %2123 = vrot.lane.b32.xlu1 %v3658_v33, %s2964_s23 }
 0x1c3   :  { %2117 = vrot.lane.b32.xlu0 %v3660_v61, %s2964_s23 }
 0x1c5   :  { %2125 = vrot.lane.b32.xlu1 %v3666_v62, %s2964_s23 }
 0x1c9   :  { %2127 = vrot.lane.b32.xlu1 %v3670_v21, %s2964_s23 }
 0x1cd   :  { %2129 = vrot.lane.b32.xlu1 %v3674_v6, %s2964_s23 }
 0x1fc   :  { %v2076_v7 = vpop.permute.xlu0 %2075 }
 0x1fd   :  { %v2131_v26 = vrot.slane %v2076_v7, 2  ;;  %v2159_v5 = vrot.slane %v2076_v7, 4 }
 0x1ff   :  { %v2187_v58 = vsel %vm151_vm3, %v2131_v26, %v2159_v5 }
 0x200   :  { %v2243_v8 = vmax.f32 %v3511_v41, %v2187_v58 }
 0x201   :  { %v2078_v59 = vpop.permute.xlu0 %2077 }
 0x202   :  { %v2132_v43 = vrot.slane %v2078_v59, 2  ;;  %v2160_v10 = vrot.slane %v2078_v59, 4  ;;  %v2302_v59 = vrot.slane %v2243_v8, %v3457_v18 }
 0x204   :  { %v2188_v0 = vsel %vm151_vm3, %v2132_v43, %v2160_v10  ;;  %v2306_v43 = vrot.slane %v2243_v8, %v3459_v19 }
 0x205   :  { %v2244_v29 = vmax.f32 %v3533_v13, %v2188_v0 }
 0x207   :  { %v2310_v13 = vrot.slane %v2244_v29, %v3457_v18 }
 0x209   :  { %v2080_v54 = vpop.permute.xlu0 %2079  ;;  %v2524_v5 = vsel %vm2523_vm10, %v2310_v13, %v2302_v59 }
 0x20a   :  { %v2133_v53 = vrot.slane %v2080_v54, 2  ;;  %v2161_v9 = vrot.slane %v2080_v54, 4 }
 0x20b   :  { %v2092_v1 = vpop.permute.xlu1 %2091 }
 0x20c   :  { %v2189_v14 = vsel %vm151_vm3, %v2133_v53, %v2161_v9  ;;  %v2139_v24 = vrot.slane %v2092_v1, 2  ;;  %v2167_v55 = vrot.slane %v2092_v1, 4 }
 0x20d   :  { %v2082_v11 = vpop.permute.xlu0 %2081  ;;  %v2245_v23 = vmax.f32 %v3546_v12, %v2189_v14  ;;  %v2314_v12 = vrot.slane %v2244_v29, %v3459_v19 }
 0x20e   :  { %v2134_v16 = vrot.slane %v2082_v11, 2  ;;  %v2162_v44 = vrot.slane %v2082_v11, 4  ;;  %v2195_v52 = vsel %vm151_vm3, %v2139_v24, %v2167_v55 }
 0x20f   :  { %v2096_v22 = vpop.permute.xlu1 %2095  ;;  %v2318_v63 = vrot.slane %v2245_v23, %v3457_v18  ;;  %v3696_v10 = vmax.f32 %v3562_v25, %v2195_v52 }
 0x210   :  { %v2190_v56 = vsel %vm151_vm3, %v2134_v16, %v2162_v44  ;;  %v2141_v32 = vrot.slane %v2096_v22, 2  ;;  %v2169_v2 = vrot.slane %v2096_v22, 4  ;;  %v2536_v16 = vsel %vm2523_vm10, %v2314_v12, %v2306_v43 }
 0x211   :  { %v2084_v60 = vpop.permute.xlu0 %2083  ;;  %v2246_v3 = vmax.f32 %v3564_v48, %v2190_v56  ;;  %v2322_v48 = vrot.slane %v2245_v23, %v3459_v19  ;;  %v2526_v25 = vsel %vm2525_vm11, %v2318_v63, %v2524_v5 }
 0x212   :  { %v2135_v45 = vrot.slane %v2084_v60, 2  ;;  %v2163_v20 = vrot.slane %v2084_v60, 4  ;;  %v2197_v27 = vsel %vm151_vm3, %v2141_v32, %v2169_v2 }
 0x213   :  { %v2098_v4 = vpop.permute.xlu1 %2097  ;;  %v2326_v53 = vrot.slane %v2246_v3, %v3457_v18  ;;  %v2330_v9 = vrot.slane %v2246_v3, %v3459_v19  ;;  %v3702_v1 = vmax.f32 %v3574_v17, %v2197_v27  ;;  %v2537_v29 = vsel %vm2525_vm11, %v2322_v48, %v2536_v16 }
 0x214   :  { %v2191_v7 = vsel %vm151_vm3, %v2135_v45, %v2163_v20  ;;  %v2142_v22 = vrot.slane %v2098_v4, 2  ;;  %v2170_v23 = vrot.slane %v2098_v4, 4  ;;  %v2366_v17 = vrot.slane %v3696_v10, %v3457_v18 }
 0x215   :  { %v2086_v39 = vpop.permute.xlu0 %2085  ;;  %v2247_v0 = vmax.f32 %v3578_v37, %v2191_v7  ;;  %v2370_v37 = vrot.slane %v3696_v10, %v3459_v19  ;;  %v2528_v55 = vsel %vm2527_vm12, %v2326_v53, %v2526_v25  ;;  %v2538_v56 = vsel %vm2527_vm12, %v2330_v9, %v2537_v29 }
 0x216   :  { %v2136_v41 = vrot.slane %v2086_v39, 2  ;;  %v2164_v54 = vrot.slane %v2086_v39, 4  ;;  %v2386_v32 = vrot.slane %v3702_v1, %v3459_v19  ;;  %v2198_v12 = vsel %vm151_vm3, %v2142_v22, %v2170_v23 }
 0x217   :  { %v2104_v26 = vpop.permute.xlu1 %2103  ;;  %v2334_v2 = vrot.slane %v2247_v0, %v3457_v18  ;;  %v2338_v8 = vrot.slane %v2247_v0, %v3459_v19  ;;  %v2254_v0 = vmax.f32 %v3592_v51, %v2198_v12 }
 0x218   :  { %v2192_v11 = vsel %vm151_vm3, %v2136_v41, %v2164_v54  ;;  %v2145_v52 = vrot.slane %v2104_v26, 2  ;;  %v2173_v39 = vrot.slane %v2104_v26, 4 }
 0x219   :  { %v2088_v14 = vpop.permute.xlu0 %2087  ;;  %v2248_v44 = vmax.f32 %v3594_v47, %v2192_v11  ;;  %v2382_v47 = vrot.slane %v3702_v1, %v3457_v18  ;;  %v2529_v54 = vsel %vm943_vm5, %v2334_v2, %v2528_v55  ;;  %v2539_v5 = vsel %vm943_vm5, %v2338_v8, %v2538_v56 }
 0x21a   :  { %v2137_v58 = vrot.slane %v2088_v14, 2  ;;  %v2165_v24 = vrot.slane %v2088_v14, 4  ;;  %v2201_v29 = vsel %vm151_vm3, %v2145_v52, %v2173_v39 }
 0x21b   :  { %v2106_v60 = vpop.permute.xlu1 %2105  ;;  %v2342_v3 = vrot.slane %v2248_v44, %v3457_v18  ;;  %v2346_v27 = vrot.slane %v2248_v44, %v3459_v19  ;;  %v3751_v52 = vmax.f32 %v3602_v15, %v2201_v29 }
 0x21c   :  { %v2193_v45 = vsel %vm151_vm3, %v2137_v58, %v2165_v24  ;;  %v2146_v41 = vrot.slane %v2106_v60, 2  ;;  %v2174_v59 = vrot.slane %v2106_v60, 4 }
 0x21d   :  { %v2090_v20 = vpop.permute.xlu0 %2089  ;;  %v2249_v4 = vmax.f32 %v3604_v46, %v2193_v45  ;;  %v2531_v26 = vsel %vm2530_vm13, %v2342_v3, %v2529_v54  ;;  %v2540_v58 = vsel %vm2530_vm13, %v2346_v27, %v2539_v5  ;;  %v2390_v3 = vrot.slane %v2254_v0, %v3457_v18 }
 0x21e   :  { %v2138_v13 = vrot.slane %v2090_v20, 2  ;;  %v2166_v63 = vrot.slane %v2090_v20, 4  ;;  %v2202_v23 = vsel %vm151_vm3, %v2146_v41, %v2174_v59 }
 0x21f   :  { %v2350_v7 = vrot.slane %v2249_v4, %v3457_v18  ;;  %v2100_v48 = vpop.permute.xlu1 %2099  ;;  %v2354_v11 = vrot.slane %v2249_v4, %v3459_v19  ;;  %v2394_v4 = vrot.slane %v2254_v0, %v3459_v19  ;;  %v2258_v27 = vmax.f32 %v3610_v30, %v2202_v23 }
 0x220   :  { %v2194_v43 = vsel %vm151_vm3, %v2138_v13, %v2166_v63  ;;  %v2143_v53 = vrot.slane %v2100_v48, 2  ;;  %v2171_v9 = vrot.slane %v2100_v48, 4 }
 0x221   :  { %v2094_v46 = vpop.permute.xlu0 %2093  ;;  %v2250_v14 = vmax.f32 %v3612_v38, %v2194_v43  ;;  %v2533_v22 = vsel %vm2532_vm14, %v2350_v7, %v2531_v26  ;;  %v2541_v2 = vsel %vm2532_vm14, %v2354_v11, %v2540_v58 }
 0x222   :  { %v2199_v16 = vsel %vm151_vm3, %v2143_v53, %v2171_v9  ;;  %v2140_v25 = vrot.slane %v2094_v46, 2  ;;  %v2168_v44 = vrot.slane %v2094_v46, 4 }
 0x223   :  { %v2102_v51 = vpop.permute.xlu1 %2101  ;;  %v2358_v24 = vrot.slane %v2250_v14, %v3457_v18  ;;  %v2362_v55 = vrot.slane %v2250_v14, %v3459_v19  ;;  %v2255_v45 = vmax.f32 %v3618_v49, %v2199_v16 }
 0x224   :  { %v2196_v38 = vsel %vm151_vm3, %v2140_v25, %v2168_v44  ;;  %v2144_v56 = vrot.slane %v2102_v51, 2  ;;  %v2172_v8 = vrot.slane %v2102_v51, 4 }
 0x225   :  { %v2112_v60 = vpop.permute.xlu0 %2111  ;;  %v2252_v20 = vmax.f32 %v3620_v31, %v2196_v38  ;;  %v2535_v13 = vsel %vm2534_vm15, %v2358_v24, %v2533_v22  ;;  %v2542_v12 = vsel %vm2534_vm15, %v2362_v55, %v2541_v2  ;;  %v2398_v48 = vrot.slane %v2255_v45, %v3457_v18 }
 0x226   :  { %2585 = vst [vmem:[%s3893_s3] sm:$0xff] %v2535_v13  ;;  %2587 = vst.msk [vmem:[%s3893_s3 + $0x8] sm:$0xff] %vm2586_vm0, %v2542_v12  ;;  %v2200_v39 = vsel %vm151_vm3, %v2144_v56, %v2172_v8  ;;  %v2402_v54 = vrot.slane %v2255_v45, %v3459_v19  ;;  %v2149_v9 = vrot.slane %v2112_v60, 2  ;;  %v2177_v46 = vrot.slane %v2112_v60, 4 }
 0x227   :  { %v2374_v49 = vrot.slane %v2252_v20, %v3457_v18  ;;  %v2378_v31 = vrot.slane %v2252_v20, %v3459_v19  ;;  %v2108_v63 = vpop.permute.xlu1 %2107  ;;  %v2256_v15 = vmax.f32 %v3626_v50, %v2200_v39  ;;  %v2414_v24 = vrot.slane %v3751_v52, %v3457_v18 }
 0x228   :  { %v2147_v7 = vrot.slane %v2108_v63, 2  ;;  %v2175_v41 = vrot.slane %v2108_v63, 4  ;;  %v2422_v55 = vrot.slane %v2258_v27, %v3457_v18  ;;  %v2205_v38 = vsel %vm151_vm3, %v2149_v9, %v2177_v46 }
 0x229   :  { %v2114_v59 = vpop.permute.xlu0 %2113  ;;  %v2543_v43 = vsel %vm2523_vm10, %v2374_v49, %v2366_v17  ;;  %v2548_v53 = vsel %vm2523_vm10, %v2378_v31, %v2370_v37  ;;  %v2406_v10 = vrot.slane %v2256_v15, %v3457_v18  ;;  %v2410_v37 = vrot.slane %v2256_v15, %v3459_v19 }
 0x22a   :  { %v2544_v30 = vsel %vm2525_vm11, %v2382_v47, %v2543_v43  ;;  %v2549_v50 = vsel %vm2525_vm11, %v2386_v32, %v2548_v53  ;;  %v2203_v11 = vsel %vm151_vm3, %v2147_v7, %v2175_v41  ;;  %v2150_v1 = vrot.slane %v2114_v59, 2 }
 0x22b   :  { %v2545_v5 = vsel %vm2527_vm12, %v2390_v3, %v2544_v30  ;;  %v2550_v17 = vsel %vm2527_vm12, %v2394_v4, %v2549_v50  ;;  %v2110_v0 = vpop.permute.xlu1 %2109  ;;  %v2178_v25 = vrot.slane %v2114_v59, 4  ;;  %v2259_v58 = vmax.f32 %v3634_v40, %v2203_v11 }
 0x22c   :  { %v2546_v26 = vsel %vm943_vm5, %v2398_v48, %v2545_v5  ;;  %v2551_v47 = vsel %vm943_vm5, %v2402_v54, %v2550_v17  ;;  %v2148_v44 = vrot.slane %v2110_v0, 2  ;;  %v2176_v29 = vrot.slane %v2110_v0, 4 }
 0x22d   :  { %v2120_v14 = vpop.permute.xlu0 %2119  ;;  %v2547_v32 = vsel %vm2530_vm13, %v2406_v10, %v2546_v26  ;;  %v2552_v16 = vsel %vm2530_vm13, %v2410_v37, %v2551_v47  ;;  %v2426_v2 = vrot.slane %v2258_v27, %v3459_v19  ;;  %v2206_v45 = vsel %vm151_vm3, %v2150_v1, %v2178_v25 }
 0x22e   :  { %2588 = vst [vmem:[%s3893_s3 + $0x10] sm:$0x3f] %v2547_v32  ;;  %2590 = vst.msk [vmem:[%s3893_s3 + $0x18] sm:$0x3f] %vm2589_vm1, %v2552_v16  ;;  %v2153_v23 = vrot.slane %v2120_v14, 2  ;;  %v2181_v51 = vrot.slane %v2120_v14, 4  ;;  %v2204_v56 = vsel %vm151_vm3, %v2148_v44, %v2176_v29  ;;  %v2418_v8 = vrot.slane %v3751_v52, %v3459_v19 }
 0x22f   :  { %v2122_v22 = vpop.permute.xlu1 %2121  ;;  %v2430_v3 = vrot.slane %v2259_v58, %v3457_v18  ;;  %v2260_v4 = vmax.f32 %v3642_v57, %v2204_v56  ;;  %v2261_v12 = vmax.f32 %v3628_v36, %v2205_v38  ;;  %v2434_v49 = vrot.slane %v2259_v58, %v3459_v19 }
 0x230   :  { %v2154_v20 = vrot.slane %v2122_v22, 2  ;;  %v2182_v40 = vrot.slane %v2122_v22, 4  ;;  %v2209_v31 = vsel %vm151_vm3, %v2153_v23, %v2181_v51  ;;  %v2262_v27 = vmax.f32 %v3636_v42, %v2206_v45 }
 0x231   :  { %v2116_v60 = vpop.permute.xlu0 %2115  ;;  %v2438_v15 = vrot.slane %v2260_v4, %v3457_v18  ;;  %v2442_v7 = vrot.slane %v2260_v4, %v3459_v19  ;;  %v2553_v52 = vsel %vm2523_vm10, %v2422_v55, %v2414_v24  ;;  %v2560_v41 = vsel %vm2523_vm10, %v2426_v2, %v2418_v8 }
 0x232   :  { %v2151_v13 = vrot.slane %v2116_v60, 2  ;;  %v2179_v39 = vrot.slane %v2116_v60, 4  ;;  %v2210_v57 = vsel %vm151_vm3, %v2154_v20, %v2182_v40  ;;  %v2554_v59 = vsel %vm2525_vm11, %v2430_v3, %v2553_v52 }
 0x233   :  { %v2124_v63 = vpop.permute.xlu1 %2123  ;;  %v2265_v48 = vmax.f32 %v3644_v28, %v2209_v31  ;;  %v2446_v42 = vrot.slane %v2261_v12, %v3457_v18  ;;  %v2561_v30 = vsel %vm2525_vm11, %v2434_v49, %v2560_v41  ;;  %v2555_v50 = vsel %vm2527_vm12, %v2438_v15, %v2554_v59 }
 0x234   :  { %v2207_v36 = vsel %vm151_vm3, %v2151_v13, %v2179_v39  ;;  %v2155_v54 = vrot.slane %v2124_v63, 2  ;;  %v2183_v43 = vrot.slane %v2124_v63, 4  ;;  %v2450_v5 = vrot.slane %v2261_v12, %v3459_v19 }
 0x235   :  { %v2118_v53 = vpop.permute.xlu0 %2117  ;;  %v2263_v9 = vmax.f32 %v3652_v35, %v2207_v36  ;;  %v2454_v17 = vrot.slane %v2262_v27, %v3457_v18  ;;  %v2562_v10 = vsel %vm2527_vm12, %v2442_v7, %v2561_v30  ;;  %v2266_v28 = vmax.f32 %v3650_v34, %v2210_v57 }
 0x236   :  { %v2458_v37 = vrot.slane %v2262_v27, %v3459_v19  ;;  %v2152_v0 = vrot.slane %v2118_v53, 2  ;;  %v2180_v26 = vrot.slane %v2118_v53, 4  ;;  %v2556_v11 = vsel %vm943_vm5, %v2446_v42, %v2555_v50 }
 0x237   :  { %v2126_v46 = vpop.permute.xlu1 %2125  ;;  %v2478_v1 = vrot.slane %v2265_v48, %v3457_v18  ;;  %v2211_v35 = vsel %vm151_vm3, %v2155_v54, %v2183_v43  ;;  %v2563_v32 = vsel %vm943_vm5, %v2450_v5, %v2562_v10  ;;  %v2462_v16 = vrot.slane %v2263_v9, %v3457_v18 }
 0x238   :  { %v2156_v47 = vrot.slane %v2126_v46, 2  ;;  %v2184_v14 = vrot.slane %v2126_v46, 4  ;;  %v2466_v25 = vrot.slane %v2263_v9, %v3459_v19  ;;  %v2208_v34 = vsel %vm151_vm3, %v2152_v0, %v2180_v26 }
 0x239   :  { %v2486_v58 = vrot.slane %v2266_v28, %v3457_v18  ;;  %v2482_v29 = vrot.slane %v2265_v48, %v3459_v19  ;;  %v2264_v22 = vmax.f32 %v3660_v61, %v2208_v34  ;;  %v2557_v51 = vsel %vm2530_vm13, %v2454_v17, %v2556_v11 }
 0x23a   :  { %v2212_v23 = vsel %vm151_vm3, %v2156_v47, %v2184_v14  ;;  %v2267_v24 = vmax.f32 %v3658_v33, %v2211_v35  ;;  %v2564_v56 = vsel %vm2530_vm13, %v2458_v37, %v2563_v32  ;;  %v2490_v20 = vrot.slane %v2266_v28, %v3459_v19 }
 0x23b   :  { %v2128_v44 = vpop.permute.xlu1 %2127  ;;  %v2470_v60 = vrot.slane %v2264_v22, %v3457_v18  ;;  %v2474_v2 = vrot.slane %v2264_v22, %v3459_v19  ;;  %v2268_v45 = vmax.f32 %v3666_v62, %v2212_v23  ;;  %v2558_v61 = vsel %vm2532_vm14, %v2462_v16, %v2557_v51 }
 0x23c   :  { %v2157_v55 = vrot.slane %v2128_v44, 2  ;;  %v2185_v38 = vrot.slane %v2128_v44, 4  ;;  %v2565_v40 = vsel %vm2532_vm14, %v2466_v25, %v2564_v56  ;;  %v2494_v49 = vrot.slane %v2267_v24, %v3457_v18 }
 0x23d   :  { %v2559_v33 = vsel %vm2534_vm15, %v2470_v60, %v2558_v61  ;;  %v2566_v4 = vsel %vm2534_vm15, %v2474_v2, %v2565_v40  ;;  %v2498_v62 = vrot.slane %v2267_v24, %v3459_v19  ;;  %v2502_v39 = vrot.slane %v2268_v45, %v3457_v18 }
 0x23e   :  { %v2213_v8 = vsel %vm151_vm3, %v2157_v55, %v2185_v38  ;;  %2591 = vst [vmem:[%s3893_s3 + $0x20] sm:$0xff] %v2559_v33  ;;  %2592 = vst.msk [vmem:[%s3893_s3 + $0x28] sm:$0xff] %vm2586_vm0, %v2566_v4  ;;  %v2506_v63 = vrot.slane %v2268_v45, %v3459_v19  ;;  %v2567_v7 = vsel %vm2523_vm10, %v2486_v58, %v2478_v1 }
 0x23f   :  { %v2130_v3 = vpop.permute.xlu1 %2129  ;;  %v2269_v13 = vmax.f32 %v3670_v21, %v2213_v8  ;;  %v2572_v52 = vsel %vm2523_vm10, %v2490_v20, %v2482_v29  ;;  %v2568_v57 = vsel %vm2525_vm11, %v2494_v49, %v2567_v7 }
 0x240   :  { %v2158_v12 = vrot.slane %v2130_v3, 2  ;;  %v2186_v31 = vrot.slane %v2130_v3, 4  ;;  %v2573_v36 = vsel %vm2525_vm11, %v2498_v62, %v2572_v52  ;;  %v2569_v59 = vsel %vm2527_vm12, %v2502_v39, %v2568_v57 }
 0x241   :  { %v2510_v21 = vrot.slane %v2269_v13, %v3457_v18  ;;  %v2514_v27 = vrot.slane %v2269_v13, %v3459_v19  ;;  %v2574_v48 = vsel %vm2527_vm12, %v2506_v63, %v2573_v36 }
 0x242   :  { %v2214_v15 = vsel %vm151_vm3, %v2158_v12, %v2186_v31 }
 0x243   :  { %v2270_v41 = vmax.f32 %v3674_v6, %v2214_v15  ;;  %v2570_v53 = vsel %vm943_vm5, %v2510_v21, %v2569_v59  ;;  %v2575_v42 = vsel %vm943_vm5, %v2514_v27, %v2574_v48 }
 0x245   :  { %v2518_v54 = vrot.slane %v2270_v41, %v3457_v18  ;;  %v2522_v43 = vrot.slane %v2270_v41, %v3459_v19 }
 0x247   :  { %v2571_v30 = vsel %vm2530_vm13, %v2518_v54, %v2570_v53  ;;  %v2576_v6 = vsel %vm2530_vm13, %v2522_v43, %v2575_v42 }
 0x248   :  { %2593 = vst [vmem:[%s3893_s3 + $0x30] sm:$0x3f] %v2571_v30  ;;  %2594 = vst.msk [vmem:[%s3893_s3 + $0x38] sm:$0x3f] %vm2589_vm1, %v2576_v6 }
 0x249   :  { %2599 = vsyncpa [#allocation3], 1 }
 0x24a   :  { %2600 = vsyncpa [#allocation5], 1 }

// kernel: cnn_forward.4
= control target key start
LH: loop header
LB: loop body
LE: loop exit
PB: predicated region body
PF: predicated region fallthrough
CT: control target
= control target key end

     0   :  { %8 = vsyncpa [#allocation3], 0  ;;  %s6036_s0 = inlined_call_operand.vmem [shape: f32[2,18,288], index: 0, kind: input, shape index: {}]   ;;  %s6037_s1 = inlined_call_operand.hbm [shape: f32[5,288,448], index: 1, kind: input, shape index: {}]   ;;  %s6038_s2 = inlined_call_operand.hbm [shape: f32[1,448], index: 2, kind: input, shape index: {}]   ;;  %s6039_s3 = inlined_call_operand.vmem [shape: f32[2,7,224], index: 3, kind: output, shape index: {}]  }
   0x1   :  { %9 = vsyncpa [#allocation5], 0  ;;  %s5044_s12 = smov [#allocation2]   ;;  %s4996_s16 = scalar_lea.hbm %s6037_s1, 92160 }
   0x2   :  { %s17_s13 = sshll.u32 %s5044_s12, 4  ;;  %p4997_p0 = scmp.ne.s32.totalorder %s6037_s1, %s4996_s16  ;;  %s18_s13 = int_to_ptr.vmem [resolvable:$true] %s17_s13 }
   0x3   :  { %p5000_p1 = scmp.lt.u32.totalorder %s4996_s16, %s6037_s1 }
   0x5   :  { %p5002_p2 = pnand %p5000_p1, %p4997_p0 }
   0x7   :  { %5005 = shalt.err (!%p5002_p2)
}
   0x8   :  { %s5006_s21 = scalar_lea.vmem %s18_s13, 92160  ;;  %p5011_p4 = scmp.lt.s32.totalorder %s18_s13, %s18_s13 }
   0x9   :  { %p5007_p3 = scmp.ne.s32.totalorder %s18_s13, %s5006_s21  ;;  %p5012_p5 = scmp.lt.s32.totalorder %s5006_s21, %s5006_s21 }
   0xb   :  { %p5013_p6 = por %p5012_p5, %p5011_p4 }
   0xd   :  { %p5014_p7 = pnand %p5013_p6, %p5007_p3 }
   0xf   :  { %5017 = shalt.err (!%p5014_p7)
}
  0x10   :  { %s5045_s22 = smov 512   ;;  %s5046_s23 = smov 32  }
  0x11   :  { %23 = dma.hbm_to_vmem [thread:$0]  %s6037_s1, 92160, %s18_s13, [#allocation3], %s5045_s22, %s5045_s22, %s5046_s23  }
  0x12   :  { %s5047_s26 = smov [#allocation4]   ;;  %s5018_s30 = scalar_lea.hbm %s6038_s2, 64 }
  0x13   :  { %s30_s27 = sshll.u32 %s5047_s26, 4  ;;  %p5019_p8 = scmp.ne.s32.totalorder %s6038_s2, %s5018_s30  ;;  %s31_s27 = int_to_ptr.vmem [resolvable:$true] %s30_s27 }
  0x14   :  { %p5022_p9 = scmp.lt.u32.totalorder %s5018_s30, %s6038_s2 }
  0x16   :  { %p5024_p10 = pnand %p5022_p9, %p5019_p8 }
  0x18   :  { %5027 = shalt.err (!%p5024_p10)
}
  0x19   :  { %s5028_s8 = scalar_lea.vmem %s31_s27, 64  ;;  %p5033_p12 = scmp.lt.s32.totalorder %s31_s27, %s31_s27 }
  0x1a   :  { %p5029_p11 = scmp.ne.s32.totalorder %s31_s27, %s5028_s8  ;;  %p5034_p13 = scmp.lt.s32.totalorder %s5028_s8, %s5028_s8 }
  0x1c   :  { %p5035_p0 = por %p5034_p13, %p5033_p12 }
  0x1e   :  { %p5036_p1 = pnand %p5035_p0, %p5029_p11 }
  0x20   :  { %5039 = shalt.err (!%p5036_p1)
}
  0x21   :  { %33 = dma.hbm_to_vmem [thread:$0]  %s6038_s2, 64, %s31_s27, [#allocation5]  }
  0x22   :  { %5040 = dma.done.wait [#allocation3], 92160  }
  0x23   :  { %5041 = vsyncadd [#allocation3], 4294875136 }
  0x24   :  { %5042 = dma.done.wait [#allocation5], 64  }
  0x25   :  { %5043 = vsyncadd [#allocation5], 4294967232  ;;  %v407_v0 = vld [vmem:[#allocation2 + $0x488] sm:$0xff]  ;;  %v409_v2 = vld [vmem:[#allocation2 + $0x498] sm:$0xff]  ;;  %vm354_vm0 = vcmask 1040384   ;;  %vm355_vm1 = vcmask 1042434  }
  0x26   :  { %v411_v1 = vld [vmem:[#allocation2 + $0x4a8] sm:$0xff]  ;;  %v413_v4 = vld [vmem:[#allocation2 + $0x4b8] sm:$0xff]  ;;  %v406_v5 = vld [vmem:[#allocation2 + $0x480] sm:$0xff]  ;;  %vm357_vm3 = vcmask 1044484   ;;  %vm359_vm5 = vcmask 1046534   ;;  %vm680_vm7 = vcmask 261120  }
  0x27   :  { %v4108_v3 = vpack.c.bf16 %v411_v1, %v407_v0  ;;  %v410_v6 = vld [vmem:[#allocation2 + $0x4a0] sm:$0xff]  ;;  %v4180_v7 = vpack.c.bf16 %v413_v4, %v409_v2  ;;  %v408_v9 = vld [vmem:[#allocation2 + $0x490] sm:$0xff]  ;;  %v415_v11 = vld [vmem:[#allocation2 + $0x4c8] sm:$0xff]  ;;  %vm3988_vm8 = vcmask 1041409   ;;  %vm3991_vm9 = vcmask 1043459  }
  0x28   :  { %v4110_v8 = vpack.c.bf16 %v410_v6, %v406_v5  ;;  %v412_v10 = vld [vmem:[#allocation2 + $0x4b0] sm:$0xff]  ;;  %v419_v13 = vld [vmem:[#allocation2 + $0x4e8] sm:$0xff]  ;;  %v417_v14 = vld [vmem:[#allocation2 + $0x4d8] sm:$0xff]  ;;  %vm3994_vm10 = vcmask 1045509   ;;  %vm4020_vm11 = vcmask 784384  }
  0x29   :  { %4109 = vmatprep.subr.bf16.mxu0 %v4108_v3  ;;  %v4182_v12 = vpack.c.bf16 %v412_v10, %v408_v9  ;;  %v421_v15 = vld [vmem:[#allocation2 + $0x4f8] sm:$0xff]  ;;  %4181 = vmatprep.subr.bf16.mxu1 %v4180_v7  ;;  %v4112_v16 = vpack.c.bf16 %v419_v13, %v415_v11  ;;  %v414_v18 = vld [vmem:[#allocation2 + $0x4c0] sm:$0xff]  ;;  %v416_v20 = vld [vmem:[#allocation2 + $0x4d0] sm:$0xff] }
  0x2a   :  { %4111 = vmatpush1.bf16.msra.mxu0 %v4110_v8  ;;  %v4184_v17 = vpack.c.bf16 %v421_v15, %v417_v14  ;;  %v418_v19 = vld [vmem:[#allocation2 + $0x4e0] sm:$0xff]  ;;  %v420_v22 = vld [vmem:[#allocation2 + $0x4f0] sm:$0xff]  ;;  %v423_v23 = vld [vmem:[#allocation2 + $0x508] sm:$0xff] }
  0x2b   :  { %4183 = vmatpush1.bf16.msra.mxu1 %v4182_v12  ;;  %v4114_v21 = vpack.c.bf16 %v418_v19, %v414_v18  ;;  %v427_v24 = vld [vmem:[#allocation2 + $0x528] sm:$0xff]  ;;  %4113 = vmatprep.subr.bf16.mxu0 %v4112_v16  ;;  %v4186_v25 = vpack.c.bf16 %v420_v22, %v416_v20  ;;  %v425_v27 = vld [vmem:[#allocation2 + $0x518] sm:$0xff]  ;;  %v422_v29 = vld [vmem:[#allocation2 + $0x500] sm:$0xff] }
  0x2c   :  { %4185 = vmatprep.subr.bf16.mxu1 %v4184_v17  ;;  %v4116_v26 = vpack.c.bf16 %v427_v24, %v423_v23  ;;  %v429_v28 = vld [vmem:[#allocation2 + $0x538] sm:$0xff]  ;;  %v426_v31 = vld [vmem:[#allocation2 + $0x520] sm:$0xff]  ;;  %v424_v32 = vld [vmem:[#allocation2 + $0x510] sm:$0xff] }
  0x2d   :  { %v4188_v30 = vpack.c.bf16 %v429_v28, %v425_v27  ;;  %v428_v33 = vld [vmem:[#allocation2 + $0x530] sm:$0xff]  ;;  %v4118_v34 = vpack.c.bf16 %v426_v31, %v422_v29  ;;  %v431_v35 = vld [vmem:[#allocation2 + $0x548] sm:$0xff]  ;;  %v433_v37 = vld [vmem:[#allocation2 + $0x558] sm:$0xff] }
  0x2e   :  { %4115 = vmatpush1.bf16.msra.mxu0 %v4114_v21  ;;  %v435_v36 = vld [vmem:[#allocation2 + $0x568] sm:$0xff]  ;;  %v4190_v38 = vpack.c.bf16 %v428_v33, %v424_v32  ;;  %v437_v40 = vld [vmem:[#allocation2 + $0x578] sm:$0xff]  ;;  %v430_v41 = vld [vmem:[#allocation2 + $0x540] sm:$0xff] }
  0x2f   :  { %4187 = vmatpush1.bf16.msra.mxu1 %v4186_v25  ;;  %4117 = vmatprep.subr.bf16.mxu0 %v4116_v26  ;;  %v4120_v39 = vpack.c.bf16 %v435_v36, %v431_v35  ;;  %v434_v42 = vld [vmem:[#allocation2 + $0x560] sm:$0xff]  ;;  %v4192_v43 = vpack.c.bf16 %v437_v40, %v433_v37  ;;  %v432_v44 = vld [vmem:[#allocation2 + $0x550] sm:$0xff]  ;;  %v439_v46 = vld [vmem:[#allocation2 + $0x588] sm:$0xff] }
  0x30   :  { %4189 = vmatprep.subr.bf16.mxu1 %v4188_v30  ;;  %v436_v45 = vld [vmem:[#allocation2 + $0x570] sm:$0xff]  ;;  %v443_v47 = vld [vmem:[#allocation2 + $0x5a8] sm:$0xff]  ;;  %v441_v48 = vld [vmem:[#allocation2 + $0x598] sm:$0xff]  ;;  %v4122_v50 = vpack.c.bf16 %v434_v42, %v430_v41 }
  0x31   :  { %v445_v49 = vld [vmem:[#allocation2 + $0x5b8] sm:$0xff]  ;;  %v4194_v51 = vpack.c.bf16 %v436_v45, %v432_v44  ;;  %v4124_v52 = vpack.c.bf16 %v443_v47, %v439_v46  ;;  %v438_v53 = vld [vmem:[#allocation2 + $0x580] sm:$0xff]  ;;  %v440_v55 = vld [vmem:[#allocation2 + $0x590] sm:$0xff] }
  0x32   :  { %4119 = vmatpush1.bf16.msra.mxu0 %v4118_v34  ;;  %v442_v54 = vld [vmem:[#allocation2 + $0x5a0] sm:$0xff]  ;;  %v4196_v56 = vpack.c.bf16 %v445_v49, %v441_v48  ;;  %v444_v57 = vld [vmem:[#allocation2 + $0x5b0] sm:$0xff]  ;;  %v447_v58 = vld [vmem:[#allocation2 + $0x5c8] sm:$0xff]  ;;  %v5048_v48 = vmov 1983009808  }
  0x33   :  { %4191 = vmatpush1.bf16.msra.mxu1 %v4190_v38  ;;  %4121 = vmatprep.subr.bf16.mxu0 %v4120_v39  ;;  %v451_v59 = vld [vmem:[#allocation2 + $0x5e8] sm:$0xff]  ;;  %v449_v60 = vld [vmem:[#allocation2 + $0x5d8] sm:$0xff]  ;;  %v4126_v62 = vpack.c.bf16 %v442_v54, %v438_v53  ;;  %v4198_v63 = vpack.c.bf16 %v444_v57, %v440_v55  ;;  %v446_v1 = vld [vmem:[#allocation2 + $0x5c0] sm:$0xff]  ;;  %v74_v49 = vunpack.c.l.s4 %v5048_v48 }
  0x34   :  { %4193 = vmatprep.subr.bf16.mxu1 %v4192_v43  ;;  %v453_v61 = vld [vmem:[#allocation2 + $0x5f8] sm:$0xff]  ;;  %v4128_v0 = vpack.c.bf16 %v451_v59, %v447_v58  ;;  %v450_v2 = vld [vmem:[#allocation2 + $0x5e0] sm:$0xff]  ;;  %v448_v3 = vld [vmem:[#allocation2 + $0x5d0] sm:$0xff] }
  0x35   :  { %v4200_v4 = vpack.c.bf16 %v453_v61, %v449_v60  ;;  %v452_v5 = vld [vmem:[#allocation2 + $0x5f0] sm:$0xff]  ;;  %v455_v6 = vld [vmem:[#allocation2 + $0x608] sm:$0xff]  ;;  %v457_v8 = vld [vmem:[#allocation2 + $0x618] sm:$0xff]  ;;  %v4130_v10 = vpack.c.bf16 %v450_v2, %v446_v1 }
  0x36   :  { %4123 = vmatpush1.bf16.msra.mxu0 %v4122_v50  ;;  %v459_v7 = vld [vmem:[#allocation2 + $0x628] sm:$0xff]  ;;  %v461_v9 = vld [vmem:[#allocation2 + $0x638] sm:$0xff]  ;;  %v4202_v11 = vpack.c.bf16 %v452_v5, %v448_v3  ;;  %v454_v13 = vld [vmem:[#allocation2 + $0x600] sm:$0xff]  ;;  %v76_v50 = vlaneseq }
  0x37   :  { %4195 = vmatpush1.bf16.msra.mxu1 %v4194_v51  ;;  %4125 = vmatprep.subr.bf16.mxu0 %v4124_v52  ;;  %v4132_v12 = vpack.c.bf16 %v459_v7, %v455_v6  ;;  %v458_v14 = vld [vmem:[#allocation2 + $0x620] sm:$0xff]  ;;  %v456_v15 = vld [vmem:[#allocation2 + $0x610] sm:$0xff]  ;;  %v4204_v16 = vpack.c.bf16 %v461_v9, %v457_v8  ;;  %v463_v18 = vld [vmem:[#allocation2 + $0x648] sm:$0xff] }
  0x38   :  { %4197 = vmatprep.subr.bf16.mxu1 %v4196_v56  ;;  %v460_v17 = vld [vmem:[#allocation2 + $0x630] sm:$0xff]  ;;  %v467_v19 = vld [vmem:[#allocation2 + $0x668] sm:$0xff]  ;;  %v465_v20 = vld [vmem:[#allocation2 + $0x658] sm:$0xff]  ;;  %v4134_v22 = vpack.c.bf16 %v458_v14, %v454_v13  ;;  %v5101_v5 = vshrl.u32 %v76_v50, 7 }
  0x39   :  { %v469_v21 = vld [vmem:[#allocation2 + $0x678] sm:$0xff]  ;;  %v4206_v23 = vpack.c.bf16 %v460_v17, %v456_v15  ;;  %v4136_v24 = vpack.c.bf16 %v467_v19, %v463_v18  ;;  %v462_v25 = vld [vmem:[#allocation2 + $0x640] sm:$0xff]  ;;  %v464_v27 = vld [vmem:[#allocation2 + $0x650] sm:$0xff] }
  0x3a   :  { %4127 = vmatpush1.bf16.msra.mxu0 %v4126_v62  ;;  %v466_v26 = vld [vmem:[#allocation2 + $0x660] sm:$0xff]  ;;  %v4208_v28 = vpack.c.bf16 %v469_v21, %v465_v20  ;;  %v468_v29 = vld [vmem:[#allocation2 + $0x670] sm:$0xff]  ;;  %v471_v30 = vld [vmem:[#allocation2 + $0x688] sm:$0xff]  ;;  %6071 = vst [vmem:[#allocation8_spill] sm:$0xff] %v5101_v5 }
  0x3b   :  { %4199 = vmatpush1.bf16.msra.mxu1 %v4198_v63  ;;  %4129 = vmatprep.subr.bf16.mxu0 %v4128_v0  ;;  %v475_v31 = vld [vmem:[#allocation2 + $0x6a8] sm:$0xff]  ;;  %v473_v32 = vld [vmem:[#allocation2 + $0x698] sm:$0xff]  ;;  %v4138_v34 = vpack.c.bf16 %v466_v26, %v462_v25  ;;  %v4210_v35 = vpack.c.bf16 %v468_v29, %v464_v27  ;;  %v470_v37 = vld [vmem:[#allocation2 + $0x680] sm:$0xff] }
  0x3c   :  { %4201 = vmatprep.subr.bf16.mxu1 %v4200_v4  ;;  %v477_v33 = vld [vmem:[#allocation2 + $0x6b8] sm:$0xff]  ;;  %v4140_v36 = vpack.c.bf16 %v475_v31, %v471_v30  ;;  %v474_v38 = vld [vmem:[#allocation2 + $0x6a0] sm:$0xff]  ;;  %v472_v39 = vld [vmem:[#allocation2 + $0x690] sm:$0xff]  ;;  %v75_v4 = vunpack.c.0.s8 %v74_v49 }
  0x3d   :  { %v4212_v40 = vpack.c.bf16 %v477_v33, %v473_v32  ;;  %v476_v41 = vld [vmem:[#allocation2 + $0x6b0] sm:$0xff]  ;;  %v479_v42 = vld [vmem:[#allocation2 + $0x6c8] sm:$0xff]  ;;  %v481_v44 = vld [vmem:[#allocation2 + $0x6d8] sm:$0xff]  ;;  %v4142_v46 = vpack.c.bf16 %v474_v38, %v470_v37 }
  0x3e   :  { %4131 = vmatpush1.bf16.msra.mxu0 %v4130_v10  ;;  %v483_v43 = vld [vmem:[#allocation2 + $0x6e8] sm:$0xff]  ;;  %v485_v45 = vld [vmem:[#allocation2 + $0x6f8] sm:$0xff]  ;;  %v478_v47 = vld [vmem:[#allocation2 + $0x6c0] sm:$0xff]  ;;  %v4214_v52 = vpack.c.bf16 %v476_v41, %v472_v39 }
  0x3f   :  { %4203 = vmatpush1.bf16.msra.mxu1 %v4202_v11  ;;  %4133 = vmatprep.subr.bf16.mxu0 %v4132_v12  ;;  %vm5097_vm2 = vmor %vm354_vm0, %vm355_vm1  ;;  %v4144_v53 = vpack.c.bf16 %v483_v43, %v479_v42  ;;  %v482_v54 = vld [vmem:[#allocation2 + $0x6e0] sm:$0xff]  ;;  %v480_v55 = vld [vmem:[#allocation2 + $0x6d0] sm:$0xff]  ;;  %v4216_v57 = vpack.c.bf16 %v485_v45, %v481_v44 }
  0x40   :  { %4205 = vmatprep.subr.bf16.mxu1 %v4204_v16  ;;  %v484_v56 = vld [vmem:[#allocation2 + $0x6f0] sm:$0xff]  ;;  %v487_v58 = vld [vmem:[#allocation2 + $0x708] sm:$0xff]  ;;  %v489_v60 = vld [vmem:[#allocation2 + $0x718] sm:$0xff]  ;;  %v4146_v0 = vpack.c.bf16 %v482_v54, %v478_v47 }
  0x41   :  { %v491_v59 = vld [vmem:[#allocation2 + $0x728] sm:$0xff]  ;;  %v493_v61 = vld [vmem:[#allocation2 + $0x738] sm:$0xff]  ;;  %v486_v62 = vld [vmem:[#allocation2 + $0x700] sm:$0xff]  ;;  %v4218_v6 = vpack.c.bf16 %v484_v56, %v480_v55 }
  0x42   :  { %4135 = vmatpush1.bf16.msra.mxu0 %v4134_v22  ;;  %v490_v63 = vld [vmem:[#allocation2 + $0x720] sm:$0xff]  ;;  %v488_v1 = vld [vmem:[#allocation2 + $0x710] sm:$0xff]  ;;  %v495_v3 = vld [vmem:[#allocation2 + $0x748] sm:$0xff]  ;;  %v4148_v7 = vpack.c.bf16 %v491_v59, %v487_v58  ;;  %v4220_v12 = vpack.c.bf16 %v493_v61, %v489_v60 }
  0x43   :  { %4207 = vmatpush1.bf16.msra.mxu1 %v4206_v23  ;;  %4137 = vmatprep.subr.bf16.mxu0 %v4136_v24  ;;  %v492_v2 = vld [vmem:[#allocation2 + $0x730] sm:$0xff]  ;;  %v499_v8 = vld [vmem:[#allocation2 + $0x768] sm:$0xff]  ;;  %v497_v9 = vld [vmem:[#allocation2 + $0x758] sm:$0xff]  ;;  %v4150_v23 = vpack.c.bf16 %v490_v63, %v486_v62 }
  0x44   :  { %4209 = vmatprep.subr.bf16.mxu1 %v4208_v28  ;;  %v501_v10 = vld [vmem:[#allocation2 + $0x778] sm:$0xff]  ;;  %vm5106_vm4 = vmor %vm5097_vm2, %vm357_vm3  ;;  %v5110_v13 = vld [vmem:[#allocation2 + $0x740] sm:$0xff]  ;;  %v5139_v28 = vsub.s32 %v75_v4, %v5101_v5  ;;  %v4222_v29 = vpack.c.bf16 %v492_v2, %v488_v1  ;;  %v4152_v30 = vpack.c.bf16 %v499_v8, %v495_v3 }
  0x45   :  { %v5112_v14 = vld [vmem:[#allocation2 + $0x760] sm:$0xff]  ;;  %v5114_v15 = vld [vmem:[#allocation2 + $0x750] sm:$0xff]  ;;  %v5118_v17 = vld [vmem:[#allocation2 + $0x788] sm:$0xff] }
  0x46   :  { %4139 = vmatpush1.bf16.msra.mxu0 %v4138_v34  ;;  %v5116_v16 = vld [vmem:[#allocation2 + $0x770] sm:$0xff]  ;;  %v5120_v18 = vld [vmem:[#allocation2 + $0x7a8] sm:$0xff]  ;;  %v5122_v19 = vld [vmem:[#allocation2 + $0x798] sm:$0xff] }
  0x47   :  { %4211 = vmatpush1.bf16.msra.mxu1 %v4210_v35  ;;  %4141 = vmatprep.subr.bf16.mxu0 %v4140_v36  ;;  %v5124_v20 = vld [vmem:[#allocation2 + $0x7b8] sm:$0xff]  ;;  %v5126_v21 = vld [vmem:[#allocation2 + $0x780] sm:$0xff]  ;;  %v5130_v24 = vld [vmem:[#allocation2 + $0x790] sm:$0xff]  ;;  %v4224_v35 = vpack.c.bf16 %v501_v10, %v497_v9  ;;  %v4226_v41 = vpack.c.bf16 %v5116_v16, %v5114_v15  ;;  %v4156_v42 = vpack.c.bf16 %v5120_v18, %v5118_v17  ;;  %v6074_v9 = vmov 0 }
  0x48   :  { %4213 = vmatprep.subr.bf16.mxu1 %v4212_v40  ;;  %v5128_v22 = vld [vmem:[#allocation2 + $0x7a0] sm:$0xff]  ;;  %v5132_v25 = vld [vmem:[#allocation2 + $0x7b0] sm:$0xff]  ;;  %v5134_v26 = vld [vmem:[#allocation2 + $0x7c8] sm:$0xff]  ;;  %v4154_v40 = vpack.c.bf16 %v5112_v14, %v5110_v13  ;;  %v4228_v45 = vpack.c.bf16 %v5124_v20, %v5122_v19 }
  0x49   :  { %v5136_v27 = vld [vmem:[#allocation2 + $0x7e8] sm:$0xff]  ;;  %v5141_v31 = vld [vmem:[#allocation2 + $0x7d8] sm:$0xff]  ;;  %v5145_v33 = vld [vmem:[#allocation2 + $0x7c0] sm:$0xff]  ;;  %v4230_v51 = vpack.c.bf16 %v5132_v25, %v5130_v24 }
  0x4a   :  { %4143 = vmatpush1.bf16.msra.mxu0 %v4142_v46  ;;  %v5143_v32 = vld [vmem:[#allocation2 + $0x7f8] sm:$0xff]  ;;  %v5147_v34 = vld [vmem:[#allocation2 + $0x7e0] sm:$0xff]  ;;  %v5149_v36 = vld [vmem:[#allocation2 + $0x7d0] sm:$0xff]  ;;  %v4158_v46 = vpack.c.bf16 %v5128_v22, %v5126_v21 }
  0x4b   :  { %4215 = vmatpush1.bf16.msra.mxu1 %v4214_v52  ;;  %4145 = vmatprep.subr.bf16.mxu0 %v4144_v53  ;;  %v5151_v37 = vld [vmem:[#allocation2 + $0x7f0] sm:$0xff]  ;;  %v5153_v38 = vld [vmem:[#allocation2 + $0x808] sm:$0xff]  ;;  %v5163_v43 = vld [vmem:[#allocation2 + $0x818] sm:$0xff]  ;;  %v4160_v52 = vpack.c.bf16 %v5136_v27, %v5134_v26  ;;  %v4162_v58 = vpack.c.bf16 %v5147_v34, %v5145_v33 }
  0x4c   :  { %4217 = vmatprep.subr.bf16.mxu1 %v4216_v57  ;;  %v5155_v39 = vld [vmem:[#allocation2 + $0x828] sm:$0xff]  ;;  %v42_v44 = vld [vmem:[%s6036_s0 + $0x10] sm:$0xff]  ;;  %v5185_v53 = vld [vmem:[#allocation2 + $0x838] sm:$0xff]  ;;  %v4232_v57 = vpack.c.bf16 %v5143_v32, %v5141_v31  ;;  %v4234_v62 = vpack.c.bf16 %v5151_v37, %v5149_v36 }
  0x4d   :  { %v45_v47 = vld [vmem:[%s6036_s0 + $0x28] sm:$0xff]  ;;  %v72_v49 = vcombine.high %v42_v44, %v42_v44  ;;  %v5179_v50 = vrot.slane %v42_v44, %v5139_v28  ;;  %v4982_v55 = vld [vmem:[%s6036_s0 + $0x18] ss:$8 sps:$4 sm:$0xff]   ;;  %v4984_v61 = vld [vmem:[%s6036_s0 + $0x1c] ss:$8 sps:$4 sm:$0xff]   ;;  %v4164_v63 = vpack.c.bf16 %v5155_v39, %v5153_v38  ;;  %v4236_v4 = vpack.c.bf16 %v5185_v53, %v5163_v43 }
  0x4e   :  { %4147 = vmatpush1.bf16.msra.mxu0 %v4146_v0  ;;  %v4978_v48 = vld [vmem:[%s6036_s0] ss:$8 sps:$4 sm:$0xff]   ;;  %v4980_v54 = vld [vmem:[%s6036_s0 + $0x4] ss:$8 sps:$4 sm:$0xff]   ;;  %v5194_v56 = vrot.slane %v45_v47, %v5139_v28  ;;  %v5221_v3 = vrot.slane %v4982_v55, %v5139_v28  ;;  %v107_v8 = vcombine.high %v45_v47, %v45_v47  ;;  %vm5234_vm6 = vmor %vm5106_vm4, %vm359_vm5  ;;  %v5257_v16 = vrot.slane %v4984_v61, %v5139_v28 }
  0x4f   :  { %4219 = vmatpush1.bf16.msra.mxu1 %v4218_v6  ;;  %4149 = vmatprep.subr.bf16.mxu0 %v4148_v7  ;;  %v5201_v59 = vrot.slane %v4978_v48, %v5139_v28  ;;  %v5204_v60 = vrot.slane %v72_v49, %v5139_v28  ;;  %v5213_v0 = vld [vmem:[#allocation2 + $0x800] sm:$0xff]  ;;  %v5218_v2 = vrot.slane %v4980_v54, %v5139_v28  ;;  %v6075_v9 = vsel %vm5234_vm6, 4294967295, %v6074_v9  ;;  %v5238_v10 = vld [vmem:[#allocation2 + $0x810] sm:$0xff]  ;;  %v5263_v20 = vld [vmem:[#allocation2 + $0x848] sm:$0xff] }
  0x50   :  { %4221 = vmatprep.subr.bf16.mxu1 %v4220_v12  ;;  %v5215_v1 = vld [vmem:[#allocation2 + $0x820] sm:$0xff]  ;;  %6076 = vst [vmem:[#allocation9_spill] sm:$0xff] %v6075_v9  ;;  %v5240_v12 = vld [vmem:[#allocation2 + $0x830] sm:$0xff]  ;;  %v5252_v11 = vcombine.low %v5221_v3, %v5194_v56  ;;  %v5265_v21 = vld [vmem:[#allocation2 + $0x868] sm:$0xff] }
  0x51   :  { %v101_v6 = vcombine.low %v5201_v59, %v5179_v50  ;;  %v5229_v7 = vcombine.high %v5201_v59, %v5179_v50  ;;  %v5244_v13 = vcombine.low %v5218_v2, %v5204_v60  ;;  %v5248_v14 = vcombine.high %v5218_v2, %v5204_v60  ;;  %v4986_v19 = vld [vmem:[%s6036_s0 + $0x48] ss:$8 sps:$4 sm:$0xff]   ;;  %v51_v26 = vld [vmem:[%s6036_s0 + $0x58] sm:$0xff]  ;;  %v5354_v37 = vld [vmem:[#allocation2 + $0x880] sm:$0xff] }
  0x52   :  { %4151 = vmatpush1.bf16.msra.mxu0 %v4150_v23  ;;  %v4166_v15 = vpack.c.bf16 %v5215_v1, %v5213_v0  ;;  %v372_v24 = vrot.slane %v5252_v11, 7  ;;  %v5275_v27 = vld [vmem:[#allocation2 + $0x858] sm:$0xff]  ;;  %v4168_v47 = vpack.c.bf16 %v5265_v21, %v5263_v20  ;;  %v5300_v48 = vld [vmem:[#allocation2 + $0x850] sm:$0xff]  ;;  %v141_v54 = vcombine.high %v51_v26, %v51_v26  ;;  %v5356_v38 = vld [vmem:[#allocation2 + $0x8a0] sm:$0xff] }
  0x53   :  { %4223 = vmatpush1.bf16.msra.mxu1 %v4222_v29  ;;  %4153 = vmatprep.subr.bf16.mxu0 %v4152_v30  ;;  %v4030_v17 = vrot.slane %v101_v6, 9  ;;  %v363_v18 = vrot.slane %v5229_v7, 7  ;;  %v366_v22 = vrot.slane %v5244_v13, 7  ;;  %v369_v23 = vrot.slane %v5248_v14, 7  ;;  %v5277_v29 = vld [vmem:[#allocation2 + $0x878] sm:$0xff]  ;;  %v5302_v49 = vld [vmem:[#allocation2 + $0x870] sm:$0xff] }
  0x54   :  { %4225 = vmatprep.subr.bf16.mxu1 %v4224_v35  ;;  %v5280_v30 = vrot.slane %v107_v8, %v5139_v28  ;;  %v5312_v55 = vrot.slane %v4986_v19, %v5139_v28  ;;  %v5336_v20 = vrot.slane %v51_v26, %v5139_v28  ;;  %v4242_v34 = vpack.c.bf16 %v5302_v49, %v5300_v48  ;;  %v537_v21 = vld [vmem:[#allocation2 + $0x898] sm:$0xff]  ;;  %v540_v0 = vld [vmem:[#allocation2 + $0x8b0] sm:$0xff]  ;;  %v220_v5 = vld [vmem:[#allocation2 + $0x60] sm:$0xff] }
  0x55   :  { %v5284_v31 = vsel %vm5234_vm6, %v4030_v17, %v363_v18  ;;  %v365_v32 = vrot.slane %v363_v18, 2  ;;  %v368_v44 = vrot.slane %v366_v22, 2  ;;  %v535_v17 = vld [vmem:[#allocation2 + $0x888] sm:$0xff]  ;;  %v5391_v48 = vld [vmem:[%s6036_s0 + $0x70] sm:$0xff] }
  0x56   :  { %4155 = vmatpush1.bf16.msra.mxu0 %v4154_v40  ;;  %v4238_v40 = vpack.c.bf16 %v5240_v12, %v5238_v10  ;;  %v374_v10 = vrot.slane %v372_v24, 2  ;;  %v539_v18 = vld [vmem:[#allocation2 + $0x8a8] sm:$0xff]  ;;  %v5333_v19 = vcombine.low %v5257_v16, %v5280_v30  ;;  %v5368_v43 = vcombine.high %v5312_v55, %v5336_v20  ;;  %v218_v9 = vld [vmem:[#allocation2 + $0x50] sm:$0xff] }
  0x57   :  { %4227 = vmatpush1.bf16.msra.mxu1 %v4226_v41  ;;  %4157 = vmatprep.subr.bf16.mxu0 %v4156_v42  ;;  %v5290_v41 = vld [vmem:[#allocation2 + $0x840] sm:$0xff]  ;;  %v5318_v61 = vsel %vm5234_vm6, %v368_v44, %v369_v23  ;;  %v352_v53 = vcombine.high %v5257_v16, %v5280_v30  ;;  %v536_v44 = vld [vmem:[#allocation2 + $0x890] sm:$0xff] }
  0x58   :  { %4229 = vmatprep.subr.bf16.mxu1 %v4228_v45  ;;  %v5292_v42 = vld [vmem:[#allocation2 + $0x860] sm:$0xff]  ;;  %v371_v45 = vrot.slane %v369_v23, 2 }
  0x59   :  { %v4170_v33 = vpack.c.bf16 %v5292_v42, %v5290_v41  ;;  %v4990_v41 = vld [vmem:[%s6036_s0 + $0x60] ss:$8 sps:$4 sm:$0xff]   ;;  %v4174_v42 = vpack.c.bf16 %v5356_v38, %v5354_v37  ;;  %v5385_v1 = vrot.slane %v352_v53, 7  ;;  %v176_v38 = vcombine.high %v5391_v48, %v5391_v48 }
  0x5a   :  { %4159 = vmatpush1.bf16.msra.mxu0 %v4158_v46  ;;  %v5296_v46 = vcombine.high %v5221_v3, %v5194_v56  ;;  %v5322_v6 = vsel %vm5234_vm6, %v371_v45, %v372_v24  ;;  %v4172_v24 = vpack.c.bf16 %v539_v18, %v535_v17  ;;  %v385_v45 = vrot.slane %v5368_v43, 7  ;;  %v547_v17 = vld [vmem:[#allocation2 + $0x8e8] sm:$0xff]  ;;  %v542_v53 = vld [vmem:[#allocation2 + $0x8c0] sm:$0xff] }
  0x5b   :  { %4231 = vmatpush1.bf16.msra.mxu1 %v4230_v51  ;;  %4161 = vmatprep.subr.bf16.mxu0 %v4160_v52  ;;  %v5306_v51 = vsel %vm5234_vm6, %v365_v32, %v366_v22  ;;  %v4988_v52 = vld [vmem:[%s6036_s0 + $0x4c] ss:$8 sps:$4 sm:$0xff]   ;;  %6077 = vst [vmem:[#allocation10_spill] sm:$0xff] %v5322_v6  ;;  %v552_v12 = vcombine.low %v5318_v61, %v5322_v6  ;;  %v541_v22 = vld [vmem:[#allocation2 + $0x8b8] sm:$0xff]  ;;  %v378_v32 = vrot.slane %v5333_v19, 7  ;;  %6078 = vst [vmem:[#allocation11_spill] sm:$0xff] %v5385_v1 }
  0x5c   :  { %4233 = vmatprep.subr.bf16.mxu1 %v4232_v57  ;;  %v4240_v57 = vpack.c.bf16 %v5277_v29, %v5275_v27  ;;  %v550_v8 = vcombine.low %v5284_v31, %v5306_v51  ;;  %v375_v23 = vrot.slane %v5296_v46, 7  ;;  %v5359_v39 = vrot.slane %v4988_v52, %v5139_v28 }
  0x5d   :  { %v574_v36 = vrot.slane %v552_v12, %v5139_v28  ;;  %v4244_v27 = vpack.c.bf16 %v541_v22, %v537_v21  ;;  %v543_v12 = vld [vmem:[#allocation2 + $0x8c8] sm:$0xff]  ;;  %v4246_v18 = vpack.c.bf16 %v540_v0, %v536_v44  ;;  %v5417_v22 = vrot.slane %v4990_v41, %v5139_v28 }
  0x5e   :  { %4163 = vmatpush1.bf16.msra.mxu0 %v4162_v58  ;;  %v560_v58 = vrot.slane %v550_v8, %v5139_v28  ;;  %v5377_v29 = vsel %vm5234_vm6, %v374_v10, %v375_v23  ;;  %v4992_v44 = vld [vmem:[%s6036_s0 + $0x64] ss:$8 sps:$4 sm:$0xff]  }
  0x5f   :  { %4235 = vmatpush1.bf16.msra.mxu1 %v4234_v62  ;;  %4165 = vmatprep.subr.bf16.mxu0 %v4164_v63  ;;  %v5362_v62 = vrot.slane %v141_v54, %v5139_v28  ;;  %v170_v63 = vcombine.low %v5312_v55, %v5336_v20 }
  0x60   :  { %4237 = vmatprep.subr.bf16.mxu1 %v4236_v4  ;;  %v377_v4 = vrot.slane %v375_v23, 2  ;;  %v583_v26 = vcombine.high %v560_v58, %v574_v36  ;;  %v582_v54 = vcombine.low %v560_v58, %v574_v36  ;;  %v5421_v58 = vrot.slane %v5391_v48, %v5139_v28  ;;  %v545_v23 = vld [vmem:[#allocation2 + $0x8d8] sm:$0xff] }
  0x61   :  { %v5399_v49 = vcombine.low %v5359_v39, %v5362_v62  ;;  %v5403_v52 = vcombine.high %v5359_v39, %v5362_v62  ;;  %v549_v36 = vld [vmem:[#allocation2 + $0x8f8] sm:$0xff] }
  0x62   :  { %4167 = vmatpush1.bf16.msra.mxu0 %v4166_v15  ;;  %v4031_v15 = vrot.slane %v170_v63, 9  ;;  %753 = vmatprep.mubr.f32.mxu0 %v583_v26 }
  0x63   :  { %4239 = vmatpush1.bf16.msra.mxu1 %v4238_v40  ;;  %4169 = vmatprep.subr.bf16.mxu0 %v4168_v47  ;;  %v5395_v40 = vsel %vm5234_vm6, %v377_v4, %v378_v32  ;;  %v380_v47 = vrot.slane %v378_v32, 2  ;;  %v388_v63 = vrot.slane %v5399_v49, 7  ;;  %v546_v4 = vld [vmem:[#allocation2 + $0x8e0] sm:$0xff]  ;;  %v4176_v32 = vpack.c.bf16 %v547_v17, %v543_v12  ;;  %v544_v12 = vld [vmem:[#allocation2 + $0x8d0] sm:$0xff] }
  0x64   :  { %4241 = vmatprep.subr.bf16.mxu1 %v4240_v57  ;;  %6079 = vst [vmem:[#allocation12_spill] sm:$0xff] %v5395_v40  ;;  %931 = vmatprep.mubr.f32.mxu1 %v583_v26  ;;  %v5407_v8 = vsel %vm5234_vm6, %v4031_v15, %v385_v45  ;;  %v387_v57 = vrot.slane %v385_v45, 2  ;;  %v585_v10 = vcombine.low %v5377_v29, %v5395_v40  ;;  %v548_v17 = vld [vmem:[#allocation2 + $0x8f0] sm:$0xff] }
  0x65   :  { %v5414_v21 = vsel %vm5234_vm6, %v380_v47, %v5385_v1  ;;  %v5431_v26 = vcombine.low %v5417_v22, %v5421_v58  ;;  %v390_v0 = vrot.slane %v388_v63, 2  ;;  %v4248_v15 = vpack.c.bf16 %v549_v36, %v545_v23  ;;  %v213_v23 = vld [vmem:[#allocation2 + $0x28] sm:$0xff]  ;;  %v222_v1 = vld [vmem:[#allocation2 + $0x70] sm:$0xff] }
  0x66   :  { %4171 = vmatpush1.bf16.msra.mxu0 %v4170_v33  ;;  %6080 = vst [vmem:[#allocation13_spill] sm:$0xff] %v5414_v21  ;;  %v587_v33 = vcombine.low %v5414_v21, %v5407_v8  ;;  %v595_v37 = vrot.slane %v585_v10, %v5139_v28  ;;  %v4178_v10 = vpack.c.bf16 %v546_v4, %v542_v53  ;;  %v211_v53 = vld [vmem:[#allocation2 + $0x18] sm:$0xff] }
  0x67   :  { %4243 = vmatpush1.bf16.msra.mxu1 %v4242_v34  ;;  %4173 = vmatprep.subr.bf16.mxu0 %v4172_v24  ;;  %v5435_v34 = vcombine.high %v5417_v22, %v5421_v58  ;;  %v391_v24 = vrot.slane %v5403_v52, 7  ;;  %v394_v48 = vrot.slane %v5431_v26, 7  ;;  %v215_v4 = vld [vmem:[#allocation2 + $0x38] sm:$0xff] }
  0x68   :  { %4245 = vmatprep.subr.bf16.mxu1 %v4244_v27  ;;  %v609_v41 = vrot.slane %v587_v33, %v5139_v28  ;;  %v5444_v27 = vsel %vm5234_vm6, %v387_v57, %v388_v63  ;;  %v209_v57 = vld [vmem:[#allocation2 + $0x8] sm:$0xff]  ;;  %v5462_v63 = vrot.slane %v176_v38, %v5139_v28 }
  0x69   :  { %754 = vmatmul.mubr.f32.vlgmr.msra.gmra.mrb[0].mxu0 %v582_v54  ;;  %6081 = vst [vmem:[#allocation14_spill] sm:$0xff] %v5444_v27  ;;  %v393_v45 = vrot.slane %v391_v24, 2  ;;  %v397_v47 = vrot.slane %v5435_v34, 7  ;;  %v5450_v25 = vsel %vm5234_vm6, %v390_v0, %v391_v24 }
  0x6a   :  { %932 = vmatmul.mubr.f32.vlgmr.msra.gmra.mrb[0].mxu1 %v582_v54  ;;  %4175 = vmatpush1.bf16.msra.mxu0 %v4174_v42  ;;  %v618_v33 = vcombine.high %v595_v37, %v609_v41  ;;  %v617_v35 = vcombine.low %v595_v37, %v609_v41  ;;  %6082 = vst [vmem:[#allocation15_spill] sm:$0xff] %v5450_v25  ;;  %v396_v54 = vrot.slane %v394_v48, 2  ;;  %6084 = vst [vmem:[#allocation17_spill] sm:$0xff] %v5462_v63 }
  0x6b   :  { %4247 = vmatpush1.bf16.msra.mxu1 %v4246_v18  ;;  %4177 = vmatprep.subr.bf16.mxu0 %v4176_v32  ;;  %v5454_v42 = vsel %vm5234_vm6, %v393_v45, %v394_v48  ;;  %v620_v36 = vcombine.low %v5444_v27, %v5450_v25  ;;  %v4250_v18 = vpack.c.bf16 %v548_v17, %v544_v12  ;;  %v399_v0 = vrot.slane %v397_v47, 2 }
  0x6c   :  { %6083 = vst [vmem:[#allocation16_spill] sm:$0xff] %v5454_v42  ;;  %4249 = vmatprep.subr.bf16.mxu1 %v4248_v15  ;;  %759 = vmatprep.mubr.f32.mxu0 %v618_v33  ;;  %v5459_v37 = vrot.slane %v4992_v44, %v5139_v28  ;;  %v5466_v24 = vsel %vm5234_vm6, %v396_v54, %v397_v47 }
  0x6d   :  { %937 = vmatprep.mubr.f32.mxu1 %v618_v33  ;;  %760 = vmatmul.mubr.f32.gmra.mrb[2].mxu0 %v617_v35  ;;  %6085 = vst [vmem:[#allocation18_spill] sm:$0xff] %v5466_v24  ;;  %v630_v32 = vrot.slane %v620_v36, %v5139_v28  ;;  %v4252_v41 = vpack.c.bf16 %v213_v23, %v209_v57 }
  0x6e   :  { %938 = vmatmul.mubr.f32.gmra.mrb[2].mxu1 %v617_v35  ;;  %v622_v15 = vcombine.low %v5454_v42, %v5466_v24  ;;  %4179 = vmatpush1.bf16.msra.mxu0 %v4178_v10  ;;  %v5473_v38 = vcombine.low %v5459_v37, %v5462_v63  ;;  %v5477_v35 = vcombine.high %v5459_v37, %v5462_v63  ;;  %v227_v63 = vld [vmem:[#allocation2 + $0x98] sm:$0xff] }
  0x6f   :  { %4251 = vmatpush1.bf16.msra.mxu1 %v4250_v18  ;;  %4253 = vmatprep.subr.bf16.mxu0 %v4252_v41  ;;  %v4324_v44 = vpack.c.bf16 %v215_v4, %v211_v53  ;;  %v551_v57 = vcombine.high %v5284_v31, %v5306_v51  ;;  %v553_v23 = vcombine.high %v5318_v61, %v5322_v6  ;;  %v212_v41 = vld [vmem:[#allocation2 + $0x20] sm:$0xff]  ;;  %v243_v6 = vld [vmem:[#allocation2 + $0x118] sm:$0xff] }
  0x70   :  { %6086 = vst [vmem:[#allocation19_spill] sm:$0xff] %v5477_v35  ;;  %v644_v45 = vrot.slane %v622_v15, %v5139_v28  ;;  %v400_v48 = vrot.slane %v5473_v38, 7  ;;  %v6040_v47 = vrot.slane %v5477_v35, 7  ;;  %v214_v15 = vld [vmem:[#allocation2 + $0x30] sm:$0xff] }
  0x71   :  { %4325 = vmatprep.subr.bf16.mxu1 %v4324_v44  ;;  %v567_v31 = vrot.slane %v551_v57, %v5139_v28  ;;  %v581_v53 = vrot.slane %v553_v23, %v5139_v28  ;;  %v217_v44 = vld [vmem:[#allocation2 + $0x48] sm:$0xff]  ;;  %v6050_v57 = vmov 0.0  }
  0x72   :  { %v653_v12 = vcombine.high %v630_v32, %v644_v45  ;;  %v652_v10 = vcombine.low %v630_v32, %v644_v45  ;;  %v5484_v17 = vsel %vm5234_vm6, %v399_v0, %v400_v48  ;;  %v402_v33 = vrot.slane %v400_v48, 2  ;;  %v208_v32 = vld [vmem:[#allocation2] sm:$0xff]  ;;  %v210_v0 = vld [vmem:[#allocation2 + $0x10] sm:$0xff]  ;;  %v221_v45 = vld [vmem:[#allocation2 + $0x68] sm:$0xff] }
  0x73   :  { %v219_v48 = vld [vmem:[#allocation2 + $0x58] sm:$0xff]  ;;  %v4254_v23 = vpack.c.bf16 %v212_v41, %v208_v32  ;;  %v4330_v41 = vpack.c.bf16 %v222_v1, %v218_v9  ;;  %v6088_v1 = vmov 0.0  }
  0x74   :  { %765 = vmatprep.mubr.f32.mxu0 %v653_v12  ;;  %943 = vmatprep.mubr.f32.mxu1 %v653_v12  ;;  %v5494_v54 = vsel %vm5234_vm6, %v402_v33, %v6040_v47  ;;  %v223_v12 = vld [vmem:[#allocation2 + $0x78] sm:$0xff]  ;;  %v588_v33 = vcombine.high %v5414_v21, %v5407_v8  ;;  %v216_v47 = vld [vmem:[#allocation2 + $0x40] sm:$0xff]  ;;  %v230_v21 = vld [vmem:[#allocation2 + $0xb0] sm:$0xff] }
  0x75   :  { %6087 = vst [vmem:[#allocation20_spill] sm:$0xff] %v5494_v54  ;;  %766 = vmatmul.mubr.f32.gmra.mrb[4].mxu0 %v652_v10  ;;  %944 = vmatmul.mubr.f32.gmra.mrb[4].mxu1 %v652_v10  ;;  %v655_v36 = vcombine.low %v5484_v17, %v5494_v54  ;;  %v584_v10 = vcombine.low %v567_v31, %v581_v53  ;;  %v225_v31 = vld [vmem:[#allocation2 + $0x88] sm:$0xff]  ;;  %v231_v8 = vld [vmem:[#allocation2 + $0xb8] sm:$0xff] }
  0x76   :  { %v4328_v35 = vpack.c.bf16 %v223_v12, %v219_v48  ;;  %v229_v53 = vld [vmem:[#allocation2 + $0xa8] sm:$0xff]  ;;  %v616_v32 = vrot.slane %v588_v33, %v5139_v28  ;;  %v4332_v12 = vpack.c.bf16 %v231_v8, %v227_v63  ;;  %v235_v33 = vld [vmem:[#allocation2 + $0xd8] sm:$0xff] }
  0x77   :  { %v663_v18 = vrot.slane %v655_v36, %v5139_v28  ;;  %v4326_v36 = vpack.c.bf16 %v214_v15, %v210_v0  ;;  %v224_v0 = vld [vmem:[#allocation2 + $0x80] sm:$0xff]  ;;  %v4260_v48 = vpack.c.bf16 %v229_v53, %v225_v31  ;;  %v239_v9 = vld [vmem:[#allocation2 + $0xf8] sm:$0xff] }
  0x78   :  { %v228_v15 = vld [vmem:[#allocation2 + $0xa0] sm:$0xff] }
  0x79   :  { %v671_v4 = vcombine.high %v663_v18, %v663_v18  ;;  %v4262_v63 = vpack.c.bf16 %v228_v15, %v224_v0  ;;  %v232_v31 = vld [vmem:[#allocation2 + $0xc0] sm:$0xff] }
  0x7a   :  { %v236_v53 = vld [vmem:[#allocation2 + $0xe0] sm:$0xff] }
  0x7b   :  { %771 = vmatprep.mubr.f32.mxu0 %v671_v4  ;;  %949 = vmatprep.mubr.f32.mxu1 %v671_v4  ;;  %v4256_v4 = vpack.c.bf16 %v221_v45, %v217_v44  ;;  %v621_v45 = vcombine.high %v5444_v27, %v5450_v25  ;;  %v238_v25 = vld [vmem:[#allocation2 + $0xf0] sm:$0xff]  ;;  %v245_v27 = vld [vmem:[#allocation2 + $0x128] sm:$0xff]  ;;  %v4266_v0 = vpack.c.bf16 %v236_v53, %v232_v31 }
  0x7c   :  { %772 = vmatmul.mubr.f32.gmra.mrb[6].mxu0 %v663_v18  ;;  %950 = vmatmul.mubr.f32.gmra.mrb[6].mxu1 %v663_v18  ;;  %v586_v18 = vcombine.high %v5377_v29, %v5395_v40  ;;  %v226_v40 = vld [vmem:[#allocation2 + $0x90] sm:$0xff] }
  0x7d   :  { %842 = vmatprep.mubr.f32.mxu0 %v6050_v57  ;;  %1020 = vmatprep.mubr.f32.mxu1 %v6050_v57  ;;  %v4258_v57 = vpack.c.bf16 %v220_v5, %v216_v47  ;;  %v623_v5 = vcombine.high %v5454_v42, %v5466_v24  ;;  %v237_v47 = vld [vmem:[#allocation2 + $0xe8] sm:$0xff]  ;;  %v234_v24 = vld [vmem:[#allocation2 + $0xd0] sm:$0xff] }
  0x7e   :  { %v602_v44 = vrot.slane %v586_v18, %v5139_v28  ;;  %v4336_v18 = vpack.c.bf16 %v239_v9, %v235_v33  ;;  %v241_v42 = vld [vmem:[#allocation2 + $0x108] sm:$0xff]  ;;  %v4338_v15 = vpack.c.bf16 %v238_v25, %v234_v24  ;;  %v251_v9 = vld [vmem:[#allocation2 + $0x158] sm:$0xff]  ;;  %v248_v24 = vld [vmem:[#allocation2 + $0x140] sm:$0xff] }
  0x7f   :  { %v253_v33 = vld [vmem:[#allocation2 + $0x168] sm:$0xff]  ;;  %v250_v31 = vld [vmem:[#allocation2 + $0x150] sm:$0xff] }
  0x80   :  { %4032 = vmatmul.mubr.msk.f32.vlgmr.msra.gmra.mrb[0].mxu0 %vm680_vm7, %v584_v10  ;;  %4036 = vmatmul.mubr.msk.f32.vlgmr.msra.gmra.mrb[0].mxu1 %vm680_vm7, %v584_v10  ;;  %v233_v10 = vld [vmem:[#allocation2 + $0xc8] sm:$0xff]  ;;  %v254_v53 = vld [vmem:[#allocation2 + $0x170] sm:$0xff] }
  0x81   :  { %4255 = vmatpush1.bf16.msra.mxu0 %v4254_v23  ;;  %4327 = vmatpush1.bf16.msra.mxu1 %v4326_v36  ;;  %v619_v23 = vcombine.low %v602_v44, %v616_v32  ;;  %v637_v36 = vrot.slane %v621_v45, %v5139_v28  ;;  %v4264_v8 = vpack.c.bf16 %v237_v47, %v233_v10  ;;  %v247_v32 = vld [vmem:[#allocation2 + $0x138] sm:$0xff]  ;;  %v240_v44 = vld [vmem:[#allocation2 + $0x100] sm:$0xff]  ;;  %v242_v10 = vld [vmem:[#allocation2 + $0x110] sm:$0xff] }
  0x82   :  { %4257 = vmatprep.subr.bf16.mxu0 %v4256_v4  ;;  %4329 = vmatprep.subr.bf16.mxu1 %v4328_v35  ;;  %v651_v35 = vrot.slane %v623_v5, %v5139_v28  ;;  %v4334_v4 = vpack.c.bf16 %v230_v21, %v226_v40  ;;  %v656_v40 = vcombine.high %v5484_v17, %v5494_v54  ;;  %v244_v45 = vld [vmem:[#allocation2 + $0x120] sm:$0xff]  ;;  %v246_v5 = vld [vmem:[#allocation2 + $0x130] sm:$0xff]  ;;  %v249_v47 = vld [vmem:[#allocation2 + $0x148] sm:$0xff] }
  0x83   :  { %848 = vmatprep.mubr.f32.mxu0 %v6088_v1  ;;  %1026 = vmatprep.mubr.f32.mxu1 %v6088_v1  ;;  %v5527_v21 = vrot.slane %v5201_v59, %v5139_v28  ;;  %v295_v59 = vld [vmem:[#allocation2 + $0x2b8] sm:$0xff] }
  0x84   :  { %4033 = vmatmul.mubr.msk.f32.gmra.mrb[2].mxu0 %vm680_vm7, %v619_v23  ;;  %4037 = vmatmul.mubr.msk.f32.gmra.mrb[2].mxu1 %vm680_vm7, %v619_v23  ;;  %v255_v23 = vld [vmem:[#allocation2 + $0x178] sm:$0xff]  ;;  %v670_v25 = vrot.slane %v656_v40, %v5139_v28 }
  0x85   :  { %4259 = vmatpush1.bf16.msra.mxu0 %v4258_v57  ;;  %4331 = vmatpush1.bf16.msra.mxu1 %v4330_v41  ;;  %v654_v57 = vcombine.low %v637_v36, %v651_v35  ;;  %v5531_v41 = vrot.slane %v5218_v2, %v5139_v28  ;;  %v252_v36 = vld [vmem:[#allocation2 + $0x160] sm:$0xff]  ;;  %v1062_v35 = vrot.slane %v5179_v50, %v5139_v28  ;;  %v263_v40 = vld [vmem:[#allocation2 + $0x1b8] sm:$0xff] }
  0x86   :  { %4261 = vmatprep.subr.bf16.mxu0 %v4260_v48  ;;  %4333 = vmatprep.subr.bf16.mxu1 %v4332_v12  ;;  %v4268_v48 = vpack.c.bf16 %v245_v27, %v241_v42  ;;  %v4340_v12 = vpack.c.bf16 %v247_v32, %v243_v6  ;;  %v4270_v27 = vpack.c.bf16 %v244_v45, %v240_v44  ;;  %v261_v32 = vld [vmem:[#allocation2 + $0x1a8] sm:$0xff]  ;;  %v256_v45 = vld [vmem:[#allocation2 + $0x180] sm:$0xff] }
  0x87   :  { %854 = vmatprep.mubr.f32.mxu0 %v6088_v1  ;;  %1032 = vmatprep.mubr.f32.mxu1 %v6088_v1  ;;  %v1078_v6 = vcombine.high %v5527_v21, %v5531_v41  ;;  %v4342_v42 = vpack.c.bf16 %v246_v5, %v242_v10  ;;  %v4346_v44 = vpack.c.bf16 %v254_v53, %v250_v31  ;;  %v266_v31 = vld [vmem:[#allocation2 + $0x1d0] sm:$0xff] }
  0x88   :  { %4034 = vmatmul.mubr.msk.f32.gmra.mrb[4].mxu0 %vm680_vm7, %v654_v57  ;;  %4038 = vmatmul.mubr.msk.f32.gmra.mrb[4].mxu1 %vm680_vm7, %v654_v57  ;;  %v259_v57 = vld [vmem:[#allocation2 + $0x198] sm:$0xff]  ;;  %v270_v53 = vld [vmem:[#allocation2 + $0x1f0] sm:$0xff] }
  0x89   :  { %4263 = vmatpush1.bf16.msra.mxu0 %v4262_v63  ;;  %4335 = vmatpush1.bf16.msra.mxu1 %v4334_v4  ;;  %v4272_v63 = vpack.c.bf16 %v253_v33, %v249_v47  ;;  %v4344_v4 = vpack.c.bf16 %v255_v23, %v251_v9  ;;  %v4348_v5 = vpack.c.bf16 %v263_v40, %v259_v57  ;;  %v258_v47 = vld [vmem:[#allocation2 + $0x190] sm:$0xff]  ;;  %v265_v9 = vld [vmem:[#allocation2 + $0x1c8] sm:$0xff]  ;;  %v275_v57 = vld [vmem:[#allocation2 + $0x218] sm:$0xff] }
  0x8a   :  { %4265 = vmatprep.subr.bf16.mxu0 %v4264_v8  ;;  %4337 = vmatprep.subr.bf16.mxu1 %v4336_v18  ;;  %v257_v8 = vld [vmem:[#allocation2 + $0x188] sm:$0xff]  ;;  %v262_v33 = vld [vmem:[#allocation2 + $0x1b0] sm:$0xff]  ;;  %v271_v18 = vld [vmem:[#allocation2 + $0x1f8] sm:$0xff] }
  0x8b   :  { %860 = vmatprep.mubr.f32.mxu0 %v6088_v1  ;;  %1038 = vmatprep.mubr.f32.mxu1 %v6088_v1  ;;  %v4276_v10 = vpack.c.bf16 %v261_v32, %v257_v8  ;;  %v269_v23 = vld [vmem:[#allocation2 + $0x1e8] sm:$0xff]  ;;  %v279_v40 = vld [vmem:[#allocation2 + $0x238] sm:$0xff] }
  0x8c   :  { %4035 = vmatmul.mubr.msk.f32.gmra.mrb[6].mxu0 %vm680_vm7, %v670_v25  ;;  %4039 = vmatmul.mubr.msk.f32.gmra.mrb[6].mxu1 %vm680_vm7, %v670_v25  ;;  %v267_v25 = vld [vmem:[#allocation2 + $0x1d8] sm:$0xff]  ;;  %v273_v8 = vld [vmem:[#allocation2 + $0x208] sm:$0xff] }
  0x8d   :  { %4267 = vmatpush1.bf16.msra.mxu0 %v4266_v0  ;;  %4339 = vmatpush1.bf16.msra.mxu1 %v4338_v15  ;;  %v1076_v0 = vrot.slane %v5204_v60, %v5139_v28  ;;  %v4274_v15 = vpack.c.bf16 %v252_v36, %v248_v24  ;;  %v264_v24 = vld [vmem:[#allocation2 + $0x1c0] sm:$0xff]  ;;  %v277_v32 = vld [vmem:[#allocation2 + $0x228] sm:$0xff] }
  0x8e   :  { %4269 = vmatprep.subr.bf16.mxu0 %v4268_v48  ;;  %4341 = vmatprep.subr.bf16.mxu1 %v4340_v12  ;;  %v260_v48 = vld [vmem:[#allocation2 + $0x1a0] sm:$0xff] }
  0x8f   :  { %1247 = vmatprep.mubr.f32.mxu0 %v1078_v6  ;;  %1425 = vmatprep.mubr.f32.mxu1 %v1078_v6  ;;  %v5550_v12 = vcombine.low %v1062_v35, %v1076_v0  ;;  %v5554_v6 = vrot.slane %v5194_v56, %v5139_v28  ;;  %v268_v36 = vld [vmem:[#allocation2 + $0x1e0] sm:$0xff] }
  0x91   :  { %4271 = vmatpush1.bf16.msra.mxu0 %v4270_v27  ;;  %4343 = vmatpush1.bf16.msra.mxu1 %v4342_v42  ;;  %v4278_v27 = vpack.c.bf16 %v260_v48, %v256_v45  ;;  %v4350_v42 = vpack.c.bf16 %v262_v33, %v258_v47  ;;  %v5557_v35 = vcombine.low %v1076_v0, %v5554_v6  ;;  %v272_v45 = vld [vmem:[#allocation2 + $0x200] sm:$0xff]  ;;  %v281_v33 = vld [vmem:[#allocation2 + $0x248] sm:$0xff] }
  0x92   :  { %4273 = vmatprep.subr.bf16.mxu0 %v4272_v63  ;;  %4345 = vmatprep.subr.bf16.mxu1 %v4344_v4  ;;  %v4280_v63 = vpack.c.bf16 %v269_v23, %v265_v9  ;;  %v4352_v4 = vpack.c.bf16 %v271_v18, %v267_v25  ;;  %v276_v48 = vld [vmem:[#allocation2 + $0x220] sm:$0xff]  ;;  %v4284_v0 = vpack.c.bf16 %v277_v32, %v273_v8  ;;  %v285_v18 = vld [vmem:[#allocation2 + $0x268] sm:$0xff]  ;;  %v283_v9 = vld [vmem:[#allocation2 + $0x258] sm:$0xff] }
  0x93   :  { %6089 = vst [vmem:[#allocation21_spill] sm:$0xff] %v5557_v35  ;;  %v4356_v47 = vpack.c.bf16 %v279_v40, %v275_v57  ;;  %v287_v23 = vld [vmem:[#allocation2 + $0x278] sm:$0xff]  ;;  %v4060_v25 = vcombine.low %v5296_v46, %v5257_v16  ;;  %v289_v32 = vld [vmem:[#allocation2 + $0x288] sm:$0xff] }
  0x94   :  { %v4360_v8 = vpack.c.bf16 %v287_v23, %v283_v9  ;;  %v293_v40 = vld [vmem:[#allocation2 + $0x2a8] sm:$0xff]  ;;  %v291_v46 = vld [vmem:[#allocation2 + $0x298] sm:$0xff]  ;;  %v294_v9 = vld [vmem:[#allocation2 + $0x2b0] sm:$0xff] }
  0x95   :  { %4275 = vmatpush1.bf16.msra.mxu0 %v4274_v15  ;;  %4347 = vmatpush1.bf16.msra.mxu1 %v4346_v44  ;;  %v4282_v15 = vpack.c.bf16 %v268_v36, %v264_v24  ;;  %v4354_v44 = vpack.c.bf16 %v270_v53, %v266_v31  ;;  %v4286_v24 = vpack.c.bf16 %v276_v48, %v272_v45  ;;  %v286_v31 = vld [vmem:[#allocation2 + $0x270] sm:$0xff]  ;;  %v292_v45 = vld [vmem:[#allocation2 + $0x2a0] sm:$0xff]  ;;  %v297_v23 = vld [vmem:[#allocation2 + $0x2c8] sm:$0xff] }
  0x96   :  { %4277 = vmatprep.subr.bf16.mxu0 %v4276_v10  ;;  %4349 = vmatprep.subr.bf16.mxu1 %v4348_v5  ;;  %v274_v10 = vld [vmem:[#allocation2 + $0x210] sm:$0xff]  ;;  %v4288_v53 = vpack.c.bf16 %v285_v18, %v281_v33  ;;  %v1729_v57 = vrot.slane %v4060_v25, %v5139_v28  ;;  %v4364_v33 = vpack.c.bf16 %v295_v59, %v291_v46  ;;  %v301_v25 = vld [vmem:[#allocation2 + $0x2e8] sm:$0xff]  ;;  %v311_v46 = vld [vmem:[#allocation2 + $0x338] sm:$0xff] }
  0x97   :  { %v278_v5 = vld [vmem:[#allocation2 + $0x230] sm:$0xff]  ;;  %v4296_v59 = vpack.c.bf16 %v301_v25, %v297_v23 }
  0x98   :  { %v4358_v36 = vpack.c.bf16 %v278_v5, %v274_v10  ;;  %v4292_v5 = vpack.c.bf16 %v293_v40, %v289_v32  ;;  %v290_v18 = vld [vmem:[#allocation2 + $0x290] sm:$0xff]  ;;  %v305_v32 = vld [vmem:[#allocation2 + $0x308] sm:$0xff]  ;;  %v307_v40 = vld [vmem:[#allocation2 + $0x318] sm:$0xff] }
  0x99   :  { %4279 = vmatpush1.bf16.msra.mxu0 %v4278_v27  ;;  %4351 = vmatpush1.bf16.msra.mxu1 %v4350_v42  ;;  %v4062_v27 = vcombine.high %v5257_v16, %v5312_v55  ;;  %v280_v42 = vld [vmem:[#allocation2 + $0x240] sm:$0xff] }
  0x9a   :  { %4281 = vmatprep.subr.bf16.mxu0 %v4280_v63  ;;  %4353 = vmatprep.subr.bf16.mxu1 %v4352_v4  ;;  %v284_v63 = vld [vmem:[#allocation2 + $0x260] sm:$0xff]  ;;  %v282_v4 = vld [vmem:[#allocation2 + $0x250] sm:$0xff] }
  0x9b   :  { %v1743_v35 = vrot.slane %v4062_v27, %v5139_v28  ;;  %v4290_v54 = vpack.c.bf16 %v284_v63, %v280_v42  ;;  %v299_v27 = vld [vmem:[#allocation2 + $0x2d8] sm:$0xff]  ;;  %v300_v63 = vld [vmem:[#allocation2 + $0x2e0] sm:$0xff] }
  0x9c   :  { %v303_v42 = vld [vmem:[#allocation2 + $0x2f8] sm:$0xff] }
  0x9d   :  { %4283 = vmatpush1.bf16.msra.mxu0 %v4282_v15  ;;  %4355 = vmatpush1.bf16.msra.mxu1 %v4354_v44  ;;  %v4362_v15 = vpack.c.bf16 %v286_v31, %v282_v4  ;;  %v288_v44 = vld [vmem:[#allocation2 + $0x280] sm:$0xff]  ;;  %v5565_v48 = vcombine.high %v1729_v57, %v1743_v35  ;;  %v4368_v31 = vpack.c.bf16 %v303_v42, %v299_v27 }
  0x9e   :  { %4285 = vmatprep.subr.bf16.mxu0 %v4284_v0  ;;  %4357 = vmatprep.subr.bf16.mxu1 %v4356_v47  ;;  %v5567_v0 = vcombine.low %v1729_v57, %v1743_v35  ;;  %v6090_v47 = vcombine.high %v5179_v50, %v5244_v13  ;;  %v6091_v35 = vcombine.high %v5204_v60, %v5252_v11  ;;  %v296_v13 = vld [vmem:[#allocation2 + $0x2c0] sm:$0xff]  ;;  %v309_v57 = vld [vmem:[#allocation2 + $0x328] sm:$0xff] }
  0x9f   :  { %v4366_v50 = vpack.c.bf16 %v294_v9, %v290_v18  ;;  %v4298_v60 = vpack.c.bf16 %v300_v63, %v296_v13  ;;  %v315_v18 = vld [vmem:[#allocation2 + $0x358] sm:$0xff]  ;;  %v312_v27 = vld [vmem:[#allocation2 + $0x340] sm:$0xff]  ;;  %v321_v13 = vld [vmem:[#allocation2 + $0x388] sm:$0xff] }
  0xa0   :  { %v1701_v10 = vrot.slane %v6090_v47, %v5139_v28  ;;  %v306_v47 = vld [vmem:[#allocation2 + $0x310] sm:$0xff]  ;;  %v319_v9 = vld [vmem:[#allocation2 + $0x378] sm:$0xff]  ;;  %v316_v42 = vld [vmem:[#allocation2 + $0x360] sm:$0xff] }
  0xa1   :  { %4287 = vmatpush1.bf16.msra.mxu0 %v4286_v24  ;;  %4359 = vmatpush1.bf16.msra.mxu1 %v4358_v36  ;;  %v1715_v24 = vrot.slane %v6091_v35, %v5139_v28  ;;  %v4294_v36 = vpack.c.bf16 %v292_v45, %v288_v44  ;;  %v4300_v44 = vpack.c.bf16 %v309_v57, %v305_v32  ;;  %v325_v63 = vld [vmem:[#allocation2 + $0x3a8] sm:$0xff]  ;;  %v320_v32 = vld [vmem:[#allocation2 + $0x380] sm:$0xff] }
  0xa2   :  { %4289 = vmatprep.subr.bf16.mxu0 %v4288_v53  ;;  %4361 = vmatprep.subr.bf16.mxu1 %v4360_v8  ;;  %v298_v53 = vld [vmem:[#allocation2 + $0x2d0] sm:$0xff]  ;;  %v4372_v45 = vpack.c.bf16 %v311_v46, %v307_v40  ;;  %v324_v57 = vld [vmem:[#allocation2 + $0x3a0] sm:$0xff]  ;;  %v4308_v40 = vpack.c.bf16 %v325_v63, %v321_v13 }
  0xa3   :  { %v5577_v4 = vcombine.low %v1701_v10, %v1715_v24  ;;  %v302_v8 = vld [vmem:[#allocation2 + $0x2f0] sm:$0xff]  ;;  %v4376_v24 = vpack.c.bf16 %v319_v9, %v315_v18 }
  0xa4   :  { %v4370_v11 = vpack.c.bf16 %v302_v8, %v298_v53  ;;  %v310_v10 = vld [vmem:[#allocation2 + $0x330] sm:$0xff]  ;;  %v4306_v53 = vpack.c.bf16 %v316_v42, %v312_v27  ;;  %v337_v27 = vld [vmem:[#allocation2 + $0x408] sm:$0xff] }
  0xa5   :  { %4291 = vmatpush1.bf16.msra.mxu0 %v4290_v54  ;;  %4363 = vmatpush1.bf16.msra.mxu1 %v4362_v15  ;;  %v304_v54 = vld [vmem:[#allocation2 + $0x300] sm:$0xff]  ;;  %v4374_v25 = vpack.c.bf16 %v310_v10, %v306_v47  ;;  %v4310_v47 = vpack.c.bf16 %v324_v57, %v320_v32  ;;  %v330_v18 = vld [vmem:[#allocation2 + $0x3d0] sm:$0xff]  ;;  %v341_v42 = vld [vmem:[#allocation2 + $0x428] sm:$0xff] }
  0xa6   :  { %4293 = vmatprep.subr.bf16.mxu0 %v4292_v5  ;;  %4365 = vmatprep.subr.bf16.mxu1 %v4364_v33  ;;  %v308_v15 = vld [vmem:[#allocation2 + $0x320] sm:$0xff]  ;;  %v313_v5 = vld [vmem:[#allocation2 + $0x348] sm:$0xff]  ;;  %v4316_v63 = vpack.c.bf16 %v341_v42, %v337_v27  ;;  %v338_v32 = vld [vmem:[#allocation2 + $0x410] sm:$0xff] }
  0xa7   :  { %v317_v33 = vld [vmem:[#allocation2 + $0x368] sm:$0xff]  ;;  %v4302_v23 = vpack.c.bf16 %v308_v15, %v304_v54  ;;  %v342_v57 = vld [vmem:[#allocation2 + $0x430] sm:$0xff] }
  0xa8   :  { %v4304_v35 = vpack.c.bf16 %v317_v33, %v313_v5  ;;  %v329_v54 = vld [vmem:[#allocation2 + $0x3c8] sm:$0xff]  ;;  %v328_v5 = vld [vmem:[#allocation2 + $0x3c0] sm:$0xff] }
  0xa9   :  { %4295 = vmatpush1.bf16.msra.mxu0 %v4294_v36  ;;  %4367 = vmatpush1.bf16.msra.mxu1 %v4366_v50  ;;  %v314_v36 = vld [vmem:[#allocation2 + $0x350] sm:$0xff]  ;;  %v333_v15 = vld [vmem:[#allocation2 + $0x3e8] sm:$0xff]  ;;  %v332_v33 = vld [vmem:[#allocation2 + $0x3e0] sm:$0xff] }
  0xaa   :  { %4297 = vmatprep.subr.bf16.mxu0 %v4296_v59  ;;  %4369 = vmatprep.subr.bf16.mxu1 %v4368_v31  ;;  %v318_v50 = vld [vmem:[#allocation2 + $0x370] sm:$0xff]  ;;  %v323_v59 = vld [vmem:[#allocation2 + $0x398] sm:$0xff]  ;;  %v4312_v9 = vpack.c.bf16 %v333_v15, %v329_v54  ;;  %v349_v54 = vld [vmem:[#allocation2 + $0x468] sm:$0xff] }
  0xab   :  { %v327_v31 = vld [vmem:[#allocation2 + $0x3b8] sm:$0xff]  ;;  %v4378_v8 = vpack.c.bf16 %v318_v50, %v314_v36  ;;  %v4314_v50 = vpack.c.bf16 %v332_v33, %v328_v5  ;;  %v348_v33 = vld [vmem:[#allocation2 + $0x460] sm:$0xff]  ;;  %v1541_v27 = vld [vmem:[#allocation2 + $0x908] sm:$0xff] }
  0xac   :  { %v4380_v46 = vpack.c.bf16 %v327_v31, %v323_v59  ;;  %v343_v36 = vld [vmem:[#allocation2 + $0x438] sm:$0xff]  ;;  %v336_v59 = vld [vmem:[#allocation2 + $0x400] sm:$0xff] }
  0xad   :  { %4299 = vmatpush1.bf16.msra.mxu0 %v4298_v60  ;;  %4371 = vmatpush1.bf16.msra.mxu1 %v4370_v11  ;;  %v322_v60 = vld [vmem:[#allocation2 + $0x390] sm:$0xff]  ;;  %v340_v31 = vld [vmem:[#allocation2 + $0x420] sm:$0xff]  ;;  %v347_v15 = vld [vmem:[#allocation2 + $0x458] sm:$0xff] }
  0xae   :  { %4301 = vmatprep.subr.bf16.mxu0 %v4300_v44  ;;  %4373 = vmatprep.subr.bf16.mxu1 %v4372_v45  ;;  %v326_v11 = vld [vmem:[#allocation2 + $0x3b0] sm:$0xff]  ;;  %v331_v44 = vld [vmem:[#allocation2 + $0x3d8] sm:$0xff] }
  0xaf   :  { %v335_v45 = vld [vmem:[#allocation2 + $0x3f8] sm:$0xff]  ;;  %v4382_v10 = vpack.c.bf16 %v326_v11, %v322_v60  ;;  %v1077_v60 = vcombine.low %v5527_v21, %v5531_v41  ;;  %v4318_v11 = vpack.c.bf16 %v340_v31, %v336_v59  ;;  %v344_v21 = vld [vmem:[#allocation2 + $0x440] sm:$0xff] }
  0xb1   :  { %4303 = vmatpush1.bf16.msra.mxu0 %v4302_v23  ;;  %4375 = vmatpush1.bf16.msra.mxu1 %v4374_v25  ;;  %v4384_v23 = vpack.c.bf16 %v335_v45, %v331_v44  ;;  %v334_v25 = vld [vmem:[#allocation2 + $0x3f0] sm:$0xff]  ;;  %v351_v44 = vld [vmem:[#allocation2 + $0x478] sm:$0xff] }
  0xb2   :  { %4305 = vmatprep.subr.bf16.mxu0 %v4304_v35  ;;  %4377 = vmatprep.subr.bf16.mxu1 %v4376_v24  ;;  %v4040_v35 = vcombine.low %v5257_v16, %v5312_v55  ;;  %v339_v24 = vld [vmem:[#allocation2 + $0x418] sm:$0xff]  ;;  %v4386_v13 = vpack.c.bf16 %v334_v25, %v330_v18  ;;  %v5585_v55 = vrot.slane %v5221_v3, %v5139_v28  ;;  %v350_v25 = vld [vmem:[#allocation2 + $0x470] sm:$0xff] }
  0xb5   :  { %4307 = vmatpush1.bf16.msra.mxu0 %v4306_v53  ;;  %4379 = vmatpush1.bf16.msra.mxu1 %v4378_v8  ;;  %v4042_v53 = vcombine.low %v5368_v43, %v5359_v39  ;;  %v4388_v8 = vpack.c.bf16 %v343_v36, %v339_v24  ;;  %v4390_v43 = vpack.c.bf16 %v342_v57, %v338_v32  ;;  %v1543_v24 = vld [vmem:[#allocation2 + $0x918] sm:$0xff]  ;;  %v1540_v57 = vld [vmem:[#allocation2 + $0x900] sm:$0xff] }
  0xb6   :  { %4309 = vmatprep.subr.bf16.mxu0 %v4308_v40  ;;  %4381 = vmatprep.subr.bf16.mxu1 %v4380_v46  ;;  %v1104_v40 = vrot.slane %v4040_v35, %v5139_v28  ;;  %v345_v46 = vld [vmem:[#allocation2 + $0x448] sm:$0xff] }
  0xb7   :  { %v1125_v45 = vrot.slane %v4042_v53, %v5139_v28  ;;  %v4320_v18 = vpack.c.bf16 %v349_v54, %v345_v46  ;;  %v1545_v35 = vld [vmem:[#allocation2 + $0x928] sm:$0xff]  ;;  %v1542_v46 = vld [vmem:[#allocation2 + $0x910] sm:$0xff] }
  0xb8   :  { %v1113_v5 = vcombine.high %v5585_v55, %v1104_v40  ;;  %v1112_v42 = vcombine.low %v5585_v55, %v1104_v40  ;;  %v4396_v31 = vpack.c.bf16 %v1545_v35, %v1541_v27  ;;  %v1544_v40 = vld [vmem:[#allocation2 + $0x920] sm:$0xff]  ;;  %v1553_v54 = vld [vmem:[#allocation2 + $0x968] sm:$0xff]  ;;  %v1554_v27 = vld [vmem:[#allocation2 + $0x970] sm:$0xff] }
  0xb9   :  { %4311 = vmatpush1.bf16.msra.mxu0 %v4310_v47  ;;  %4383 = vmatpush1.bf16.msra.mxu1 %v4382_v10  ;;  %v6092_v47 = vcombine.low %v5403_v52, %v5417_v22  ;;  %v1547_v52 = vld [vmem:[#allocation2 + $0x938] sm:$0xff]  ;;  %v1561_v35 = vld [vmem:[#allocation2 + $0x9a8] sm:$0xff] }
  0xba   :  { %4313 = vmatprep.subr.bf16.mxu0 %v4312_v9  ;;  %4385 = vmatprep.subr.bf16.mxu1 %v4384_v23  ;;  %v4392_v9 = vpack.c.bf16 %v351_v44, %v347_v15  ;;  %v346_v23 = vld [vmem:[#allocation2 + $0x450] sm:$0xff]  ;;  %v4468_v53 = vpack.c.bf16 %v1547_v52, %v1543_v24  ;;  %v1551_v15 = vld [vmem:[#allocation2 + $0x958] sm:$0xff] }
  0xbb   :  { %v5595_v10 = vrot.slane %v6092_v47, %v5139_v28  ;;  %v4394_v59 = vpack.c.bf16 %v350_v25, %v346_v23  ;;  %v1555_v44 = vld [vmem:[#allocation2 + $0x978] sm:$0xff]  ;;  %v4045_v47 = vcombine.high %v5362_v62, %v5431_v26  ;;  %v1550_v25 = vld [vmem:[#allocation2 + $0x950] sm:$0xff] }
  0xbc   :  { %v4472_v23 = vpack.c.bf16 %v1555_v44, %v1551_v15  ;;  %v1559_v24 = vld [vmem:[#allocation2 + $0x998] sm:$0xff] }
  0xbd   :  { %4315 = vmatpush1.bf16.msra.mxu0 %v4314_v50  ;;  %4387 = vmatpush1.bf16.msra.mxu1 %v4386_v13  ;;  %v1148_v36 = vcombine.high %v1125_v45, %v5595_v10  ;;  %v6093_v50 = vcombine.low %v5435_v34, %v5459_v37  ;;  %v4041_v34 = vcombine.low %v5280_v30, %v5336_v20  ;;  %v1563_v52 = vld [vmem:[#allocation2 + $0x9b8] sm:$0xff] }
  0xbe   :  { %4317 = vmatprep.subr.bf16.mxu0 %v4316_v63  ;;  %4389 = vmatprep.subr.bf16.mxu1 %v4388_v8  ;;  %v4322_v63 = vpack.c.bf16 %v348_v33, %v344_v21  ;;  %v1147_v8 = vcombine.low %v1125_v45, %v5595_v10  ;;  %v4043_v45 = vcombine.high %v5336_v20, %v5399_v49  ;;  %v1548_v33 = vld [vmem:[#allocation2 + $0x940] sm:$0xff] }
  0xbf   :  { %v5604_v13 = vrot.slane %v6093_v50, %v5139_v28 }
  0xc0   :  { %1248 = vmatmul.mubr.f32.vlgmr.msra.gmra.mrb[0].mxu0 %v1077_v60  ;;  %1426 = vmatmul.mubr.f32.vlgmr.msra.gmra.mrb[0].mxu1 %v1077_v60  ;;  %v1546_v60 = vld [vmem:[#allocation2 + $0x930] sm:$0xff]  ;;  %v1132_v26 = vrot.slane %v4043_v45, %v5139_v28  ;;  %v1568_v45 = vld [vmem:[#allocation2 + $0x9e0] sm:$0xff] }
  0xc1   :  { %4319 = vmatpush1.bf16.msra.mxu0 %v4318_v11  ;;  %4391 = vmatpush1.bf16.msra.mxu1 %v4390_v43  ;;  %v1166_v32 = vcombine.high %v5604_v13, %v5604_v13  ;;  %v1549_v11 = vld [vmem:[#allocation2 + $0x948] sm:$0xff]  ;;  %v1111_v43 = vrot.slane %v4041_v34, %v5139_v28  ;;  %v4470_v21 = vpack.c.bf16 %v1546_v60, %v1542_v46  ;;  %v1562_v34 = vld [vmem:[#allocation2 + $0x9b0] sm:$0xff] }
  0xc2   :  { %1253 = vmatprep.mubr.f32.mxu0 %v1113_v5  ;;  %1431 = vmatprep.mubr.f32.mxu1 %v1113_v5  ;;  %v4398_v5 = vpack.c.bf16 %v1544_v40, %v1540_v57  ;;  %v1569_v57 = vld [vmem:[#allocation2 + $0x9e8] sm:$0xff]  ;;  %v1571_v40 = vld [vmem:[#allocation2 + $0x9f8] sm:$0xff]  ;;  %v4056_v46 = vcombine.low %v5229_v7, %v5218_v2  ;;  %v4058_v60 = vcombine.low %v5248_v14, %v5221_v3  ;;  %v1566_v3 = vld [vmem:[#allocation2 + $0x9d0] sm:$0xff] }
  0xc3   :  { %4321 = vmatprep.subr.bf16.mxu0 %v4320_v18  ;;  %4393 = vmatprep.subr.bf16.mxu1 %v4392_v9  ;;  %v1552_v18 = vld [vmem:[#allocation2 + $0x960] sm:$0xff]  ;;  %v4400_v9 = vpack.c.bf16 %v1553_v54, %v1549_v11  ;;  %v1114_v49 = vcombine.low %v5554_v6, %v1111_v43  ;;  %v1567_v6 = vld [vmem:[#allocation2 + $0x9d8] sm:$0xff]  ;;  %v4047_v54 = vcombine.high %v5421_v58, %v5473_v38  ;;  %v1570_v14 = vld [vmem:[#allocation2 + $0x9f0] sm:$0xff] }
  0xc4   :  { %1254 = vmatmul.mubr.f32.gmra.mrb[2].mxu0 %v1112_v42  ;;  %1432 = vmatmul.mubr.f32.gmra.mrb[2].mxu1 %v1112_v42  ;;  %v1557_v42 = vld [vmem:[#allocation2 + $0x988] sm:$0xff]  ;;  %v4402_v50 = vpack.c.bf16 %v1552_v18, %v1548_v33  ;;  %v1564_v43 = vld [vmem:[#allocation2 + $0x9c0] sm:$0xff]  ;;  %v4480_v7 = vpack.c.bf16 %v1571_v40, %v1567_v6  ;;  %v1579_v33 = vld [vmem:[#allocation2 + $0xa38] sm:$0xff]  ;;  %v5643_v38 = vrot.slane %v4056_v46, %v5139_v28 }
  0xc5   :  { %1259 = vmatprep.mubr.f32.mxu0 %v1148_v36  ;;  %1437 = vmatprep.mubr.f32.mxu1 %v1148_v36  ;;  %v5627_v36 = vrot.slane %v4045_v47, %v5139_v28  ;;  %v1573_v47 = vld [vmem:[#allocation2 + $0xa08] sm:$0xff]  ;;  %v5646_v18 = vrot.slane %v4058_v60, %v5139_v28  ;;  %v1582_v6 = vld [vmem:[#allocation2 + $0xa50] sm:$0xff] }
  0xc6   :  { %4323 = vmatpush1.bf16.msra.mxu0 %v4322_v63  ;;  %4395 = vmatpush1.bf16.msra.mxu1 %v4394_v59  ;;  %v4474_v63 = vpack.c.bf16 %v1554_v27, %v1550_v25  ;;  %v1556_v59 = vld [vmem:[#allocation2 + $0x980] sm:$0xff]  ;;  %v4482_v25 = vpack.c.bf16 %v1570_v14, %v1566_v3  ;;  %v1586_v40 = vld [vmem:[#allocation2 + $0xa70] sm:$0xff]  ;;  %v1589_v46 = vld [vmem:[#allocation2 + $0xa88] sm:$0xff] }
  0xc7   :  { %4397 = vmatprep.subr.bf16.mxu0 %v4396_v31  ;;  %4469 = vmatprep.subr.bf16.mxu1 %v4468_v53  ;;  %v1560_v31 = vld [vmem:[#allocation2 + $0x9a0] sm:$0xff]  ;;  %v4404_v53 = vpack.c.bf16 %v1561_v35, %v1557_v42  ;;  %v1149_v11 = vcombine.low %v1132_v26, %v5627_v36  ;;  %v1581_v26 = vld [vmem:[#allocation2 + $0xa48] sm:$0xff]  ;;  %v1590_v3 = vld [vmem:[#allocation2 + $0xa90] sm:$0xff] }
  0xc8   :  { %1260 = vmatmul.mubr.f32.gmra.mrb[4].mxu0 %v1147_v8  ;;  %1438 = vmatmul.mubr.f32.gmra.mrb[4].mxu1 %v1147_v8  ;;  %v4476_v8 = vpack.c.bf16 %v1563_v52, %v1559_v24  ;;  %v4406_v15 = vpack.c.bf16 %v1560_v31, %v1556_v59  ;;  %v1572_v27 = vld [vmem:[#allocation2 + $0xa00] sm:$0xff]  ;;  %v1574_v52 = vld [vmem:[#allocation2 + $0xa10] sm:$0xff]  ;;  %v1587_v59 = vld [vmem:[#allocation2 + $0xa78] sm:$0xff]  ;;  %v1717_v31 = vcombine.high %v5643_v38, %v5646_v18 }
  0xc9   :  { %1265 = vmatprep.mubr.f32.mxu0 %v1166_v32  ;;  %1443 = vmatprep.mubr.f32.mxu1 %v1166_v32  ;;  %v1558_v32 = vld [vmem:[#allocation2 + $0x990] sm:$0xff]  ;;  %v1576_v42 = vld [vmem:[#allocation2 + $0xa20] sm:$0xff]  ;;  %v1593_v60 = vld [vmem:[#allocation2 + $0xaa8] sm:$0xff] }
  0xca   :  { %v4478_v44 = vpack.c.bf16 %v1562_v34, %v1558_v32  ;;  %v1580_v32 = vld [vmem:[#allocation2 + $0xa40] sm:$0xff]  ;;  %v1594_v14 = vld [vmem:[#allocation2 + $0xab0] sm:$0xff] }
  0xcb   :  { %v1584_v34 = vld [vmem:[#allocation2 + $0xa60] sm:$0xff] }
  0xcc   :  { %1266 = vmatmul.mubr.f32.gmra.mrb[6].mxu0 %v5604_v13  ;;  %1444 = vmatmul.mubr.f32.gmra.mrb[6].mxu1 %v5604_v13 }
  0xcd   :  { %1336 = vmatprep.mubr.f32.mxu0 %v6088_v1  ;;  %1514 = vmatprep.mubr.f32.mxu1 %v6088_v1 }
  0xd0   :  { %4048 = vmatmul.mubr.msk.f32.vlgmr.msra.gmra.mrb[0].mxu0 %vm680_vm7, %v5550_v12  ;;  %4052 = vmatmul.mubr.msk.f32.vlgmr.msra.gmra.mrb[0].mxu1 %vm680_vm7, %v5550_v12  ;;  %v1565_v12 = vld [vmem:[#allocation2 + $0x9c8] sm:$0xff] }
  0xd1   :  { %4399 = vmatpush1.bf16.msra.mxu0 %v4398_v5  ;;  %4471 = vmatpush1.bf16.msra.mxu1 %v4470_v21  ;;  %v4408_v2 = vpack.c.bf16 %v1569_v57, %v1565_v12  ;;  %v1577_v5 = vld [vmem:[#allocation2 + $0xa28] sm:$0xff]  ;;  %v1575_v21 = vld [vmem:[#allocation2 + $0xa18] sm:$0xff] }
  0xd2   :  { %4401 = vmatprep.subr.bf16.mxu0 %v4400_v9  ;;  %4473 = vmatprep.subr.bf16.mxu1 %v4472_v23  ;;  %v5651_v9 = vrot.slane %v4047_v54, %v5139_v28  ;;  %v4410_v23 = vpack.c.bf16 %v1568_v45, %v1564_v43  ;;  %v4412_v35 = vpack.c.bf16 %v1577_v5, %v1573_v47  ;;  %v1595_v54 = vld [vmem:[#allocation2 + $0xab8] sm:$0xff]  ;;  %v1588_v43 = vld [vmem:[#allocation2 + $0xa80] sm:$0xff]  ;;  %v1597_v47 = vld [vmem:[#allocation2 + $0xac8] sm:$0xff] }
  0xd3   :  { %1342 = vmatprep.mubr.f32.mxu0 %v6088_v1  ;;  %1520 = vmatprep.mubr.f32.mxu1 %v6088_v1  ;;  %v4484_v24 = vpack.c.bf16 %v1579_v33, %v1575_v21  ;;  %v1592_v45 = vld [vmem:[#allocation2 + $0xaa0] sm:$0xff]  ;;  %v1601_v5 = vld [vmem:[#allocation2 + $0xae8] sm:$0xff]  ;;  %v1599_v21 = vld [vmem:[#allocation2 + $0xad8] sm:$0xff] }
  0xd4   :  { %4049 = vmatmul.mubr.msk.f32.gmra.mrb[2].mxu0 %vm680_vm7, %v1114_v49  ;;  %4053 = vmatmul.mubr.msk.f32.gmra.mrb[2].mxu1 %vm680_vm7, %v1114_v49  ;;  %v1578_v49 = vld [vmem:[#allocation2 + $0xa30] sm:$0xff]  ;;  %v1603_v33 = vld [vmem:[#allocation2 + $0xaf8] sm:$0xff] }
  0xd5   :  { %4403 = vmatpush1.bf16.msra.mxu0 %v4402_v50  ;;  %4475 = vmatpush1.bf16.msra.mxu1 %v4474_v63  ;;  %v1585_v50 = vld [vmem:[#allocation2 + $0xa68] sm:$0xff]  ;;  %v1583_v63 = vld [vmem:[#allocation2 + $0xa58] sm:$0xff] }
  0xd6   :  { %4405 = vmatprep.subr.bf16.mxu0 %v4404_v53  ;;  %4477 = vmatprep.subr.bf16.mxu1 %v4476_v8  ;;  %v4414_v53 = vpack.c.bf16 %v1576_v42, %v1572_v27  ;;  %v4486_v8 = vpack.c.bf16 %v1578_v49, %v1574_v52  ;;  %v4416_v12 = vpack.c.bf16 %v1585_v50, %v1581_v26  ;;  %v1596_v27 = vld [vmem:[#allocation2 + $0xac0] sm:$0xff]  ;;  %v1598_v52 = vld [vmem:[#allocation2 + $0xad0] sm:$0xff]  ;;  %v1605_v26 = vld [vmem:[#allocation2 + $0xb08] sm:$0xff] }
  0xd7   :  { %1348 = vmatprep.mubr.f32.mxu0 %v6088_v1  ;;  %1526 = vmatprep.mubr.f32.mxu1 %v6088_v1  ;;  %v4488_v57 = vpack.c.bf16 %v1587_v59, %v1583_v63  ;;  %v1600_v42 = vld [vmem:[#allocation2 + $0xae0] sm:$0xff]  ;;  %v1602_v49 = vld [vmem:[#allocation2 + $0xaf0] sm:$0xff]  ;;  %v1609_v50 = vld [vmem:[#allocation2 + $0xb28] sm:$0xff] }
  0xd8   :  { %4050 = vmatmul.mubr.msk.f32.gmra.mrb[4].mxu0 %vm680_vm7, %v1149_v11  ;;  %4054 = vmatmul.mubr.msk.f32.gmra.mrb[4].mxu1 %vm680_vm7, %v1149_v11  ;;  %v1591_v11 = vld [vmem:[#allocation2 + $0xa98] sm:$0xff] }
  0xd9   :  { %4407 = vmatpush1.bf16.msra.mxu0 %v4406_v15  ;;  %4479 = vmatpush1.bf16.msra.mxu1 %v4478_v44  ;;  %v4418_v15 = vpack.c.bf16 %v1584_v34, %v1580_v32  ;;  %v4490_v44 = vpack.c.bf16 %v1586_v40, %v1582_v6  ;;  %v1607_v63 = vld [vmem:[#allocation2 + $0xb18] sm:$0xff]  ;;  %v1608_v32 = vld [vmem:[#allocation2 + $0xb20] sm:$0xff]  ;;  %v4428_v34 = vpack.c.bf16 %v1609_v50, %v1605_v26  ;;  %v1610_v6 = vld [vmem:[#allocation2 + $0xb30] sm:$0xff] }
  0xda   :  { %4409 = vmatprep.subr.bf16.mxu0 %v4408_v2  ;;  %4481 = vmatprep.subr.bf16.mxu1 %v4480_v7  ;;  %v4420_v2 = vpack.c.bf16 %v1593_v60, %v1589_v46  ;;  %v4492_v7 = vpack.c.bf16 %v1595_v54, %v1591_v11  ;;  %v1611_v59 = vld [vmem:[#allocation2 + $0xb38] sm:$0xff]  ;;  %v1613_v40 = vld [vmem:[#allocation2 + $0xb48] sm:$0xff]  ;;  %v1612_v54 = vld [vmem:[#allocation2 + $0xb40] sm:$0xff] }
  0xdb   :  { %1354 = vmatprep.mubr.f32.mxu0 %v6088_v1  ;;  %1532 = vmatprep.mubr.f32.mxu1 %v6088_v1  ;;  %v1617_v46 = vld [vmem:[#allocation2 + $0xb68] sm:$0xff]  ;;  %v1615_v60 = vld [vmem:[#allocation2 + $0xb58] sm:$0xff] }
  0xdc   :  { %4051 = vmatmul.mubr.msk.f32.gmra.mrb[6].mxu0 %vm680_vm7, %v5651_v9  ;;  %4055 = vmatmul.mubr.msk.f32.gmra.mrb[6].mxu1 %vm680_vm7, %v5651_v9  ;;  %v1619_v11 = vld [vmem:[#allocation2 + $0xb78] sm:$0xff]  ;;  %v1633_v26 = vld [vmem:[#allocation2 + $0xbe8] sm:$0xff] }
  0xdd   :  { %4411 = vmatpush1.bf16.msra.mxu0 %v4410_v23  ;;  %4483 = vmatpush1.bf16.msra.mxu1 %v4482_v25  ;;  %v4422_v23 = vpack.c.bf16 %v1592_v45, %v1588_v43  ;;  %v4494_v25 = vpack.c.bf16 %v1594_v14, %v1590_v3  ;;  %v1616_v43 = vld [vmem:[#allocation2 + $0xb60] sm:$0xff]  ;;  %v4432_v45 = vpack.c.bf16 %v1617_v46, %v1613_v40  ;;  %v1618_v3 = vld [vmem:[#allocation2 + $0xb70] sm:$0xff]  ;;  %v1621_v14 = vld [vmem:[#allocation2 + $0xb88] sm:$0xff] }
  0xde   :  { %4413 = vmatprep.subr.bf16.mxu0 %v4412_v35  ;;  %4485 = vmatprep.subr.bf16.mxu1 %v4484_v24  ;;  %v4424_v35 = vpack.c.bf16 %v1601_v5, %v1597_v47  ;;  %v4496_v24 = vpack.c.bf16 %v1603_v33, %v1599_v21  ;;  %v1625_v47 = vld [vmem:[#allocation2 + $0xba8] sm:$0xff]  ;;  %v1623_v5 = vld [vmem:[#allocation2 + $0xb98] sm:$0xff]  ;;  %v4434_v33 = vpack.c.bf16 %v1616_v43, %v1612_v54 }
  0xdf   :  { %1886 = vmatprep.mubr.f32.mxu0 %v1717_v31  ;;  %2064 = vmatprep.mubr.f32.mxu1 %v1717_v31  ;;  %v1604_v31 = vld [vmem:[#allocation2 + $0xb00] sm:$0xff]  ;;  %v1627_v21 = vld [vmem:[#allocation2 + $0xbb8] sm:$0xff]  ;;  %v1641_v40 = vld [vmem:[#allocation2 + $0xc28] sm:$0xff] }
  0xe0   :  { %v1631_v50 = vld [vmem:[#allocation2 + $0xbd8] sm:$0xff] }
  0xe1   :  { %4415 = vmatpush1.bf16.msra.mxu0 %v4414_v53  ;;  %4487 = vmatpush1.bf16.msra.mxu1 %v4486_v8  ;;  %v4426_v53 = vpack.c.bf16 %v1600_v42, %v1596_v27  ;;  %v4498_v8 = vpack.c.bf16 %v1602_v49, %v1598_v52  ;;  %v1624_v27 = vld [vmem:[#allocation2 + $0xba0] sm:$0xff]  ;;  %v4436_v42 = vpack.c.bf16 %v1625_v47, %v1621_v14  ;;  %v1626_v52 = vld [vmem:[#allocation2 + $0xbb0] sm:$0xff]  ;;  %v1629_v49 = vld [vmem:[#allocation2 + $0xbc8] sm:$0xff] }
  0xe2   :  { %4417 = vmatprep.subr.bf16.mxu0 %v4416_v12  ;;  %4489 = vmatprep.subr.bf16.mxu1 %v4488_v57  ;;  %v4500_v12 = vpack.c.bf16 %v1611_v59, %v1607_v63  ;;  %v1606_v57 = vld [vmem:[#allocation2 + $0xb10] sm:$0xff]  ;;  %v1635_v63 = vld [vmem:[#allocation2 + $0xbf8] sm:$0xff]  ;;  %v1649_v14 = vld [vmem:[#allocation2 + $0xc68] sm:$0xff] }
  0xe3   :  { %v1639_v46 = vld [vmem:[#allocation2 + $0xc18] sm:$0xff] }
  0xe4   :  { %v1647_v47 = vld [vmem:[#allocation2 + $0xc58] sm:$0xff] }
  0xe5   :  { %4419 = vmatpush1.bf16.msra.mxu0 %v4418_v15  ;;  %4491 = vmatpush1.bf16.msra.mxu1 %v4490_v44  ;;  %v4430_v15 = vpack.c.bf16 %v1608_v32, %v1604_v31  ;;  %v4502_v44 = vpack.c.bf16 %v1610_v6, %v1606_v57  ;;  %v4440_v32 = vpack.c.bf16 %v1633_v26, %v1629_v49  ;;  %v1634_v57 = vld [vmem:[#allocation2 + $0xbf0] sm:$0xff]  ;;  %v1637_v6 = vld [vmem:[#allocation2 + $0xc08] sm:$0xff]  ;;  %v1655_v26 = vld [vmem:[#allocation2 + $0xc98] sm:$0xff] }
  0xe6   :  { %4421 = vmatprep.subr.bf16.mxu0 %v4420_v2  ;;  %4493 = vmatprep.subr.bf16.mxu1 %v4492_v7  ;;  %v4504_v2 = vpack.c.bf16 %v1619_v11, %v1615_v60  ;;  %v1614_v7 = vld [vmem:[#allocation2 + $0xb50] sm:$0xff]  ;;  %v1643_v60 = vld [vmem:[#allocation2 + $0xc38] sm:$0xff]  ;;  %v4444_v43 = vpack.c.bf16 %v1641_v40, %v1637_v6  ;;  %v1657_v49 = vld [vmem:[#allocation2 + $0xca8] sm:$0xff] }
  0xe7   :  { %v1665_v6 = vld [vmem:[#allocation2 + $0xce8] sm:$0xff]  ;;  %v1663_v40 = vld [vmem:[#allocation2 + $0xcd8] sm:$0xff] }
  0xe9   :  { %4423 = vmatpush1.bf16.msra.mxu0 %v4422_v23  ;;  %4495 = vmatpush1.bf16.msra.mxu1 %v4494_v25  ;;  %v4506_v23 = vpack.c.bf16 %v1618_v3, %v1614_v7  ;;  %v1620_v25 = vld [vmem:[#allocation2 + $0xb80] sm:$0xff]  ;;  %v1642_v7 = vld [vmem:[#allocation2 + $0xc30] sm:$0xff]  ;;  %v1645_v3 = vld [vmem:[#allocation2 + $0xc48] sm:$0xff] }
  0xea   :  { %4425 = vmatprep.subr.bf16.mxu0 %v4424_v35  ;;  %4497 = vmatprep.subr.bf16.mxu1 %v4496_v24  ;;  %v4508_v35 = vpack.c.bf16 %v1627_v21, %v1623_v5  ;;  %v1622_v24 = vld [vmem:[#allocation2 + $0xb90] sm:$0xff]  ;;  %v4438_v59 = vpack.c.bf16 %v1624_v27, %v1620_v25  ;;  %v1651_v5 = vld [vmem:[#allocation2 + $0xc78] sm:$0xff]  ;;  %v1648_v25 = vld [vmem:[#allocation2 + $0xc60] sm:$0xff]  ;;  %v4448_v27 = vpack.c.bf16 %v1649_v14, %v1645_v3 }
  0xeb   :  { %v4510_v31 = vpack.c.bf16 %v1626_v52, %v1622_v24  ;;  %v1650_v24 = vld [vmem:[#allocation2 + $0xc70] sm:$0xff]  ;;  %v1653_v52 = vld [vmem:[#allocation2 + $0xc88] sm:$0xff]  ;;  %v1671_v14 = vld [vmem:[#allocation2 + $0xd18] sm:$0xff] }
  0xec   :  { %v1673_v3 = vld [vmem:[#allocation2 + $0xd28] sm:$0xff] }
  0xed   :  { %4427 = vmatpush1.bf16.msra.mxu0 %v4426_v53  ;;  %4499 = vmatpush1.bf16.msra.mxu1 %v4498_v8  ;;  %v1628_v53 = vld [vmem:[#allocation2 + $0xbc0] sm:$0xff] }
  0xee   :  { %4429 = vmatprep.subr.bf16.mxu0 %v4428_v34  ;;  %4501 = vmatprep.subr.bf16.mxu1 %v4500_v12  ;;  %v1632_v8 = vld [vmem:[#allocation2 + $0xbe0] sm:$0xff]  ;;  %v4512_v34 = vpack.c.bf16 %v1635_v63, %v1631_v50  ;;  %v1630_v12 = vld [vmem:[#allocation2 + $0xbd0] sm:$0xff]  ;;  %v1659_v50 = vld [vmem:[#allocation2 + $0xcb8] sm:$0xff] }
  0xef   :  { %v4442_v11 = vpack.c.bf16 %v1632_v8, %v1628_v53  ;;  %v4514_v54 = vpack.c.bf16 %v1634_v57, %v1630_v12  ;;  %v1656_v53 = vld [vmem:[#allocation2 + $0xca0] sm:$0xff]  ;;  %v4452_v8 = vpack.c.bf16 %v1657_v49, %v1653_v52  ;;  %v1658_v12 = vld [vmem:[#allocation2 + $0xcb0] sm:$0xff]  ;;  %v1661_v57 = vld [vmem:[#allocation2 + $0xcc8] sm:$0xff]  ;;  %v1716_v52 = vcombine.low %v5643_v38, %v5646_v18 }
  0xf0   :  { %v1764_v49 = vrot.slane %v5359_v39, %v5139_v28  ;;  %v1678_v38 = vld [vmem:[#allocation2 + $0xd50] sm:$0xff] }
  0xf1   :  { %4431 = vmatpush1.bf16.msra.mxu0 %v4430_v15  ;;  %4503 = vmatpush1.bf16.msra.mxu1 %v4502_v44  ;;  %v1636_v15 = vld [vmem:[#allocation2 + $0xc00] sm:$0xff]  ;;  %v1682_v18 = vld [vmem:[#allocation2 + $0xd70] sm:$0xff] }
  0xf2   :  { %4433 = vmatprep.subr.bf16.mxu0 %v4432_v45  ;;  %4505 = vmatprep.subr.bf16.mxu1 %v4504_v2  ;;  %v1640_v44 = vld [vmem:[#allocation2 + $0xc20] sm:$0xff]  ;;  %v4516_v45 = vpack.c.bf16 %v1643_v60, %v1639_v46  ;;  %v1638_v2 = vld [vmem:[#allocation2 + $0xc10] sm:$0xff]  ;;  %v1667_v46 = vld [vmem:[#allocation2 + $0xcf8] sm:$0xff] }
  0xf3   :  { %v4446_v21 = vpack.c.bf16 %v1640_v44, %v1636_v15  ;;  %v1664_v15 = vld [vmem:[#allocation2 + $0xce0] sm:$0xff]  ;;  %v4456_v44 = vpack.c.bf16 %v1665_v6, %v1661_v57  ;;  %v2240_v57 = vld [vmem:[#allocation2 + $0xd88] sm:$0xff] }
  0xf4   :  { %v2244_v6 = vld [vmem:[#allocation2 + $0xda8] sm:$0xff] }
  0xf5   :  { %4435 = vmatpush1.bf16.msra.mxu0 %v4434_v33  ;;  %4507 = vmatpush1.bf16.msra.mxu1 %v4506_v23  ;;  %v4518_v33 = vpack.c.bf16 %v1642_v7, %v1638_v2  ;;  %v1644_v23 = vld [vmem:[#allocation2 + $0xc40] sm:$0xff]  ;;  %v1666_v2 = vld [vmem:[#allocation2 + $0xcf0] sm:$0xff]  ;;  %v1669_v7 = vld [vmem:[#allocation2 + $0xd08] sm:$0xff] }
  0xf6   :  { %4437 = vmatprep.subr.bf16.mxu0 %v4436_v42  ;;  %4509 = vmatprep.subr.bf16.mxu1 %v4508_v35  ;;  %v4520_v42 = vpack.c.bf16 %v1651_v5, %v1647_v47  ;;  %v1646_v35 = vld [vmem:[#allocation2 + $0xc50] sm:$0xff]  ;;  %v4450_v63 = vpack.c.bf16 %v1648_v25, %v1644_v23  ;;  %v1675_v47 = vld [vmem:[#allocation2 + $0xd38] sm:$0xff]  ;;  %v4460_v23 = vpack.c.bf16 %v1673_v3, %v1669_v7 }
  0xf7   :  { %v4532_v25 = vpack.c.bf16 %v1675_v47, %v1671_v14  ;;  %v2241_v7 = vld [vmem:[#allocation2 + $0xd90] sm:$0xff]  ;;  %v2248_v14 = vld [vmem:[#allocation2 + $0xdc8] sm:$0xff] }
  0xf8   :  { %v2245_v3 = vld [vmem:[#allocation2 + $0xdb0] sm:$0xff]  ;;  %v2252_v47 = vld [vmem:[#allocation2 + $0xde8] sm:$0xff] }
  0xf9   :  { %4439 = vmatpush1.bf16.msra.mxu0 %v4438_v59  ;;  %4511 = vmatpush1.bf16.msra.mxu1 %v4510_v31  ;;  %v4522_v59 = vpack.c.bf16 %v1650_v24, %v1646_v35  ;;  %v1652_v31 = vld [vmem:[#allocation2 + $0xc80] sm:$0xff]  ;;  %v1674_v35 = vld [vmem:[#allocation2 + $0xd30] sm:$0xff]  ;;  %v1677_v24 = vld [vmem:[#allocation2 + $0xd48] sm:$0xff] }
  0xfa   :  { %4441 = vmatprep.subr.bf16.mxu0 %v4440_v32  ;;  %4513 = vmatprep.subr.bf16.mxu1 %v4512_v34  ;;  %v4524_v32 = vpack.c.bf16 %v1659_v50, %v1655_v26  ;;  %v1654_v34 = vld [vmem:[#allocation2 + $0xc90] sm:$0xff]  ;;  %v4454_v60 = vpack.c.bf16 %v1656_v53, %v1652_v31  ;;  %v1681_v26 = vld [vmem:[#allocation2 + $0xd68] sm:$0xff]  ;;  %v1679_v50 = vld [vmem:[#allocation2 + $0xd58] sm:$0xff]  ;;  %v1778_v53 = vrot.slane %v5417_v22, %v5139_v28 }
  0xfb   :  { %v1797_v22 = vrot.slane %v5459_v37, %v5139_v28  ;;  %v4061_v37 = vcombine.high %v5194_v56, %v5333_v19  ;;  %v4614_v19 = vpack.c.bf16 %v2245_v3, %v2241_v7  ;;  %v2276_v7 = vld [vmem:[#allocation2 + $0xea8] sm:$0xff]  ;;  %v2274_v3 = vld [vmem:[#allocation2 + $0xe98] sm:$0xff] }
  0xfd   :  { %4443 = vmatpush1.bf16.msra.mxu0 %v4442_v11  ;;  %4515 = vmatpush1.bf16.msra.mxu1 %v4514_v54  ;;  %v4526_v11 = vpack.c.bf16 %v1658_v12, %v1654_v34  ;;  %v1660_v54 = vld [vmem:[#allocation2 + $0xcc0] sm:$0xff]  ;;  %v4464_v34 = vpack.c.bf16 %v1681_v26, %v1677_v24  ;;  %v2253_v24 = vld [vmem:[#allocation2 + $0xdf0] sm:$0xff]  ;;  %v2258_v26 = vld [vmem:[#allocation2 + $0xe18] sm:$0xff] }
  0xfe   :  { %4445 = vmatprep.subr.bf16.mxu0 %v4444_v43  ;;  %4517 = vmatprep.subr.bf16.mxu1 %v4516_v45  ;;  %v4528_v43 = vpack.c.bf16 %v1667_v46, %v1663_v40  ;;  %v1662_v45 = vld [vmem:[#allocation2 + $0xcd0] sm:$0xff]  ;;  %v4458_v5 = vpack.c.bf16 %v1664_v15, %v1660_v54  ;;  %v2242_v40 = vld [vmem:[#allocation2 + $0xd98] sm:$0xff]  ;;  %v4538_v54 = vpack.c.bf16 %v1682_v18, %v1678_v38 }
  0xff   :  { %v2246_v46 = vld [vmem:[#allocation2 + $0xdb8] sm:$0xff]  ;;  %v4540_v15 = vpack.c.bf16 %v2244_v6, %v2240_v57  ;;  %v2257_v18 = vld [vmem:[#allocation2 + $0xe10] sm:$0xff]  ;;  %v2268_v6 = vld [vmem:[#allocation2 + $0xe68] sm:$0xff] }
 0x100   :  { %v2261_v57 = vld [vmem:[#allocation2 + $0xe30] sm:$0xff] }
 0x101   :  { %4447 = vmatpush1.bf16.msra.mxu0 %v4446_v21  ;;  %4519 = vmatpush1.bf16.msra.mxu1 %v4518_v33  ;;  %v4530_v21 = vpack.c.bf16 %v1666_v2, %v1662_v45  ;;  %v1668_v33 = vld [vmem:[#allocation2 + $0xd00] sm:$0xff]  ;;  %v1805_v45 = vcombine.high %v1797_v22, %v1797_v22 }
 0x102   :  { %4449 = vmatprep.subr.bf16.mxu0 %v4448_v27  ;;  %4521 = vmatprep.subr.bf16.mxu1 %v4520_v42  ;;  %v1672_v27 = vld [vmem:[#allocation2 + $0xd20] sm:$0xff]  ;;  %v1670_v42 = vld [vmem:[#allocation2 + $0xd10] sm:$0xff] }
 0x103   :  { %v4534_v31 = vpack.c.bf16 %v1674_v35, %v1670_v42  ;;  %v2239_v2 = vld [vmem:[#allocation2 + $0xd80] sm:$0xff]  ;;  %v2249_v35 = vld [vmem:[#allocation2 + $0xdd0] sm:$0xff] }
 0x105   :  { %4451 = vmatpush1.bf16.msra.mxu0 %v4450_v63  ;;  %4523 = vmatpush1.bf16.msra.mxu1 %v4522_v59  ;;  %v1683_v63 = vld [vmem:[#allocation2 + $0xd78] sm:$0xff]  ;;  %v4462_v59 = vpack.c.bf16 %v1672_v27, %v1668_v33  ;;  %v1736_v33 = vrot.slane %v4061_v37, %v5139_v28  ;;  %v4544_v27 = vpack.c.bf16 %v2252_v47, %v2248_v14 }
 0x106   :  { %4453 = vmatprep.subr.bf16.mxu0 %v4452_v8  ;;  %4525 = vmatprep.subr.bf16.mxu1 %v4524_v32  ;;  %v1676_v8 = vld [vmem:[#allocation2 + $0xd40] sm:$0xff]  ;;  %v4536_v12 = vpack.c.bf16 %v1683_v63, %v1679_v50  ;;  %v2262_v50 = vld [vmem:[#allocation2 + $0xe38] sm:$0xff] }
 0x107   :  { %v1680_v32 = vld [vmem:[#allocation2 + $0xd60] sm:$0xff]  ;;  %v4620_v38 = vpack.c.bf16 %v2262_v50, %v2258_v26  ;;  %v2278_v14 = vld [vmem:[#allocation2 + $0xeb8] sm:$0xff] }
 0x108   :  { %v2286_v26 = vld [vmem:[#allocation2 + $0xef8] sm:$0xff] }
 0x109   :  { %4455 = vmatpush1.bf16.msra.mxu0 %v4454_v60  ;;  %4527 = vmatpush1.bf16.msra.mxu1 %v4526_v11  ;;  %v1787_v60 = vcombine.high %v1764_v49, %v1778_v53  ;;  %v4466_v11 = vpack.c.bf16 %v1680_v32, %v1676_v8  ;;  %v4618_v8 = vpack.c.bf16 %v2253_v24, %v2249_v35  ;;  %v2255_v32 = vld [vmem:[#allocation2 + $0xe00] sm:$0xff]  ;;  %v2277_v35 = vld [vmem:[#allocation2 + $0xeb0] sm:$0xff]  ;;  %v2280_v24 = vld [vmem:[#allocation2 + $0xec8] sm:$0xff] }
 0x10a   :  { %4457 = vmatprep.subr.bf16.mxu0 %v4456_v44  ;;  %4529 = vmatprep.subr.bf16.mxu1 %v4528_v43  ;;  %v4612_v44 = vpack.c.bf16 %v2246_v46, %v2242_v40  ;;  %v1786_v43 = vcombine.low %v1764_v49, %v1778_v53  ;;  %v2260_v49 = vld [vmem:[#allocation2 + $0xe28] sm:$0xff]  ;;  %v2266_v40 = vld [vmem:[#allocation2 + $0xe58] sm:$0xff] }
 0x10b   :  { %v2270_v46 = vld [vmem:[#allocation2 + $0xe78] sm:$0xff] }
 0x10c   :  { %v4624_v37 = vpack.c.bf16 %v2270_v46, %v2266_v40  ;;  %v2287_v46 = vld [vmem:[#allocation2 + $0xf00] sm:$0xff] }
 0x10d   :  { %4459 = vmatpush1.bf16.msra.mxu0 %v4458_v5  ;;  %4531 = vmatpush1.bf16.msra.mxu1 %v4530_v21  ;;  %v2250_v5 = vld [vmem:[#allocation2 + $0xdd8] sm:$0xff] }
 0x10e   :  { %4461 = vmatprep.subr.bf16.mxu0 %v4460_v23  ;;  %4533 = vmatprep.subr.bf16.mxu1 %v4532_v25  ;;  %v2254_v21 = vld [vmem:[#allocation2 + $0xdf8] sm:$0xff]  ;;  %v2251_v25 = vld [vmem:[#allocation2 + $0xde0] sm:$0xff] }
 0x10f   :  { %v4616_v42 = vpack.c.bf16 %v2254_v21, %v2250_v5  ;;  %v6095_v21 = vld [vmem:[#allocation17_spill] sm:$0xff] }
 0x110   :  { %1887 = vmatmul.mubr.f32.vlgmr.msra.gmra.mrb[0].mxu0 %v1716_v52  ;;  %2065 = vmatmul.mubr.f32.vlgmr.msra.gmra.mrb[0].mxu1 %v1716_v52  ;;  %v2256_v52 = vld [vmem:[#allocation2 + $0xe08] sm:$0xff] }
 0x111   :  { %4463 = vmatpush1.bf16.msra.mxu0 %v4462_v59  ;;  %4535 = vmatpush1.bf16.msra.mxu1 %v4534_v31  ;;  %v1771_v59 = vrot.slane %v5362_v62, %v5139_v28  ;;  %v1785_v31 = vrot.slane %v5421_v58, %v5139_v28  ;;  %v2383_v58 = vcombine.low %v5306_v51, %v5318_v61 }
 0x112   :  { %1892 = vmatprep.mubr.f32.mxu0 %v5565_v48  ;;  %2070 = vmatprep.mubr.f32.mxu1 %v5565_v48  ;;  %v4063_v48 = vcombine.high %v5280_v30, %v5336_v20  ;;  %v2247_v20 = vld [vmem:[#allocation2 + $0xdc0] sm:$0xff] }
 0x113   :  { %4465 = vmatprep.subr.bf16.mxu0 %v4464_v34  ;;  %4537 = vmatprep.subr.bf16.mxu1 %v4536_v12  ;;  %v4546_v53 = vpack.c.bf16 %v2251_v25, %v2247_v20  ;;  %v2259_v34 = vld [vmem:[#allocation2 + $0xe20] sm:$0xff]  ;;  %v4548_v12 = vpack.c.bf16 %v2260_v49, %v2256_v52  ;;  %v5700_v47 = vrot.slane %v2383_v58, %v5139_v28  ;;  %v2284_v52 = vld [vmem:[#allocation2 + $0xee8] sm:$0xff]  ;;  %v2282_v49 = vld [vmem:[#allocation2 + $0xed8] sm:$0xff] }
 0x114   :  { %1893 = vmatmul.mubr.f32.gmra.mrb[2].mxu0 %v5567_v0  ;;  %2071 = vmatmul.mubr.f32.gmra.mrb[2].mxu1 %v5567_v0  ;;  %v2243_v0 = vld [vmem:[#allocation2 + $0xda0] sm:$0xff]  ;;  %v1750_v23 = vrot.slane %v4063_v48, %v5139_v28  ;;  %v2265_v48 = vld [vmem:[#allocation2 + $0xe50] sm:$0xff] }
 0x115   :  { %1898 = vmatprep.mubr.f32.mxu0 %v1787_v60  ;;  %2076 = vmatprep.mubr.f32.mxu1 %v1787_v60  ;;  %v4542_v56 = vpack.c.bf16 %v2243_v0, %v2239_v2  ;;  %v6094_v60 = vld [vmem:[#allocation10_spill] sm:$0xff]  ;;  %v2272_v0 = vld [vmem:[#allocation2 + $0xe88] sm:$0xff]  ;;  %v2275_v20 = vld [vmem:[#allocation2 + $0xea0] sm:$0xff] }
 0x116   :  { %4467 = vmatpush1.bf16.msra.mxu0 %v4466_v11  ;;  %4539 = vmatpush1.bf16.msra.mxu1 %v4538_v54  ;;  %v1753_v63 = vcombine.low %v1736_v33, %v1750_v23  ;;  %v1788_v11 = vcombine.low %v1771_v59, %v1785_v31  ;;  %v4550_v54 = vpack.c.bf16 %v2259_v34, %v2255_v32  ;;  %v2269_v2 = vld [vmem:[#allocation2 + $0xe70] sm:$0xff]  ;;  %v2279_v31 = vld [vmem:[#allocation2 + $0xec0] sm:$0xff] }
 0x117   :  { %4541 = vmatprep.subr.bf16.mxu0 %v4540_v15  ;;  %4613 = vmatprep.subr.bf16.mxu1 %v4612_v44  ;;  %v4622_v15 = vpack.c.bf16 %v2261_v57, %v2257_v18  ;;  %v2263_v44 = vld [vmem:[#allocation2 + $0xe40] sm:$0xff]  ;;  %v1804_v33 = vrot.slane %v6095_v21, %v5139_v28  ;;  %v4556_v25 = vpack.c.bf16 %v2276_v7, %v2272_v0  ;;  %v2281_v34 = vld [vmem:[#allocation2 + $0xed0] sm:$0xff]  ;;  %v2292_v18 = vld [vmem:[#allocation2 + $0xf28] sm:$0xff] }
 0x118   :  { %1899 = vmatmul.mubr.f32.gmra.mrb[4].mxu0 %v1786_v43  ;;  %2077 = vmatmul.mubr.f32.gmra.mrb[4].mxu1 %v1786_v43  ;;  %v2267_v43 = vld [vmem:[#allocation2 + $0xe60] sm:$0xff]  ;;  %v4632_v32 = vpack.c.bf16 %v2286_v26, %v2282_v49  ;;  %v2290_v57 = vld [vmem:[#allocation2 + $0xf18] sm:$0xff]  ;;  %v2305_v26 = vld [vmem:[#allocation2 + $0xf90] sm:$0xff] }
 0x119   :  { %1904 = vmatprep.mubr.f32.mxu0 %v1805_v45  ;;  %2082 = vmatprep.mubr.f32.mxu1 %v1805_v45  ;;  %v4554_v23 = vpack.c.bf16 %v2267_v43, %v2263_v44  ;;  %v2291_v58 = vld [vmem:[#allocation2 + $0xf20] sm:$0xff]  ;;  %v2296_v44 = vld [vmem:[#allocation2 + $0xf48] sm:$0xff] }
 0x11a   :  { %v2300_v43 = vld [vmem:[#allocation2 + $0xf68] sm:$0xff]  ;;  %v2295_v0 = vld [vmem:[#allocation2 + $0xf40] sm:$0xff] }
 0x11b   :  { %v2299_v7 = vld [vmem:[#allocation2 + $0xf60] sm:$0xff] }
 0x11c   :  { %1905 = vmatmul.mubr.f32.gmra.mrb[6].mxu0 %v1797_v22  ;;  %2083 = vmatmul.mubr.f32.gmra.mrb[6].mxu1 %v1797_v22  ;;  %v2385_v22 = vcombine.low %v6094_v60, %v5377_v29 }
 0x11d   :  { %1975 = vmatprep.mubr.f32.mxu0 %v6088_v1  ;;  %2153 = vmatprep.mubr.f32.mxu1 %v6088_v1 }
 0x11e   :  { %v5703_v5 = vrot.slane %v2385_v22, %v5139_v28 }
 0x120   :  { %4064 = vmatmul.mubr.msk.f32.vlgmr.msra.gmra.mrb[0].mxu0 %vm680_vm7, %v5577_v4  ;;  %4068 = vmatmul.mubr.msk.f32.vlgmr.msra.gmra.mrb[0].mxu1 %vm680_vm7, %v5577_v4  ;;  %v2264_v4 = vld [vmem:[#allocation2 + $0xe48] sm:$0xff]  ;;  %v2416_v50 = vcombine.high %v5700_v47, %v5703_v5 }
 0x121   :  { %4543 = vmatpush1.bf16.msra.mxu0 %v4542_v56  ;;  %4615 = vmatpush1.bf16.msra.mxu1 %v4614_v19  ;;  %v4552_v45 = vpack.c.bf16 %v2268_v6, %v2264_v4  ;;  %v4626_v56 = vpack.c.bf16 %v2269_v2, %v2265_v48  ;;  %v2271_v19 = vld [vmem:[#allocation2 + $0xe80] sm:$0xff]  ;;  %v2294_v4 = vld [vmem:[#allocation2 + $0xf38] sm:$0xff]  ;;  %v4566_v48 = vpack.c.bf16 %v2291_v58, %v2287_v46 }
 0x122   :  { %4545 = vmatprep.subr.bf16.mxu0 %v4544_v27  ;;  %4617 = vmatprep.subr.bf16.mxu1 %v4616_v42  ;;  %v4628_v27 = vpack.c.bf16 %v2278_v14, %v2274_v3  ;;  %v2273_v42 = vld [vmem:[#allocation2 + $0xe90] sm:$0xff]  ;;  %v4568_v3 = vpack.c.bf16 %v2300_v43, %v2296_v44  ;;  %v2322_v46 = vld [vmem:[#allocation2 + $0x1018] sm:$0xff] }
 0x123   :  { %1981 = vmatprep.mubr.f32.mxu0 %v6088_v1  ;;  %2159 = vmatprep.mubr.f32.mxu1 %v6088_v1  ;;  %v4630_v59 = vpack.c.bf16 %v2277_v35, %v2273_v42  ;;  %v2303_v35 = vld [vmem:[#allocation2 + $0xf80] sm:$0xff]  ;;  %v2326_v58 = vld [vmem:[#allocation2 + $0x1038] sm:$0xff]  ;;  %v2321_v44 = vld [vmem:[#allocation2 + $0x1010] sm:$0xff] }
 0x124   :  { %4065 = vmatmul.mubr.msk.f32.gmra.mrb[2].mxu0 %vm680_vm7, %v1753_v63  ;;  %4069 = vmatmul.mubr.msk.f32.gmra.mrb[2].mxu1 %vm680_vm7, %v1753_v63  ;;  %v4558_v63 = vpack.c.bf16 %v2275_v20, %v2271_v19  ;;  %v2308_v19 = vld [vmem:[#allocation2 + $0xfa8] sm:$0xff]  ;;  %v2306_v20 = vld [vmem:[#allocation2 + $0xf98] sm:$0xff] }
 0x125   :  { %4547 = vmatpush1.bf16.msra.mxu0 %v4546_v53  ;;  %4619 = vmatpush1.bf16.msra.mxu1 %v4618_v8  ;;  %v2283_v53 = vld [vmem:[#allocation2 + $0xee0] sm:$0xff]  ;;  %v4560_v8 = vpack.c.bf16 %v2284_v52, %v2280_v24 }
 0x126   :  { %4549 = vmatprep.subr.bf16.mxu0 %v4548_v12  ;;  %4621 = vmatprep.subr.bf16.mxu1 %v4620_v38  ;;  %v2285_v12 = vld [vmem:[#allocation2 + $0xef0] sm:$0xff]  ;;  %v2288_v38 = vld [vmem:[#allocation2 + $0xf08] sm:$0xff]  ;;  %v4562_v6 = vpack.c.bf16 %v2283_v53, %v2279_v31  ;;  %v2307_v24 = vld [vmem:[#allocation2 + $0xfa0] sm:$0xff] }
 0x127   :  { %1987 = vmatprep.mubr.f32.mxu0 %v6088_v1  ;;  %2165 = vmatprep.mubr.f32.mxu1 %v6088_v1  ;;  %v4634_v40 = vpack.c.bf16 %v2285_v12, %v2281_v34  ;;  %v4564_v22 = vpack.c.bf16 %v2292_v18, %v2288_v38  ;;  %v2314_v31 = vld [vmem:[#allocation2 + $0xfd8] sm:$0xff]  ;;  %v2311_v34 = vld [vmem:[#allocation2 + $0xfc0] sm:$0xff] }
 0x128   :  { %4066 = vmatmul.mubr.msk.f32.gmra.mrb[4].mxu0 %vm680_vm7, %v1788_v11  ;;  %4070 = vmatmul.mubr.msk.f32.gmra.mrb[4].mxu1 %vm680_vm7, %v1788_v11  ;;  %v4636_v11 = vpack.c.bf16 %v2294_v4, %v2290_v57  ;;  %v2318_v53 = vld [vmem:[#allocation2 + $0xff8] sm:$0xff]  ;;  %v2315_v12 = vld [vmem:[#allocation2 + $0xfe0] sm:$0xff]  ;;  %v2313_v57 = vld [vmem:[#allocation2 + $0xfd0] sm:$0xff] }
 0x129   :  { %4551 = vmatpush1.bf16.msra.mxu0 %v4550_v54  ;;  %4623 = vmatpush1.bf16.msra.mxu1 %v4622_v15  ;;  %v2289_v54 = vld [vmem:[#allocation2 + $0xf10] sm:$0xff]  ;;  %v4648_v18 = vpack.c.bf16 %v2318_v53, %v2314_v31  ;;  %v2339_v31 = vld [vmem:[#allocation2 + $0x10a0] sm:$0xff] }
 0x12a   :  { %4553 = vmatprep.subr.bf16.mxu0 %v4552_v45  ;;  %4625 = vmatprep.subr.bf16.mxu1 %v4624_v37  ;;  %v2293_v15 = vld [vmem:[#allocation2 + $0xf30] sm:$0xff]  ;;  %v2298_v45 = vld [vmem:[#allocation2 + $0xf58] sm:$0xff] }
 0x12b   :  { %1993 = vmatprep.mubr.f32.mxu0 %v6088_v1  ;;  %2171 = vmatprep.mubr.f32.mxu1 %v6088_v1  ;;  %v2302_v37 = vld [vmem:[#allocation2 + $0xf78] sm:$0xff]  ;;  %v4638_v2 = vpack.c.bf16 %v2293_v15, %v2289_v54  ;;  %v2317_v4 = vld [vmem:[#allocation2 + $0xff0] sm:$0xff]  ;;  %v2319_v54 = vld [vmem:[#allocation2 + $0x1000] sm:$0xff] }
 0x12c   :  { %4067 = vmatmul.mubr.msk.f32.gmra.mrb[6].mxu0 %vm680_vm7, %v1804_v33  ;;  %4071 = vmatmul.mubr.msk.f32.gmra.mrb[6].mxu1 %vm680_vm7, %v1804_v33  ;;  %v4640_v14 = vpack.c.bf16 %v2302_v37, %v2298_v45  ;;  %v2297_v33 = vld [vmem:[#allocation2 + $0xf50] sm:$0xff]  ;;  %v2323_v15 = vld [vmem:[#allocation2 + $0x1020] sm:$0xff]  ;;  %v4652_v45 = vpack.c.bf16 %v2326_v58, %v2322_v46 }
 0x12d   :  { %4555 = vmatpush1.bf16.msra.mxu0 %v4554_v23  ;;  %4627 = vmatpush1.bf16.msra.mxu1 %v4626_v56  ;;  %v2301_v23 = vld [vmem:[#allocation2 + $0xf70] sm:$0xff]  ;;  %v2304_v56 = vld [vmem:[#allocation2 + $0xf88] sm:$0xff] }
 0x12e   :  { %4557 = vmatprep.subr.bf16.mxu0 %v4556_v25  ;;  %4629 = vmatprep.subr.bf16.mxu1 %v4628_v27  ;;  %v2310_v25 = vld [vmem:[#allocation2 + $0xfb8] sm:$0xff]  ;;  %v4570_v27 = vpack.c.bf16 %v2299_v7, %v2295_v0  ;;  %v4642_v42 = vpack.c.bf16 %v2301_v23, %v2297_v33  ;;  %v4572_v52 = vpack.c.bf16 %v2308_v19, %v2304_v56  ;;  %v2325_v37 = vld [vmem:[#allocation2 + $0x1030] sm:$0xff]  ;;  %v2327_v23 = vld [vmem:[#allocation2 + $0x1040] sm:$0xff] }
 0x12f   :  { %2585 = vmatprep.mubr.f32.mxu0 %v2416_v50  ;;  %2763 = vmatprep.mubr.f32.mxu1 %v2416_v50  ;;  %v4644_v49 = vpack.c.bf16 %v2310_v25, %v2306_v20  ;;  %v2309_v50 = vld [vmem:[#allocation2 + $0xfb0] sm:$0xff]  ;;  %v2330_v0 = vld [vmem:[#allocation2 + $0x1058] sm:$0xff]  ;;  %v4654_v33 = vpack.c.bf16 %v2325_v37, %v2321_v44  ;;  %v2331_v56 = vld [vmem:[#allocation2 + $0x1060] sm:$0xff] }
 0x130   :  { %v2334_v7 = vld [vmem:[#allocation2 + $0x1078] sm:$0xff]  ;;  %v2329_v25 = vld [vmem:[#allocation2 + $0x1050] sm:$0xff] }
 0x131   :  { %4559 = vmatpush1.bf16.msra.mxu0 %v4558_v63  ;;  %4631 = vmatpush1.bf16.msra.mxu1 %v4630_v59  ;;  %v2312_v63 = vld [vmem:[#allocation2 + $0xfc8] sm:$0xff]  ;;  %v4656_v20 = vpack.c.bf16 %v2334_v7, %v2330_v0  ;;  %v2337_v53 = vld [vmem:[#allocation2 + $0x1090] sm:$0xff]  ;;  %v2354_v37 = vld [vmem:[#allocation2 + $0x1118] sm:$0xff] }
 0x132   :  { %4561 = vmatprep.subr.bf16.mxu0 %v4560_v8  ;;  %4633 = vmatprep.subr.bf16.mxu1 %v4632_v32  ;;  %v2316_v59 = vld [vmem:[#allocation2 + $0xfe8] sm:$0xff]  ;;  %v4574_v8 = vpack.c.bf16 %v2307_v24, %v2303_v35  ;;  %v4646_v32 = vpack.c.bf16 %v2309_v50, %v2305_v26  ;;  %v2338_v24 = vld [vmem:[#allocation2 + $0x1098] sm:$0xff]  ;;  %v5724_v26 = vld.sshfl [vmem:[%s6036_s0 + $0x40] sm:$0x3 pattern:$0x76325410]  ;;  %v4586_v50 = vpack.c.bf16 %v2331_v56, %v2327_v23 }
 0x133   :  { %v4576_v38 = vpack.c.bf16 %v2316_v59, %v2312_v63  ;;  %v2340_v35 = vld [vmem:[#allocation2 + $0x10a8] sm:$0xff]  ;;  %v2335_v59 = vld [vmem:[#allocation2 + $0x1080] sm:$0xff]  ;;  %v2358_v7 = vld [vmem:[#allocation2 + $0x1138] sm:$0xff] }
 0x134   :  { %v4590_v46 = vpack.c.bf16 %v2339_v31, %v2335_v59  ;;  %v2351_v56 = vld [vmem:[#allocation2 + $0x1100] sm:$0xff] }
 0x135   :  { %4563 = vmatpush1.bf16.msra.mxu0 %v4562_v6  ;;  %4635 = vmatpush1.bf16.msra.mxu1 %v4634_v40  ;;  %v2320_v6 = vld [vmem:[#allocation2 + $0x1008] sm:$0xff] }
 0x136   :  { %4565 = vmatprep.subr.bf16.mxu0 %v4564_v22  ;;  %4637 = vmatprep.subr.bf16.mxu1 %v4636_v11  ;;  %v2324_v40 = vld [vmem:[#allocation2 + $0x1028] sm:$0xff]  ;;  %v4578_v22 = vpack.c.bf16 %v2315_v12, %v2311_v34  ;;  %v4650_v11 = vpack.c.bf16 %v2317_v4, %v2313_v57  ;;  %v2341_v34 = vld [vmem:[#allocation2 + $0x10b0] sm:$0xff]  ;;  %v2346_v57 = vld [vmem:[#allocation2 + $0x10d8] sm:$0xff] }
 0x137   :  { %v4580_v43 = vpack.c.bf16 %v2324_v40, %v2320_v6  ;;  %v2344_v12 = vld [vmem:[#allocation2 + $0x10c8] sm:$0xff]  ;;  %v2350_v4 = vld [vmem:[#allocation2 + $0x10f8] sm:$0xff]  ;;  %v2343_v40 = vld [vmem:[#allocation2 + $0x10c0] sm:$0xff]  ;;  %v4662_v58 = vpack.c.bf16 %v2341_v34, %v2337_v53 }
 0x138   :  { %v4664_v44 = vpack.c.bf16 %v2350_v4, %v2346_v57  ;;  %v6098_v53 = vld [vmem:[#allocation13_spill] sm:$0xff]  ;;  %v6100_v4 = vld [vmem:[#allocation19_spill] sm:$0xff] }
 0x139   :  { %4567 = vmatpush1.bf16.msra.mxu0 %v4566_v48  ;;  %4639 = vmatpush1.bf16.msra.mxu1 %v4638_v2  ;;  %v2328_v48 = vld [vmem:[#allocation2 + $0x1048] sm:$0xff]  ;;  %v2361_v57 = vld [vmem:[#allocation2 + $0x1150] sm:$0xff] }
 0x13a   :  { %4569 = vmatprep.subr.bf16.mxu0 %v4568_v3  ;;  %4641 = vmatprep.subr.bf16.mxu1 %v4640_v14  ;;  %v2332_v2 = vld [vmem:[#allocation2 + $0x1068] sm:$0xff]  ;;  %v4994_v3 = vld [vmem:[%s6036_s0 + $0x30] ss:$8 sps:$4 sm:$0x33]   ;;  %v4582_v14 = vpack.c.bf16 %v2323_v15, %v2319_v54 }
 0x13b   :  { %v4584_v19 = vpack.c.bf16 %v2332_v2, %v2328_v48  ;;  %v2349_v54 = vld [vmem:[#allocation2 + $0x10f0] sm:$0xff]  ;;  %v6096_v48 = vld [vmem:[#allocation11_spill] sm:$0xff] }
 0x13c   :  { %v2232_v2 = vrot.slane %v6096_v48, 2 }
 0x13d   :  { %4571 = vmatpush1.bf16.msra.mxu0 %v4570_v27  ;;  %4643 = vmatpush1.bf16.msra.mxu1 %v4642_v42  ;;  %v2333_v27 = vld [vmem:[#allocation2 + $0x1070] sm:$0xff]  ;;  %v2336_v42 = vld [vmem:[#allocation2 + $0x1088] sm:$0xff] }
 0x13e   :  { %4573 = vmatprep.subr.bf16.mxu0 %v4572_v52  ;;  %4645 = vmatprep.subr.bf16.mxu1 %v4644_v49  ;;  %v2342_v52 = vld [vmem:[#allocation2 + $0x10b8] sm:$0xff]  ;;  %v5719_v49 = vrot.slane %v4994_v3, %v5139_v28  ;;  %v4658_v63 = vpack.c.bf16 %v2333_v27, %v2329_v25  ;;  %v4668_v25 = vpack.c.bf16 %v2358_v7, %v2354_v37  ;;  %v2353_v27 = vld [vmem:[#allocation2 + $0x1110] sm:$0xff] }
 0x13f   :  { %v2374_v37 = vld [vmem:[#allocation2 + $0x11b8] sm:$0xff] }
 0x140   :  { %v2215_v6 = vcombine.low %v5719_v49, %v5724_v26  ;;  %v6104_v7 = vld [vmem:[#allocation15_spill] sm:$0xff] }
 0x141   :  { %4575 = vmatpush1.bf16.msra.mxu0 %v4574_v8  ;;  %4647 = vmatpush1.bf16.msra.mxu1 %v4646_v32  ;;  %v4588_v8 = vpack.c.bf16 %v2340_v35, %v2336_v42  ;;  %v4660_v32 = vpack.c.bf16 %v2342_v52, %v2338_v24  ;;  %v2357_v42 = vld [vmem:[#allocation2 + $0x1130] sm:$0xff]  ;;  %v2360_v35 = vld [vmem:[#allocation2 + $0x1148] sm:$0xff] }
 0x142   :  { %4577 = vmatprep.subr.bf16.mxu0 %v4576_v38  ;;  %4649 = vmatprep.subr.bf16.mxu1 %v4648_v18  ;;  %v4995_v38 = vld [vmem:[%s6036_s0 + $0x78] ss:$8 sps:$4 sm:$0x33]   ;;  %v2348_v18 = vld [vmem:[#allocation2 + $0x10e8] sm:$0xff]  ;;  %v2233_v3 = vrot.slane %v2215_v6, 7  ;;  %v6101_v6 = vrot.slane %v6100_v4, 7 }
 0x143   :  { %v4592_v15 = vpack.c.bf16 %v2348_v18, %v2344_v12  ;;  %v5733_v0 = vrot.slane %v4995_v38, %v5139_v28  ;;  %v2364_v52 = vld [vmem:[#allocation2 + $0x1168] sm:$0xff]  ;;  %v4670_v12 = vpack.c.bf16 %v2357_v42, %v2353_v27  ;;  %v2359_v38 = vld [vmem:[#allocation2 + $0x1140] sm:$0xff]  ;;  %v2369_v42 = vld [vmem:[#allocation2 + $0x1190] sm:$0xff] }
 0x144   :  { %v5743_v31 = vsel %vm5234_vm6, %v2232_v2, %v2233_v3  ;;  %v2363_v18 = vld [vmem:[#allocation2 + $0x1160] sm:$0xff] }
 0x145   :  { %4579 = vmatpush1.bf16.msra.mxu0 %v4578_v22  ;;  %4651 = vmatpush1.bf16.msra.mxu1 %v4650_v11  ;;  %v2347_v22 = vld [vmem:[#allocation2 + $0x10e0] sm:$0xff]  ;;  %v2345_v11 = vld [vmem:[#allocation2 + $0x10d0] sm:$0xff] }
 0x146   :  { %4581 = vmatprep.subr.bf16.mxu0 %v4580_v43  ;;  %4653 = vmatprep.subr.bf16.mxu1 %v4652_v45  ;;  %v2352_v43 = vld [vmem:[#allocation2 + $0x1108] sm:$0xff]  ;;  %v4666_v23 = vpack.c.bf16 %v2349_v54, %v2345_v11  ;;  %v2371_v27 = vld [vmem:[#allocation2 + $0x11a0] sm:$0xff] }
 0x147   :  { %v2356_v45 = vld [vmem:[#allocation2 + $0x1128] sm:$0xff] }
 0x148   :  { %v2368_v11 = vld [vmem:[#allocation2 + $0x1188] sm:$0xff] }
 0x149   :  { %4583 = vmatpush1.bf16.msra.mxu0 %v4582_v14  ;;  %4655 = vmatpush1.bf16.msra.mxu1 %v4654_v33  ;;  %v4073_v14 = vld.sshfl [vmem:[%s6036_s0 + $0x88] sm:$0x3 pattern:$0x76325410]  ;;  %v4594_v33 = vpack.c.bf16 %v2347_v22, %v2343_v40  ;;  %v2235_v40 = vrot.slane %v6101_v6, 2  ;;  %v2365_v22 = vld [vmem:[#allocation2 + $0x1170] sm:$0xff] }
 0x14a   :  { %4585 = vmatprep.subr.bf16.mxu0 %v4584_v19  ;;  %4657 = vmatprep.subr.bf16.mxu1 %v4656_v20  ;;  %v2355_v19 = vld [vmem:[#allocation2 + $0x1120] sm:$0xff]  ;;  %v4596_v20 = vpack.c.bf16 %v2356_v45, %v2352_v43  ;;  %v5739_v24 = vcombine.low %v5733_v0, %v4073_v14  ;;  %v2372_v54 = vld [vmem:[#allocation2 + $0x11a8] sm:$0xff]  ;;  %v2370_v45 = vld [vmem:[#allocation2 + $0x1198] sm:$0xff] }
 0x14b   :  { %v4598_v34 = vpack.c.bf16 %v2355_v19, %v2351_v56  ;;  %v6103_v2 = vld [vmem:[#allocation16_spill] sm:$0xff]  ;;  %v6105_v14 = vld [vmem:[#allocation18_spill] sm:$0xff]  ;;  %v4674_v56 = vpack.c.bf16 %v2365_v22, %v2361_v57  ;;  %v4604_v19 = vpack.c.bf16 %v2372_v54, %v2368_v11 }
 0x14c   :  { %v2236_v43 = vrot.slane %v5739_v24, 7  ;;  %v2453_v3 = vcombine.low %v6104_v7, %v6103_v2  ;;  %v2382_v57 = vld [vmem:[#allocation2 + $0x11f8] sm:$0xff]  ;;  %v2375_v22 = vld [vmem:[#allocation2 + $0x11c0] sm:$0xff]  ;;  %v2377_v54 = vld [vmem:[#allocation2 + $0x11d0] sm:$0xff] }
 0x14d   :  { %4587 = vmatpush1.bf16.msra.mxu0 %v4586_v50  ;;  %4659 = vmatpush1.bf16.msra.mxu1 %v4658_v63  ;;  %v2362_v50 = vld [vmem:[#allocation2 + $0x1158] sm:$0xff]  ;;  %v2379_v11 = vld [vmem:[#allocation2 + $0x11e0] sm:$0xff] }
 0x14e   :  { %4589 = vmatprep.subr.bf16.mxu0 %v4588_v8  ;;  %4661 = vmatprep.subr.bf16.mxu1 %v4660_v32  ;;  %v2366_v63 = vld [vmem:[#allocation2 + $0x1178] sm:$0xff]  ;;  %v6099_v8 = vld [vmem:[#allocation12_spill] sm:$0xff] }
 0x14f   :  { %v2418_v32 = vcombine.low %v6099_v8, %v6098_v53 }
 0x151   :  { %4591 = vmatpush1.bf16.msra.mxu0 %v4590_v46  ;;  %4663 = vmatpush1.bf16.msra.mxu1 %v4662_v58  ;;  %v4600_v46 = vpack.c.bf16 %v2364_v52, %v2360_v35  ;;  %v4672_v58 = vpack.c.bf16 %v2366_v63, %v2362_v50  ;;  %v2428_v48 = vrot.slane %v2418_v32, %v5139_v28  ;;  %v2373_v35 = vld [vmem:[#allocation2 + $0x11b0] sm:$0xff]  ;;  %v2376_v63 = vld [vmem:[#allocation2 + $0x11c8] sm:$0xff] }
 0x152   :  { %4593 = vmatprep.subr.bf16.mxu0 %v4592_v15  ;;  %4665 = vmatprep.subr.bf16.mxu1 %v4664_v44  ;;  %v6102_v15 = vld [vmem:[#allocation14_spill] sm:$0xff]  ;;  %v5760_v50 = vsel %vm5234_vm6, %v2235_v40, %v2236_v43  ;;  %v2415_v32 = vcombine.low %v5700_v47, %v5703_v5  ;;  %v2895_v43 = vld [vmem:[#allocation2 + $0x1208] sm:$0xff] }
 0x153   :  { %v2420_v44 = vcombine.low %v5743_v31, %v6102_v15 }
 0x155   :  { %4595 = vmatpush1.bf16.msra.mxu0 %v4594_v33  ;;  %4667 = vmatpush1.bf16.msra.mxu1 %v4666_v23  ;;  %v2455_v33 = vcombine.low %v6105_v14, %v5484_v17  ;;  %v4602_v23 = vpack.c.bf16 %v2363_v18, %v2359_v38  ;;  %v2442_v52 = vrot.slane %v2420_v44, %v5139_v28  ;;  %v2380_v38 = vld [vmem:[#allocation2 + $0x11e8] sm:$0xff]  ;;  %v2378_v18 = vld [vmem:[#allocation2 + $0x11d8] sm:$0xff]  ;;  %v2381_v44 = vld [vmem:[#allocation2 + $0x11f0] sm:$0xff] }
 0x156   :  { %4597 = vmatprep.subr.bf16.mxu0 %v4596_v20  ;;  %4669 = vmatprep.subr.bf16.mxu1 %v4668_v25  ;;  %v2367_v20 = vld [vmem:[#allocation2 + $0x1180] sm:$0xff]  ;;  %v4676_v25 = vpack.c.bf16 %v2374_v37, %v2370_v45  ;;  %v4608_v47 = vpack.c.bf16 %v2380_v38, %v2376_v63  ;;  %v4680_v5 = vpack.c.bf16 %v2382_v57, %v2378_v18  ;;  %v2899_v37 = vld [vmem:[#allocation2 + $0x1228] sm:$0xff] }
 0x157   :  { %v4606_v6 = vpack.c.bf16 %v2371_v27, %v2367_v20  ;;  %v2451_v40 = vcombine.high %v2428_v48, %v2442_v52  ;;  %v2450_v45 = vcombine.low %v2428_v48, %v2442_v52  ;;  %v4610_v20 = vpack.c.bf16 %v2379_v11, %v2375_v22  ;;  %v2894_v63 = vld [vmem:[#allocation2 + $0x1200] sm:$0xff]  ;;  %v2903_v38 = vld [vmem:[#allocation2 + $0x1248] sm:$0xff] }
 0x158   :  { %v2386_v27 = vcombine.high %v6094_v60, %v5377_v29  ;;  %v4684_v48 = vpack.c.bf16 %v2899_v37, %v2895_v43  ;;  %v2419_v29 = vcombine.high %v6099_v8, %v6098_v53  ;;  %v2421_v60 = vcombine.high %v5743_v31, %v6102_v15  ;;  %v2907_v57 = vld [vmem:[#allocation2 + $0x1268] sm:$0xff]  ;;  %v2902_v22 = vld [vmem:[#allocation2 + $0x1240] sm:$0xff]  ;;  %v2913_v37 = vld [vmem:[#allocation2 + $0x1298] sm:$0xff] }
 0x159   :  { %4599 = vmatpush1.bf16.msra.mxu0 %v4598_v34  ;;  %4671 = vmatpush1.bf16.msra.mxu1 %v4670_v12  ;;  %v2463_v34 = vrot.slane %v2453_v3, %v5139_v28  ;;  %v2477_v12 = vrot.slane %v2455_v33, %v5139_v28  ;;  %v2897_v3 = vld [vmem:[#allocation2 + $0x1218] sm:$0xff]  ;;  %v2454_v31 = vcombine.high %v6104_v7, %v6103_v2  ;;  %v2906_v11 = vld [vmem:[#allocation2 + $0x1260] sm:$0xff]  ;;  %v2911_v43 = vld [vmem:[#allocation2 + $0x1288] sm:$0xff] }
 0x15a   :  { %4601 = vmatprep.subr.bf16.mxu0 %v4600_v46  ;;  %4673 = vmatprep.subr.bf16.mxu1 %v4672_v58  ;;  %v4678_v46 = vpack.c.bf16 %v2373_v35, %v2369_v42  ;;  %v6106_v58 = vld [vmem:[#allocation20_spill] sm:$0xff]  ;;  %v2901_v33 = vld [vmem:[#allocation2 + $0x1238] sm:$0xff]  ;;  %v2449_v53 = vrot.slane %v2421_v60, %v5139_v28  ;;  %v2456_v8 = vcombine.high %v6105_v14, %v5484_v17 }
 0x15b   :  { %v2488_v59 = vcombine.low %v6106_v58, %v5760_v50  ;;  %v4756_v42 = vpack.c.bf16 %v2901_v33, %v2897_v3  ;;  %v2485_v35 = vcombine.low %v2463_v34, %v2477_v12  ;;  %v2917_v3 = vld [vmem:[#allocation2 + $0x12b8] sm:$0xff]  ;;  %v2470_v2 = vrot.slane %v2454_v31, %v5139_v28  ;;  %v2926_v31 = vld [vmem:[#allocation2 + $0x1300] sm:$0xff] }
 0x15c   :  { %v2484_v7 = vrot.slane %v2456_v8, %v5139_v28  ;;  %v4690_v14 = vpack.c.bf16 %v2906_v11, %v2902_v22  ;;  %v2930_v8 = vld [vmem:[#allocation2 + $0x1320] sm:$0xff]  ;;  %v2928_v22 = vld [vmem:[#allocation2 + $0x1310] sm:$0xff] }
 0x15d   :  { %4603 = vmatpush1.bf16.msra.mxu0 %v4602_v23  ;;  %4675 = vmatpush1.bf16.msra.mxu1 %v4674_v56  ;;  %v2486_v23 = vcombine.high %v2463_v34, %v2477_v12  ;;  %v2496_v56 = vrot.slane %v2488_v59, %v5139_v28  ;;  %v2896_v34 = vld [vmem:[#allocation2 + $0x1210] sm:$0xff]  ;;  %v2435_v59 = vrot.slane %v2419_v29, %v5139_v28 }
 0x15e   :  { %4605 = vmatprep.subr.bf16.mxu0 %v4604_v19  ;;  %4677 = vmatprep.subr.bf16.mxu1 %v4676_v25  ;;  %v2384_v19 = vcombine.high %v5306_v51, %v5318_v61  ;;  %v4682_v25 = vpack.c.bf16 %v2381_v44, %v2377_v54  ;;  %v2414_v61 = vrot.slane %v2386_v27, %v5139_v28  ;;  %v2900_v12 = vld [vmem:[#allocation2 + $0x1230] sm:$0xff] }
 0x15f   :  { %v2504_v52 = vcombine.high %v2496_v56, %v2496_v56  ;;  %v2904_v54 = vld [vmem:[#allocation2 + $0x1250] sm:$0xff]  ;;  %v2452_v17 = vcombine.low %v2435_v59, %v2449_v53  ;;  %v2933_v59 = vld [vmem:[#allocation2 + $0x1338] sm:$0xff] }
 0x160   :  { %2586 = vmatmul.mubr.f32.vlgmr.msra.gmra.mrb[0].mxu0 %v2415_v32  ;;  %2764 = vmatmul.mubr.f32.vlgmr.msra.gmra.mrb[0].mxu1 %v2415_v32  ;;  %v2400_v51 = vrot.slane %v2384_v19, %v5139_v28  ;;  %v2898_v32 = vld [vmem:[#allocation2 + $0x1220] sm:$0xff]  ;;  %v2908_v44 = vld [vmem:[#allocation2 + $0x1270] sm:$0xff] }
 0x161   :  { %4607 = vmatpush1.bf16.msra.mxu0 %v4606_v6  ;;  %4679 = vmatpush1.bf16.msra.mxu1 %v4678_v46  ;;  %v2905_v6 = vld [vmem:[#allocation2 + $0x1258] sm:$0xff]  ;;  %v4686_v15 = vpack.c.bf16 %v2898_v32, %v2894_v63  ;;  %v4762_v33 = vpack.c.bf16 %v2908_v44, %v2904_v54  ;;  %v2916_v27 = vld [vmem:[#allocation2 + $0x12b0] sm:$0xff]  ;;  %v2918_v63 = vld [vmem:[#allocation2 + $0x12c0] sm:$0xff] }
 0x162   :  { %2591 = vmatprep.mubr.f32.mxu0 %v2451_v40  ;;  %2769 = vmatprep.mubr.f32.mxu1 %v2451_v40  ;;  %v2417_v18 = vcombine.low %v2400_v51, %v2414_v61  ;;  %v2909_v46 = vld [vmem:[#allocation2 + $0x1278] sm:$0xff]  ;;  %v4758_v40 = vpack.c.bf16 %v2900_v12, %v2896_v34  ;;  %v2487_v51 = vcombine.low %v2470_v2, %v2484_v7  ;;  %v2922_v32 = vld [vmem:[#allocation2 + $0x12e0] sm:$0xff]  ;;  %v2932_v11 = vld [vmem:[#allocation2 + $0x1330] sm:$0xff] }
 0x163   :  { %4609 = vmatprep.subr.bf16.mxu0 %v4608_v47  ;;  %4681 = vmatprep.subr.bf16.mxu1 %v4680_v5  ;;  %v4688_v47 = vpack.c.bf16 %v2907_v57, %v2903_v38  ;;  %v4760_v5 = vpack.c.bf16 %v2909_v46, %v2905_v6  ;;  %v2489_v61 = vcombine.high %v6106_v58, %v5760_v50  ;;  %v2920_v38 = vld [vmem:[#allocation2 + $0x12d0] sm:$0xff]  ;;  %v2927_v57 = vld [vmem:[#allocation2 + $0x1308] sm:$0xff]  ;;  %v2929_v46 = vld [vmem:[#allocation2 + $0x1318] sm:$0xff] }
 0x164   :  { %2592 = vmatmul.mubr.f32.gmra.mrb[2].mxu0 %v2450_v45  ;;  %2770 = vmatmul.mubr.f32.gmra.mrb[2].mxu1 %v2450_v45  ;;  %v2915_v45 = vld [vmem:[#allocation2 + $0x12a8] sm:$0xff]  ;;  %v4698_v58 = vpack.c.bf16 %v2922_v32, %v2918_v63  ;;  %v2937_v54 = vld [vmem:[#allocation2 + $0x1358] sm:$0xff] }
 0x165   :  { %2597 = vmatprep.mubr.f32.mxu0 %v2486_v23  ;;  %2775 = vmatprep.mubr.f32.mxu1 %v2486_v23  ;;  %v2910_v23 = vld [vmem:[#allocation2 + $0x1280] sm:$0xff]  ;;  %v4692_v19 = vpack.c.bf16 %v2915_v45, %v2911_v43  ;;  %v2931_v6 = vld [vmem:[#allocation2 + $0x1328] sm:$0xff]  ;;  %v2503_v50 = vrot.slane %v2489_v61, %v5139_v28  ;;  %v2941_v44 = vld [vmem:[#allocation2 + $0x1378] sm:$0xff]  ;;  %v3039_v43 = vcombine.high %v5531_v41, %v5585_v55 }
 0x166   :  { %4611 = vmatpush1.bf16.msra.mxu0 %v4610_v20  ;;  %4683 = vmatpush1.bf16.msra.mxu1 %v4682_v25  ;;  %v4764_v20 = vpack.c.bf16 %v2917_v3, %v2913_v37  ;;  %v2912_v25 = vld [vmem:[#allocation2 + $0x1290] sm:$0xff]  ;;  %v4702_v45 = vpack.c.bf16 %v2930_v8, %v2926_v31  ;;  %v4774_v37 = vpack.c.bf16 %v2932_v11, %v2928_v22  ;;  %v2934_v3 = vld [vmem:[#allocation2 + $0x1340] sm:$0xff]  ;;  %v2953_v63 = vld [vmem:[#allocation2 + $0x13d8] sm:$0xff] }
 0x167   :  { %4685 = vmatprep.subr.bf16.mxu0 %v4684_v48  ;;  %4757 = vmatprep.subr.bf16.mxu1 %v4756_v42  ;;  %v2919_v48 = vld [vmem:[#allocation2 + $0x12c8] sm:$0xff]  ;;  %v4766_v60 = vpack.c.bf16 %v2916_v27, %v2912_v25  ;;  %v4776_v7 = vpack.c.bf16 %v2941_v44, %v2937_v54  ;;  %v2948_v61 = vld [vmem:[#allocation2 + $0x13b0] sm:$0xff]  ;;  %v2957_v32 = vld [vmem:[#allocation2 + $0x13f8] sm:$0xff] }
 0x168   :  { %2598 = vmatmul.mubr.f32.gmra.mrb[4].mxu0 %v2485_v35  ;;  %2776 = vmatmul.mubr.f32.gmra.mrb[4].mxu1 %v2485_v35  ;;  %v2923_v42 = vld [vmem:[#allocation2 + $0x12e8] sm:$0xff]  ;;  %v2921_v35 = vld [vmem:[#allocation2 + $0x12d8] sm:$0xff]  ;;  %v2962_v22 = vld [vmem:[#allocation2 + $0x1420] sm:$0xff] }
 0x169   :  { %2603 = vmatprep.mubr.f32.mxu0 %v2504_v52  ;;  %2781 = vmatprep.mubr.f32.mxu1 %v2504_v52  ;;  %v2925_v52 = vld [vmem:[#allocation2 + $0x12f8] sm:$0xff]  ;;  %v4696_v34 = vpack.c.bf16 %v2923_v42, %v2919_v48  ;;  %v2942_v48 = vld [vmem:[#allocation2 + $0x1380] sm:$0xff]  ;;  %v2964_v54 = vld [vmem:[#allocation2 + $0x1430] sm:$0xff] }
 0x16a   :  { %v4768_v12 = vpack.c.bf16 %v2925_v52, %v2921_v35  ;;  %v2946_v42 = vld [vmem:[#allocation2 + $0x13a0] sm:$0xff]  ;;  %v2965_v31 = vld [vmem:[#allocation2 + $0x1438] sm:$0xff]  ;;  %v2967_v44 = vld [vmem:[#allocation2 + $0x1448] sm:$0xff] }
 0x16c   :  { %2604 = vmatmul.mubr.f32.gmra.mrb[6].mxu0 %v2496_v56  ;;  %2782 = vmatmul.mubr.f32.gmra.mrb[6].mxu1 %v2496_v56  ;;  %v2914_v56 = vld [vmem:[#allocation2 + $0x12a0] sm:$0xff] }
 0x16d   :  { %2674 = vmatprep.mubr.f32.mxu0 %v6088_v1  ;;  %2852 = vmatprep.mubr.f32.mxu1 %v6088_v1  ;;  %v4694_v29 = vpack.c.bf16 %v2914_v56, %v2910_v23  ;;  %v2943_v23 = vld [vmem:[#allocation2 + $0x1388] sm:$0xff] }
 0x16e   :  { %v2947_v56 = vld [vmem:[#allocation2 + $0x13a8] sm:$0xff] }
 0x16f   :  { %v4708_v35 = vpack.c.bf16 %v2947_v56, %v2943_v23  ;;  %v2968_v23 = vld [vmem:[#allocation2 + $0x1450] sm:$0xff] }
 0x170   :  { %4074 = vmatmul.mubr.msk.f32.vlgmr.msra.gmra.mrb[0].mxu0 %vm680_vm7, %v2417_v18  ;;  %4078 = vmatmul.mubr.msk.f32.vlgmr.msra.gmra.mrb[0].mxu1 %vm680_vm7, %v2417_v18  ;;  %v2924_v18 = vld [vmem:[#allocation2 + $0x12f0] sm:$0xff] }
 0x171   :  { %4687 = vmatpush1.bf16.msra.mxu0 %v4686_v15  ;;  %4759 = vmatpush1.bf16.msra.mxu1 %v4758_v40  ;;  %v4770_v53 = vpack.c.bf16 %v2924_v18, %v2920_v38  ;;  %v4700_v15 = vpack.c.bf16 %v2931_v6, %v2927_v57  ;;  %v4772_v40 = vpack.c.bf16 %v2933_v59, %v2929_v46  ;;  %v2950_v38 = vld [vmem:[#allocation2 + $0x13c0] sm:$0xff]  ;;  %v2952_v46 = vld [vmem:[#allocation2 + $0x13d0] sm:$0xff] }
 0x172   :  { %4689 = vmatprep.subr.bf16.mxu0 %v4688_v47  ;;  %4761 = vmatprep.subr.bf16.mxu1 %v4760_v5  ;;  %v2935_v47 = vld [vmem:[#allocation2 + $0x1348] sm:$0xff]  ;;  %v2954_v18 = vld [vmem:[#allocation2 + $0x13e0] sm:$0xff]  ;;  %v4784_v6 = vpack.c.bf16 %v2957_v32, %v2953_v63  ;;  %v2956_v59 = vld [vmem:[#allocation2 + $0x13f0] sm:$0xff] }
 0x173   :  { %2680 = vmatprep.mubr.f32.mxu0 %v6088_v1  ;;  %2858 = vmatprep.mubr.f32.mxu1 %v6088_v1  ;;  %v2939_v5 = vld [vmem:[#allocation2 + $0x1368] sm:$0xff]  ;;  %v4714_v8 = vpack.c.bf16 %v2954_v18, %v2950_v38  ;;  %v2972_v56 = vld [vmem:[#allocation2 + $0x1470] sm:$0xff] }
 0x174   :  { %4075 = vmatmul.mubr.msk.f32.gmra.mrb[2].mxu0 %vm680_vm7, %v2452_v17  ;;  %4079 = vmatmul.mubr.msk.f32.gmra.mrb[2].mxu1 %vm680_vm7, %v2452_v17  ;;  %v2938_v17 = vld [vmem:[#allocation2 + $0x1360] sm:$0xff]  ;;  %v4704_v2 = vpack.c.bf16 %v2939_v5, %v2935_v47  ;;  %v2960_v5 = vld [vmem:[#allocation2 + $0x1410] sm:$0xff]  ;;  %v2983_v63 = vld [vmem:[#allocation2 + $0x14c8] sm:$0xff] }
 0x175   :  { %4691 = vmatpush1.bf16.msra.mxu0 %v4690_v14  ;;  %4763 = vmatpush1.bf16.msra.mxu1 %v4762_v33  ;;  %v2936_v14 = vld [vmem:[#allocation2 + $0x1350] sm:$0xff]  ;;  %v4706_v25 = vpack.c.bf16 %v2938_v17, %v2934_v3  ;;  %v4790_v17 = vpack.c.bf16 %v2964_v54, %v2960_v5  ;;  %v2987_v32 = vld [vmem:[#allocation2 + $0x14e8] sm:$0xff] }
 0x176   :  { %4693 = vmatprep.subr.bf16.mxu0 %v4692_v19  ;;  %4765 = vmatprep.subr.bf16.mxu1 %v4764_v20  ;;  %v2940_v33 = vld [vmem:[#allocation2 + $0x1370] sm:$0xff]  ;;  %v2945_v19 = vld [vmem:[#allocation2 + $0x1398] sm:$0xff] }
 0x177   :  { %2686 = vmatprep.mubr.f32.mxu0 %v6088_v1  ;;  %2864 = vmatprep.mubr.f32.mxu1 %v6088_v1  ;;  %v2949_v20 = vld [vmem:[#allocation2 + $0x13b8] sm:$0xff]  ;;  %v4778_v27 = vpack.c.bf16 %v2940_v33, %v2936_v14 }
 0x178   :  { %4076 = vmatmul.mubr.msk.f32.gmra.mrb[4].mxu0 %vm680_vm7, %v2487_v51  ;;  %4080 = vmatmul.mubr.msk.f32.gmra.mrb[4].mxu1 %vm680_vm7, %v2487_v51  ;;  %v4780_v52 = vpack.c.bf16 %v2949_v20, %v2945_v19  ;;  %v2944_v51 = vld [vmem:[#allocation2 + $0x1390] sm:$0xff]  ;;  %v2975_v19 = vld [vmem:[#allocation2 + $0x1488] sm:$0xff] }
 0x179   :  { %4695 = vmatpush1.bf16.msra.mxu0 %v4694_v29  ;;  %4767 = vmatpush1.bf16.msra.mxu1 %v4766_v60  ;;  %v2951_v29 = vld [vmem:[#allocation2 + $0x13c8] sm:$0xff] }
 0x17a   :  { %4697 = vmatprep.subr.bf16.mxu0 %v4696_v34  ;;  %4769 = vmatprep.subr.bf16.mxu1 %v4768_v12  ;;  %v2955_v60 = vld [vmem:[#allocation2 + $0x13e8] sm:$0xff]  ;;  %v4710_v34 = vpack.c.bf16 %v2946_v42, %v2942_v48  ;;  %v4782_v12 = vpack.c.bf16 %v2948_v61, %v2944_v51  ;;  %v4794_v42 = vpack.c.bf16 %v2972_v56, %v2968_v23 }
 0x17b   :  { %2692 = vmatprep.mubr.f32.mxu0 %v6088_v1  ;;  %2870 = vmatprep.mubr.f32.mxu1 %v6088_v1  ;;  %v4712_v57 = vpack.c.bf16 %v2955_v60, %v2951_v29  ;;  %v2979_v20 = vld [vmem:[#allocation2 + $0x14a8] sm:$0xff]  ;;  %v2976_v29 = vld [vmem:[#allocation2 + $0x1490] sm:$0xff] }
 0x17c   :  { %4077 = vmatmul.mubr.msk.f32.gmra.mrb[6].mxu0 %vm680_vm7, %v2503_v50  ;;  %4081 = vmatmul.mubr.msk.f32.gmra.mrb[6].mxu1 %vm680_vm7, %v2503_v50  ;;  %v2959_v50 = vld [vmem:[#allocation2 + $0x1408] sm:$0xff]  ;;  %v4724_v51 = vpack.c.bf16 %v2979_v20, %v2975_v19  ;;  %v2980_v60 = vld [vmem:[#allocation2 + $0x14b0] sm:$0xff] }
 0x17d   :  { %4699 = vmatpush1.bf16.msra.mxu0 %v4698_v58  ;;  %4771 = vmatpush1.bf16.msra.mxu1 %v4770_v53  ;;  %v2963_v58 = vld [vmem:[#allocation2 + $0x1428] sm:$0xff]  ;;  %v2961_v53 = vld [vmem:[#allocation2 + $0x1418] sm:$0xff]  ;;  %v4798_v18 = vpack.c.bf16 %v2980_v60, %v2976_v29  ;;  %v3000_v19 = vld [vmem:[#allocation2 + $0x1550] sm:$0xff] }
 0x17e   :  { %4701 = vmatprep.subr.bf16.mxu0 %v4700_v15  ;;  %4773 = vmatprep.subr.bf16.mxu1 %v4772_v40  ;;  %v4786_v15 = vpack.c.bf16 %v2956_v59, %v2952_v46  ;;  %v2958_v40 = vld [vmem:[#allocation2 + $0x1400] sm:$0xff]  ;;  %v4716_v11 = vpack.c.bf16 %v2963_v58, %v2959_v50  ;;  %v4788_v47 = vpack.c.bf16 %v2965_v31, %v2961_v53  ;;  %v2984_v50 = vld [vmem:[#allocation2 + $0x14d0] sm:$0xff]  ;;  %v2991_v53 = vld [vmem:[#allocation2 + $0x1508] sm:$0xff] }
 0x17f   :  { %3176 = vmatprep.mubr.f32.mxu0 %v3039_v43  ;;  %3354 = vmatprep.mubr.f32.mxu1 %v3039_v43  ;;  %v2971_v43 = vld [vmem:[#allocation2 + $0x1468] sm:$0xff]  ;;  %v4718_v3 = vpack.c.bf16 %v2962_v22, %v2958_v40  ;;  %v4728_v46 = vpack.c.bf16 %v2987_v32, %v2983_v63  ;;  %v2988_v58 = vld [vmem:[#allocation2 + $0x14f0] sm:$0xff] }
 0x180   :  { %v4720_v14 = vpack.c.bf16 %v2971_v43, %v2967_v44  ;;  %v2995_v31 = vld [vmem:[#allocation2 + $0x1528] sm:$0xff]  ;;  %v4802_v22 = vpack.c.bf16 %v2988_v58, %v2984_v50  ;;  %v2992_v44 = vld [vmem:[#allocation2 + $0x1510] sm:$0xff] }
 0x181   :  { %4703 = vmatpush1.bf16.msra.mxu0 %v4702_v45  ;;  %4775 = vmatpush1.bf16.msra.mxu1 %v4774_v37  ;;  %v2969_v45 = vld [vmem:[#allocation2 + $0x1458] sm:$0xff]  ;;  %v4732_v5 = vpack.c.bf16 %v2995_v31, %v2991_v53  ;;  %v2996_v43 = vld [vmem:[#allocation2 + $0x1530] sm:$0xff] }
 0x182   :  { %4705 = vmatprep.subr.bf16.mxu0 %v4704_v2  ;;  %4777 = vmatprep.subr.bf16.mxu1 %v4776_v7  ;;  %v2973_v37 = vld [vmem:[#allocation2 + $0x1478] sm:$0xff]  ;;  %v2966_v2 = vld [vmem:[#allocation2 + $0x1440] sm:$0xff]  ;;  %v3004_v20 = vld [vmem:[#allocation2 + $0x1570] sm:$0xff] }
 0x183   :  { %v2970_v7 = vld [vmem:[#allocation2 + $0x1460] sm:$0xff]  ;;  %v4792_v33 = vpack.c.bf16 %v2973_v37, %v2969_v45  ;;  %v2999_v45 = vld [vmem:[#allocation2 + $0x1548] sm:$0xff]  ;;  %v3008_v63 = vld [vmem:[#allocation2 + $0x1590] sm:$0xff] }
 0x184   :  { %v4722_v48 = vpack.c.bf16 %v2970_v7, %v2966_v2  ;;  %v3003_v37 = vld [vmem:[#allocation2 + $0x1568] sm:$0xff]  ;;  %v4806_v7 = vpack.c.bf16 %v2996_v43, %v2992_v44  ;;  %v3012_v32 = vld [vmem:[#allocation2 + $0x15b0] sm:$0xff]  ;;  %v3051_v44 = vrot.slane %v5257_v16, %v5139_v28 }
 0x185   :  { %4707 = vmatpush1.bf16.msra.mxu0 %v4706_v25  ;;  %4779 = vmatpush1.bf16.msra.mxu1 %v4778_v27  ;;  %v2977_v25 = vld [vmem:[#allocation2 + $0x1498] sm:$0xff]  ;;  %v4736_v23 = vpack.c.bf16 %v3003_v37, %v2999_v45  ;;  %v3016_v53 = vld [vmem:[#allocation2 + $0x15d0] sm:$0xff]  ;;  %v3026_v37 = vld [vmem:[#allocation2 + $0x1620] sm:$0xff] }
 0x186   :  { %4709 = vmatprep.subr.bf16.mxu0 %v4708_v35  ;;  %4781 = vmatprep.subr.bf16.mxu1 %v4780_v52  ;;  %v2981_v27 = vld [vmem:[#allocation2 + $0x14b8] sm:$0xff]  ;;  %v2974_v35 = vld [vmem:[#allocation2 + $0x1480] sm:$0xff]  ;;  %v3020_v31 = vld [vmem:[#allocation2 + $0x15f0] sm:$0xff] }
 0x187   :  { %v2978_v52 = vld [vmem:[#allocation2 + $0x14a0] sm:$0xff]  ;;  %v4796_v61 = vpack.c.bf16 %v2981_v27, %v2977_v25  ;;  %v3007_v25 = vld [vmem:[#allocation2 + $0x1588] sm:$0xff] }
 0x188   :  { %v4726_v38 = vpack.c.bf16 %v2978_v52, %v2974_v35  ;;  %v3011_v27 = vld [vmem:[#allocation2 + $0x15a8] sm:$0xff]  ;;  %v4810_v52 = vpack.c.bf16 %v3004_v20, %v3000_v19  ;;  %v3030_v20 = vld [vmem:[#allocation2 + $0x1640] sm:$0xff] }
 0x189   :  { %4711 = vmatpush1.bf16.msra.mxu0 %v4710_v34  ;;  %4783 = vmatpush1.bf16.msra.mxu1 %v4782_v12  ;;  %v2985_v34 = vld [vmem:[#allocation2 + $0x14d8] sm:$0xff]  ;;  %v4740_v29 = vpack.c.bf16 %v3011_v27, %v3007_v25 }
 0x18a   :  { %4713 = vmatprep.subr.bf16.mxu0 %v4712_v57  ;;  %4785 = vmatprep.subr.bf16.mxu1 %v4784_v6  ;;  %v2989_v12 = vld [vmem:[#allocation2 + $0x14f8] sm:$0xff]  ;;  %v2982_v57 = vld [vmem:[#allocation2 + $0x14c0] sm:$0xff] }
 0x18b   :  { %v2986_v6 = vld [vmem:[#allocation2 + $0x14e0] sm:$0xff]  ;;  %v4800_v59 = vpack.c.bf16 %v2989_v12, %v2985_v34  ;;  %v3015_v34 = vld [vmem:[#allocation2 + $0x15c8] sm:$0xff] }
 0x18c   :  { %v4730_v40 = vpack.c.bf16 %v2986_v6, %v2982_v57  ;;  %v3019_v12 = vld [vmem:[#allocation2 + $0x15e8] sm:$0xff]  ;;  %v4814_v6 = vpack.c.bf16 %v3012_v32, %v3008_v63 }
 0x18d   :  { %4715 = vmatpush1.bf16.msra.mxu0 %v4714_v8  ;;  %4787 = vmatpush1.bf16.msra.mxu1 %v4786_v15  ;;  %v2993_v8 = vld [vmem:[#allocation2 + $0x1518] sm:$0xff]  ;;  %v4744_v50 = vpack.c.bf16 %v3019_v12, %v3015_v34 }
 0x18e   :  { %4717 = vmatprep.subr.bf16.mxu0 %v4716_v11  ;;  %4789 = vmatprep.subr.bf16.mxu1 %v4788_v47  ;;  %v2997_v15 = vld [vmem:[#allocation2 + $0x1538] sm:$0xff]  ;;  %v2990_v11 = vld [vmem:[#allocation2 + $0x1500] sm:$0xff] }
 0x18f   :  { %v2994_v47 = vld [vmem:[#allocation2 + $0x1520] sm:$0xff]  ;;  %v4804_v54 = vpack.c.bf16 %v2997_v15, %v2993_v8  ;;  %v3023_v8 = vld [vmem:[#allocation2 + $0x1608] sm:$0xff]  ;;  %v4082_v15 = vcombine.low %v5719_v49, %v5359_v39 }
 0x190   :  { %v4734_v2 = vpack.c.bf16 %v2994_v47, %v2990_v11  ;;  %v3029_v11 = vld [vmem:[#allocation2 + $0x1638] sm:$0xff]  ;;  %v3031_v49 = vld [vmem:[#allocation2 + $0x1648] sm:$0xff] }
 0x191   :  { %4719 = vmatpush1.bf16.msra.mxu0 %v4718_v3  ;;  %4791 = vmatpush1.bf16.msra.mxu1 %v4790_v17  ;;  %v3001_v3 = vld [vmem:[#allocation2 + $0x1558] sm:$0xff]  ;;  %v3065_v39 = vrot.slane %v4082_v15, %v5139_v28 }
 0x192   :  { %4721 = vmatprep.subr.bf16.mxu0 %v4720_v14  ;;  %4793 = vmatprep.subr.bf16.mxu1 %v4792_v33  ;;  %v3005_v17 = vld [vmem:[#allocation2 + $0x1578] sm:$0xff]  ;;  %v2998_v14 = vld [vmem:[#allocation2 + $0x1540] sm:$0xff] }
 0x193   :  { %v3002_v33 = vld [vmem:[#allocation2 + $0x1560] sm:$0xff]  ;;  %v4808_v56 = vpack.c.bf16 %v3005_v17, %v3001_v3  ;;  %v3024_v3 = vld [vmem:[#allocation2 + $0x1610] sm:$0xff]  ;;  %v3074_v19 = vcombine.high %v3051_v44, %v3065_v39 }
 0x194   :  { %v4738_v35 = vpack.c.bf16 %v3002_v33, %v2998_v14  ;;  %v3028_v17 = vld [vmem:[#allocation2 + $0x1630] sm:$0xff]  ;;  %v3033_v14 = vld [vmem:[#allocation2 + $0x1658] sm:$0xff] }
 0x195   :  { %4723 = vmatpush1.bf16.msra.mxu0 %v4722_v48  ;;  %4795 = vmatpush1.bf16.msra.mxu1 %v4794_v42  ;;  %v3009_v48 = vld [vmem:[#allocation2 + $0x1598] sm:$0xff]  ;;  %v4822_v16 = vpack.c.bf16 %v3028_v17, %v3024_v3 }
 0x196   :  { %4725 = vmatprep.subr.bf16.mxu0 %v4724_v51  ;;  %4797 = vmatprep.subr.bf16.mxu1 %v4796_v61  ;;  %v3013_v42 = vld [vmem:[#allocation2 + $0x15b8] sm:$0xff]  ;;  %v3006_v51 = vld [vmem:[#allocation2 + $0x1580] sm:$0xff] }
 0x197   :  { %v3010_v61 = vld [vmem:[#allocation2 + $0x15a0] sm:$0xff]  ;;  %v4812_v60 = vpack.c.bf16 %v3013_v42, %v3009_v48  ;;  %v3037_v33 = vld [vmem:[#allocation2 + $0x1678] sm:$0xff]  ;;  %v3032_v42 = vld [vmem:[#allocation2 + $0x1650] sm:$0xff] }
 0x198   :  { %v4742_v57 = vpack.c.bf16 %v3010_v61, %v3006_v51  ;;  %v4824_v27 = vpack.c.bf16 %v3037_v33, %v3033_v14  ;;  %v3034_v48 = vld [vmem:[#allocation2 + $0x1660] sm:$0xff]  ;;  %v3076_v51 = vcombine.low %v5595_v10, %v5604_v13 }
 0x199   :  { %4727 = vmatpush1.bf16.msra.mxu0 %v4726_v38  ;;  %4799 = vmatpush1.bf16.msra.mxu1 %v4798_v18  ;;  %v3017_v38 = vld [vmem:[#allocation2 + $0x15d8] sm:$0xff] }
 0x19a   :  { %4729 = vmatprep.subr.bf16.mxu0 %v4728_v46  ;;  %4801 = vmatprep.subr.bf16.mxu1 %v4800_v59  ;;  %v3021_v18 = vld [vmem:[#allocation2 + $0x15f8] sm:$0xff]  ;;  %v3014_v46 = vld [vmem:[#allocation2 + $0x15c0] sm:$0xff] }
 0x19b   :  { %v3018_v59 = vld [vmem:[#allocation2 + $0x15e0] sm:$0xff]  ;;  %v4816_v58 = vpack.c.bf16 %v3021_v18, %v3017_v38 }
 0x19c   :  { %v4746_v47 = vpack.c.bf16 %v3018_v59, %v3014_v46 }
 0x19d   :  { %4731 = vmatpush1.bf16.msra.mxu0 %v4730_v40  ;;  %4803 = vmatpush1.bf16.msra.mxu1 %v4802_v22  ;;  %v3027_v40 = vld [vmem:[#allocation2 + $0x1628] sm:$0xff]  ;;  %v3025_v22 = vld [vmem:[#allocation2 + $0x1618] sm:$0xff] }
 0x19e   :  { %4733 = vmatprep.subr.bf16.mxu0 %v4732_v5  ;;  %4805 = vmatprep.subr.bf16.mxu1 %v4804_v54  ;;  %v4818_v5 = vpack.c.bf16 %v3020_v31, %v3016_v53  ;;  %v3022_v54 = vld [vmem:[#allocation2 + $0x1600] sm:$0xff]  ;;  %v4748_v43 = vpack.c.bf16 %v3027_v40, %v3023_v8  ;;  %v4820_v45 = vpack.c.bf16 %v3029_v11, %v3025_v22 }
 0x1a1   :  { %4735 = vmatpush1.bf16.msra.mxu0 %v4734_v2  ;;  %4807 = vmatpush1.bf16.msra.mxu1 %v4806_v7  ;;  %v3038_v2 = vcombine.low %v5531_v41, %v5585_v55  ;;  %v3035_v7 = vld [vmem:[#allocation2 + $0x1668] sm:$0xff]  ;;  %v3073_v41 = vcombine.low %v3051_v44, %v3065_v39  ;;  %v3077_v55 = vcombine.high %v5595_v10, %v5604_v13 }
 0x1a2   :  { %4737 = vmatprep.subr.bf16.mxu0 %v4736_v23  ;;  %4809 = vmatprep.subr.bf16.mxu1 %v4808_v56  ;;  %v4750_v23 = vpack.c.bf16 %v3026_v37, %v3022_v54  ;;  %v4084_v56 = vcombine.low %v6100_v4, %v5733_v0  ;;  %v4752_v25 = vpack.c.bf16 %v3035_v7, %v3031_v49  ;;  %v6107_v10 = vld [vmem:[#allocation21_spill] sm:$0xff] }
 0x1a3   :  { %v4754_v0 = vpack.c.bf16 %v3034_v48, %v3030_v20  ;;  %v4085_v13 = vcombine.high %v6095_v21, %v5739_v24  ;;  %v3484_v24 = vld [vmem:[#allocation4] sm:$0xf] }
 0x1a5   :  { %4739 = vmatpush1.bf16.msra.mxu0 %v4738_v35  ;;  %4811 = vmatpush1.bf16.msra.mxu1 %v4810_v52  ;;  %v3036_v35 = vld [vmem:[#allocation2 + $0x1670] sm:$0xff]  ;;  %v3087_v52 = vrot.slane %v4084_v56, %v5139_v28 }
 0x1a6   :  { %4741 = vmatprep.subr.bf16.mxu0 %v4740_v29  ;;  %4813 = vmatprep.subr.bf16.mxu1 %v4812_v60  ;;  %v4826_v4 = vpack.c.bf16 %v3036_v35, %v3032_v42  ;;  %v4083_v29 = vcombine.low %v5724_v26, %v5362_v62  ;;  %v3058_v60 = vrot.slane %v5280_v30, %v5139_v28 }
 0x1a7   :  { %v3095_v61 = vcombine.high %v3087_v52, %v3087_v52  ;;  %v3078_v30 = vcombine.low %v5627_v36, %v5651_v9  ;;  %v3094_v26 = vrot.slane %v4085_v13, %v5139_v28  ;;  %v6108_v36 = vld [vmem:[#allocation8_spill] sm:$0xff] }
 0x1a8   :  { %v3072_v63 = vrot.slane %v4083_v29, %v5139_v28  ;;  %v5851_v9 = vsub.s32 0, %v6108_v36  ;;  %v5854_v21 = vsub.s32 2, %v6108_v36  ;;  %v3492_v32 = vsub.s32 1, %v6108_v36 }
 0x1a9   :  { %4743 = vmatpush1.bf16.msra.mxu0 %v4742_v57  ;;  %4815 = vmatpush1.bf16.msra.mxu1 %v4814_v6  ;;  %v3500_v34 = vsub.s32 3, %v6108_v36 }
 0x1aa   :  { %4745 = vmatprep.subr.bf16.mxu0 %v4744_v50  ;;  %4817 = vmatprep.subr.bf16.mxu1 %v4816_v58  ;;  %v3075_v62 = vcombine.low %v3058_v60, %v3072_v63  ;;  %v5859_v12 = vrot.slane %v3484_v24, %v5851_v9  ;;  %v5864_v38 = vrot.slane %v3484_v24, %v3492_v32 }
 0x1ab   :  { %v5866_v18 = vrot.slane %v3484_v24, %v3500_v34 }
 0x1ad   :  { %4747 = vmatpush1.bf16.msra.mxu0 %v4746_v47  ;;  %4819 = vmatpush1.bf16.msra.mxu1 %v4818_v5 }
 0x1ae   :  { %4749 = vmatprep.subr.bf16.mxu0 %v4748_v43  ;;  %4821 = vmatprep.subr.bf16.mxu1 %v4820_v45 }
 0x1b0   :  { %3177 = vmatmul.mubr.f32.vlgmr.msra.gmra.mrb[0].mxu0 %v3038_v2  ;;  %3355 = vmatmul.mubr.f32.vlgmr.msra.gmra.mrb[0].mxu1 %v3038_v2 }
 0x1b1   :  { %4751 = vmatpush1.bf16.msra.mxu0 %v4750_v23  ;;  %4823 = vmatpush1.bf16.msra.mxu1 %v4822_v16 }
 0x1b2   :  { %3182 = vmatprep.mubr.f32.mxu0 %v3074_v19  ;;  %3360 = vmatprep.mubr.f32.mxu1 %v3074_v19 }
 0x1b3   :  { %4753 = vmatprep.subr.bf16.mxu0 %v4752_v25  ;;  %4825 = vmatprep.subr.bf16.mxu1 %v4824_v27 }
 0x1b4   :  { %3183 = vmatmul.mubr.f32.gmra.mrb[2].mxu0 %v3073_v41  ;;  %3361 = vmatmul.mubr.f32.gmra.mrb[2].mxu1 %v3073_v41 }
 0x1b5   :  { %3188 = vmatprep.mubr.f32.mxu0 %v3077_v55  ;;  %3366 = vmatprep.mubr.f32.mxu1 %v3077_v55 }
 0x1b6   :  { %4755 = vmatpush1.bf16.msra.mxu0 %v4754_v0  ;;  %4827 = vmatpush1.bf16.msra.mxu1 %v4826_v4 }
 0x1b8   :  { %3189 = vmatmul.mubr.f32.gmra.mrb[4].mxu0 %v3076_v51  ;;  %3367 = vmatmul.mubr.f32.gmra.mrb[4].mxu1 %v3076_v51 }
 0x1b9   :  { %3194 = vmatprep.mubr.f32.mxu0 %v3095_v61  ;;  %3372 = vmatprep.mubr.f32.mxu1 %v3095_v61 }
 0x1bc   :  { %3195 = vmatmul.mubr.f32.gmra.mrb[6].mxu0 %v3087_v52  ;;  %3373 = vmatmul.mubr.f32.gmra.mrb[6].mxu1 %v3087_v52 }
 0x1bd   :  { %3265 = vmatprep.mubr.f32.mxu0 %v6088_v1  ;;  %3443 = vmatprep.mubr.f32.mxu1 %v6088_v1 }
 0x1c0   :  { %4086 = vmatmul.mubr.msk.f32.vlgmr.msra.gmra.mrb[0].mxu0 %vm680_vm7, %v6107_v10  ;;  %4090 = vmatmul.mubr.msk.f32.vlgmr.msra.gmra.mrb[0].mxu1 %vm680_vm7, %v6107_v10 }
 0x1c1   :  { %3271 = vmatprep.mubr.f32.mxu0 %v6088_v1  ;;  %3449 = vmatprep.mubr.f32.mxu1 %v6088_v1 }
 0x1c4   :  { %4087 = vmatmul.mubr.msk.f32.gmra.mrb[2].mxu0 %vm680_vm7, %v3075_v62  ;;  %4091 = vmatmul.mubr.msk.f32.gmra.mrb[2].mxu1 %vm680_vm7, %v3075_v62 }
 0x1c5   :  { %3277 = vmatprep.mubr.f32.mxu0 %v6088_v1  ;;  %3455 = vmatprep.mubr.f32.mxu1 %v6088_v1 }
 0x1c8   :  { %4088 = vmatmul.mubr.msk.f32.gmra.mrb[4].mxu0 %vm680_vm7, %v3078_v30  ;;  %4092 = vmatmul.mubr.msk.f32.gmra.mrb[4].mxu1 %vm680_vm7, %v3078_v30 }
 0x1c9   :  { %3283 = vmatprep.mubr.f32.mxu0 %v6088_v1  ;;  %3461 = vmatprep.mubr.f32.mxu1 %v6088_v1  ;;  %v5862_v1 = vrot.slane %v3484_v24, %v5854_v21 }
 0x1cc   :  { %4089 = vmatmul.mubr.msk.f32.gmra.mrb[6].mxu0 %vm680_vm7, %v3094_v26  ;;  %4093 = vmatmul.mubr.msk.f32.gmra.mrb[6].mxu1 %vm680_vm7, %v3094_v26 }
 0x293   :  { %v3267_v57 = vpop.f32.mrb[0].mxu0  ;;  %v3445_v6 = vpop.f32.mrb[0].mxu1 }
 0x294   :  { %v3506_v46 = vadd.f32 %v5859_v12, %v3267_v57  ;;  %v3508_v59 = vadd.f32 %v5862_v1, %v3445_v6  ;;  %v3269_v50 = vpop.f32.mrb[1].mxu0  ;;  %v3447_v58 = vpop.f32.mrb[1].mxu1 }
 0x295   :  { %v3507_v53 = vadd.f32 %v5864_v38, %v3269_v50  ;;  %v3509_v31 = vadd.f32 %v5866_v18, %v3447_v58 }
 0x296   :  { %v3522_v8 = vmax.f32 %v3506_v46, 0.0  ;;  %v3524_v15 = vmax.f32 %v3508_v59, 0.0 }
 0x297   :  { %v3523_v40 = vmax.f32 %v3507_v53, 0.0  ;;  %v3525_v22 = vmax.f32 %v3509_v31, 0.0  ;;  %v3273_v11 = vpop.f32.mrb[2].mxu0  ;;  %v3451_v47 = vpop.f32.mrb[2].mxu1 }
 0x298   :  { %v3510_v5 = vadd.f32 %v5859_v12, %v3273_v11  ;;  %v3512_v54 = vadd.f32 %v5862_v1, %v3451_v47  ;;  %v3275_v44 = vpop.f32.mrb[3].mxu0  ;;  %v3453_v43 = vpop.f32.mrb[3].mxu1 }
 0x299   :  { %v3554_v45 = vcombine.low %v3522_v8, %v3523_v40  ;;  %v3555_v37 = vcombine.high %v3522_v8, %v3523_v40  ;;  %v3556_v3 = vcombine.low %v3524_v15, %v3525_v22  ;;  %v3557_v17 = vcombine.high %v3524_v15, %v3525_v22 }
 0x29a   :  { %v3526_v39 = vmax.f32 %v3510_v5, 0.0  ;;  %v3528_v49 = vmax.f32 %v3512_v54, 0.0  ;;  %v3511_v2 = vadd.f32 %v5864_v38, %v3275_v44  ;;  %v3513_v7 = vadd.f32 %v5866_v18, %v3453_v43 }
 0x29b   :  { %v3564_v14 = vrot.slane %v3554_v45, %v5139_v28  ;;  %v3571_v33 = vrot.slane %v3555_v37, %v5139_v28  ;;  %v3578_v23 = vrot.slane %v3556_v3, %v5139_v28  ;;  %v3585_v16 = vrot.slane %v3557_v17, %v5139_v28  ;;  %v3279_v56 = vpop.f32.mrb[4].mxu0  ;;  %v3457_v19 = vpop.f32.mrb[4].mxu1 }
 0x29c   :  { %v3527_v20 = vmax.f32 %v3511_v2, 0.0  ;;  %v3529_v25 = vmax.f32 %v3513_v7, 0.0  ;;  %v3514_v27 = vadd.f32 %v5859_v12, %v3279_v56  ;;  %v3516_v48 = vadd.f32 %v5862_v1, %v3457_v19  ;;  %v3281_v42 = vpop.f32.mrb[5].mxu0  ;;  %v3459_v35 = vpop.f32.mrb[5].mxu1 }
 0x29d   :  { %v3515_v41 = vadd.f32 %v5864_v38, %v3281_v42  ;;  %v3517_v55 = vadd.f32 %v5866_v18, %v3459_v35  ;;  %v3586_v52 = vcombine.low %v3564_v14, %v3578_v23  ;;  %v3587_v0 = vcombine.high %v3564_v14, %v3578_v23 }
 0x29e   :  { %v3590_v4 = vcombine.low %v3526_v39, %v3527_v20  ;;  %v3591_v51 = vcombine.high %v3526_v39, %v3527_v20  ;;  %v3592_v61 = vcombine.low %v3528_v49, %v3529_v25  ;;  %v3593_v29 = vcombine.high %v3528_v49, %v3529_v25 }
 0x29f   :  { %v3530_v60 = vmax.f32 %v3514_v27, 0.0  ;;  %v3532_v63 = vmax.f32 %v3516_v48, 0.0  ;;  %v3531_v10 = vmax.f32 %v3515_v41, 0.0  ;;  %v3533_v62 = vmax.f32 %v3517_v55, 0.0  ;;  %v3285_v30 = vpop.f32.mrb[6].mxu0  ;;  %v3463_v13 = vpop.f32.mrb[6].mxu1 }
 0x2a0   :  { %v3600_v26 = vrot.slane %v3590_v4, %v5139_v28  ;;  %v3607_v36 = vrot.slane %v3591_v51, %v5139_v28  ;;  %v3614_v24 = vrot.slane %v3592_v61, %v5139_v28  ;;  %v3621_v32 = vrot.slane %v3593_v29, %v5139_v28  ;;  %v3287_v34 = vpop.f32.mrb[7].mxu0  ;;  %v3465_v57 = vpop.f32.mrb[7].mxu1 }
 0x2a1   :  { %v3626_v6 = vcombine.low %v3530_v60, %v3531_v10  ;;  %v3627_v46 = vcombine.high %v3530_v60, %v3531_v10  ;;  %v3628_v59 = vcombine.low %v3532_v63, %v3533_v62  ;;  %v3629_v50 = vcombine.high %v3532_v63, %v3533_v62 }
 0x2a2   :  { %v3518_v58 = vadd.f32 %v5859_v12, %v3285_v30  ;;  %v3520_v53 = vadd.f32 %v5862_v1, %v3463_v13  ;;  %v3519_v31 = vadd.f32 %v5864_v38, %v3287_v34  ;;  %v3521_v8 = vadd.f32 %v5866_v18, %v3465_v57 }
 0x2a3   :  { %v3636_v15 = vrot.slane %v3626_v6, %v5139_v28  ;;  %v3643_v40 = vrot.slane %v3627_v46, %v5139_v28  ;;  %v3650_v22 = vrot.slane %v3628_v59, %v5139_v28  ;;  %v3657_v11 = vrot.slane %v3629_v50, %v5139_v28 }
 0x2a4   :  { %v3534_v47 = vmax.f32 %v3518_v58, 0.0  ;;  %v3536_v5 = vmax.f32 %v3520_v53, 0.0  ;;  %v3535_v54 = vmax.f32 %v3519_v31, 0.0  ;;  %v3537_v44 = vmax.f32 %v3521_v8, 0.0 }
 0x2a5   :  { %v4094_v43 = vrot.slane %v3586_v52, 9  ;;  %v4095_v12 = vrot.slane %v3587_v0, 9  ;;  %v3625_v45 = vcombine.high %v3607_v36, %v3621_v32  ;;  %v3588_v1 = vcombine.low %v3571_v33, %v3585_v16 }
 0x2a6   :  { %v3662_v37 = vcombine.low %v3534_v47, %v3535_v54  ;;  %v3663_v38 = vcombine.low %v3536_v5, %v3537_v44  ;;  %v3658_v3 = vcombine.low %v3636_v15, %v3650_v22  ;;  %v3589_v18 = vcombine.high %v3571_v33, %v3585_v16 }
 0x2a7   :  { %v5896_v17 = vmax.f32 %v3586_v52, %v4094_v43  ;;  %v4101_v39 = vrot.slane %v3625_v45, 9  ;;  %v3659_v23 = vcombine.high %v3636_v15, %v3650_v22  ;;  %v3622_v56 = vcombine.low %v3600_v26, %v3614_v24 }
 0x2a8   :  { %v3670_v49 = vrot.slane %v3662_v37, %v5139_v28  ;;  %v3677_v2 = vrot.slane %v3663_v38, %v5139_v28  ;;  %v4102_v7 = vrot.slane %v3658_v3, 9  ;;  %v3737_v19 = vmax.f32 %v3587_v0, %v4095_v12 }
 0x2a9   :  { %3764 = vrot.lane.b32.xlu0 %v5896_v17, %s5046_s23  ;;  %v5902_v14 = vmax.f32 %v3625_v45, %v4101_v39  ;;  %v3660_v20 = vcombine.low %v3643_v40, %v3657_v11  ;;  %v3623_v25 = vcombine.high %v3600_v26, %v3614_v24  ;;  %v4096_v33 = vrot.slane %v3588_v1, 9 }
 0x2aa   :  { %v3744_v16 = vmax.f32 %v3658_v3, %v4102_v7  ;;  %v3661_v27 = vcombine.high %v3643_v40, %v3657_v11  ;;  %v3624_v48 = vcombine.low %v3607_v36, %v3621_v32  ;;  %v3678_v42 = vcombine.low %v3670_v49, %v3677_v2 }
 0x2ab   :  { %3778 = vrot.lane.b32.xlu1 %v5902_v14, %s5046_s23  ;;  %v3679_v28 = vcombine.high %v3670_v49, %v3677_v2  ;;  %v4103_v35 = vrot.slane %v3659_v23, 9  ;;  %v3738_v41 = vmax.f32 %v3588_v1, %v4096_v33  ;;  %v4097_v55 = vrot.slane %v3589_v18, 9 }
 0x2ac   :  { %v4104_v0 = vrot.slane %v3660_v20, 9  ;;  %v4098_v51 = vrot.slane %v3622_v56, 9  ;;  %v4105_v29 = vrot.slane %v3661_v27, 9  ;;  %v4099_v63 = vrot.slane %v3623_v25, 9 }
 0x2ad   :  { %3766 = vrot.lane.b32.xlu0 %v3737_v19, %s5046_s23  ;;  %v5909_v52 = vmax.f32 %v3659_v23, %v4103_v35  ;;  %v5911_v4 = vmax.f32 %v3589_v18, %v4097_v55  ;;  %v4106_v62 = vrot.slane %v3678_v42, 9  ;;  %v4100_v13 = vrot.slane %v3624_v48, 9 }
 0x2ae   :  { %v5917_v61 = vmax.f32 %v3660_v20, %v4104_v0  ;;  %v5919_v60 = vmax.f32 %v3622_v56, %v4098_v51  ;;  %v5925_v10 = vmax.f32 %v3661_v27, %v4105_v29  ;;  %v5927_v30 = vmax.f32 %v3623_v25, %v4099_v63 }
 0x2af   :  { %3780 = vrot.lane.b32.xlu1 %v3744_v16, %s5046_s23  ;;  %v5933_v26 = vmax.f32 %v3678_v42, %v4106_v62  ;;  %v4107_v36 = vrot.slane %v3679_v28, 9  ;;  %v5935_v24 = vmax.f32 %v3624_v48, %v4100_v13 }
 0x2b1   :  { %3768 = vrot.lane.b32.xlu0 %v3738_v41, %s5046_s23  ;;  %v5941_v32 = vmax.f32 %v3679_v28, %v4107_v36 }
 0x2b3   :  { %3782 = vrot.lane.b32.xlu1 %v5909_v52, %s5046_s23 }
 0x2b5   :  { %3770 = vrot.lane.b32.xlu0 %v5911_v4, %s5046_s23 }
 0x2b7   :  { %3784 = vrot.lane.b32.xlu1 %v5917_v61, %s5046_s23 }
 0x2b9   :  { %3772 = vrot.lane.b32.xlu0 %v5919_v60, %s5046_s23 }
 0x2bb   :  { %3786 = vrot.lane.b32.xlu1 %v5925_v10, %s5046_s23 }
 0x2bd   :  { %3774 = vrot.lane.b32.xlu0 %v5927_v30, %s5046_s23 }
 0x2bf   :  { %3788 = vrot.lane.b32.xlu1 %v5933_v26, %s5046_s23 }
 0x2c1   :  { %3776 = vrot.lane.b32.xlu0 %v5935_v24, %s5046_s23 }
 0x2c3   :  { %3790 = vrot.lane.b32.xlu1 %v5941_v32, %s5046_s23 }
 0x31b   :  { %v3765_v34 = vpop.permute.xlu0 %3764 }
 0x31c   :  { %v3792_v57 = vrot.slane %v3765_v34, 2  ;;  %v3806_v6 = vrot.slane %v3765_v34, 4 }
 0x31d   :  { %v3779_v46 = vpop.permute.xlu1 %3778 }
 0x31e   :  { %v3799_v59 = vrot.slane %v3779_v46, 2  ;;  %v3813_v50 = vrot.slane %v3779_v46, 4  ;;  %v3820_v53 = vsel %vm680_vm7, %v3792_v57, %v3806_v6 }
 0x31f   :  { %v3767_v58 = vpop.permute.xlu0 %3766  ;;  %v3848_v5 = vmax.f32 %v5896_v17, %v3820_v53 }
 0x320   :  { %v3793_v31 = vrot.slane %v3767_v58, 2  ;;  %v3807_v8 = vrot.slane %v3767_v58, 4  ;;  %v3827_v22 = vsel %vm680_vm7, %v3799_v59, %v3813_v50 }
 0x321   :  { %v3781_v15 = vpop.permute.xlu1 %3780  ;;  %v3855_v1 = vmax.f32 %v5902_v14, %v3827_v22  ;;  %v3879_v49 = vrot.slane %v3848_v5, %v5851_v9  ;;  %v3883_v23 = vrot.slane %v3848_v5, %v5854_v21 }
 0x322   :  { %v3821_v40 = vsel %vm680_vm7, %v3793_v31, %v3807_v8  ;;  %v3800_v11 = vrot.slane %v3781_v15, 2  ;;  %v3814_v47 = vrot.slane %v3781_v15, 4 }
 0x323   :  { %v3849_v54 = vmax.f32 %v3737_v19, %v3821_v40  ;;  %v3769_v44 = vpop.permute.xlu0 %3768  ;;  %v3935_v25 = vrot.slane %v3855_v1, %v5851_v9  ;;  %v3939_v48 = vrot.slane %v3855_v1, %v5854_v21 }
 0x324   :  { %v3794_v43 = vrot.slane %v3769_v44, 2  ;;  %v3808_v12 = vrot.slane %v3769_v44, 4  ;;  %v3828_v45 = vsel %vm680_vm7, %v3800_v11, %v3814_v47 }
 0x325   :  { %v3856_v37 = vmax.f32 %v3744_v16, %v3828_v45  ;;  %v3783_v38 = vpop.permute.xlu1 %3782  ;;  %v3887_v2 = vrot.slane %v3849_v54, %v5851_v9  ;;  %v3891_v20 = vrot.slane %v3849_v54, %v5854_v21 }
 0x326   :  { %v3822_v3 = vsel %vm680_vm7, %v3794_v43, %v3808_v12  ;;  %v3801_v18 = vrot.slane %v3783_v38, 2  ;;  %v3815_v39 = vrot.slane %v3783_v38, 4 }
 0x327   :  { %v3850_v17 = vmax.f32 %v3738_v41, %v3822_v3  ;;  %v3771_v7 = vpop.permute.xlu0 %3770  ;;  %v3943_v33 = vrot.slane %v3856_v37, %v5851_v9  ;;  %v3989_v41 = vsel %vm3988_vm8, %v3887_v2, %v3879_v49  ;;  %v3947_v0 = vrot.slane %v3856_v37, %v5854_v21 }
 0x328   :  { %v3795_v56 = vrot.slane %v3771_v7, 2  ;;  %v3809_v19 = vrot.slane %v3771_v7, 4  ;;  %v3829_v14 = vsel %vm680_vm7, %v3801_v18, %v3815_v39  ;;  %v3997_v36 = vsel %vm3988_vm8, %v3891_v20, %v3883_v23 }
 0x329   :  { %v3857_v16 = vmax.f32 %v5909_v52, %v3829_v14  ;;  %v3785_v27 = vpop.permute.xlu1 %3784  ;;  %v3895_v55 = vrot.slane %v3850_v17, %v5851_v9  ;;  %v3899_v63 = vrot.slane %v3850_v17, %v5854_v21  ;;  %v4003_v34 = vsel %vm3988_vm8, %v3943_v33, %v3935_v25 }
 0x32a   :  { %v3823_v42 = vsel %vm680_vm7, %v3795_v56, %v3809_v19  ;;  %v3802_v28 = vrot.slane %v3785_v27, 2  ;;  %v3816_v35 = vrot.slane %v3785_v27, 4  ;;  %v4009_v31 = vsel %vm3988_vm8, %v3947_v0, %v3939_v48 }
 0x32b   :  { %v3851_v51 = vmax.f32 %v5911_v4, %v3823_v42  ;;  %v3773_v29 = vpop.permute.xlu0 %3772  ;;  %v3951_v57 = vrot.slane %v3857_v16, %v5851_v9  ;;  %v3955_v6 = vrot.slane %v3857_v16, %v5854_v21  ;;  %v3990_v53 = vsel %vm355_vm1, %v3895_v55, %v3989_v41 }
 0x32c   :  { %v3796_v62 = vrot.slane %v3773_v29, 2  ;;  %v3810_v52 = vrot.slane %v3773_v29, 4  ;;  %v3830_v13 = vsel %vm680_vm7, %v3802_v28, %v3816_v35  ;;  %v3998_v22 = vsel %vm355_vm1, %v3899_v63, %v3997_v36 }
 0x32d   :  { %v3787_v46 = vpop.permute.xlu1 %3786  ;;  %v3903_v59 = vrot.slane %v3851_v51, %v5851_v9  ;;  %v3858_v15 = vmax.f32 %v5917_v61, %v3830_v13  ;;  %v3907_v54 = vrot.slane %v3851_v51, %v5854_v21  ;;  %v4004_v44 = vsel %vm355_vm1, %v3951_v57, %v4003_v34 }
 0x32e   :  { %v3824_v4 = vsel %vm680_vm7, %v3796_v62, %v3810_v52  ;;  %v3803_v50 = vrot.slane %v3787_v46, 2  ;;  %v3817_v58 = vrot.slane %v3787_v46, 4  ;;  %v4010_v43 = vsel %vm355_vm1, %v3955_v6, %v4009_v31 }
 0x32f   :  { %v3852_v8 = vmax.f32 %v5919_v60, %v3824_v4  ;;  %v3775_v40 = vpop.permute.xlu0 %3774  ;;  %v3992_v61 = vsel %vm3991_vm9, %v3903_v59, %v3990_v53  ;;  %v3959_v3 = vrot.slane %v3858_v15, %v5851_v9  ;;  %v3963_v18 = vrot.slane %v3858_v15, %v5854_v21 }
 0x330   :  { %v3797_v11 = vrot.slane %v3775_v40, 2  ;;  %v3811_v47 = vrot.slane %v3775_v40, 4  ;;  %v3831_v5 = vsel %vm680_vm7, %v3803_v50, %v3817_v58  ;;  %v3999_v27 = vsel %vm3991_vm9, %v3907_v54, %v3998_v22 }
 0x331   :  { %v3859_v12 = vmax.f32 %v5925_v10, %v3831_v5  ;;  %v3789_v60 = vpop.permute.xlu1 %3788  ;;  %v3911_v38 = vrot.slane %v3852_v8, %v5851_v9  ;;  %v3915_v2 = vrot.slane %v3852_v8, %v5854_v21  ;;  %v4005_v48 = vsel %vm3991_vm9, %v3959_v3, %v4004_v44 }
 0x332   :  { %v3825_v45 = vsel %vm680_vm7, %v3797_v11, %v3811_v47  ;;  %v3804_v1 = vrot.slane %v3789_v60, 2  ;;  %v3818_v37 = vrot.slane %v3789_v60, 4  ;;  %v4011_v42 = vsel %vm3991_vm9, %v3963_v18, %v4010_v43 }
 0x333   :  { %v3853_v39 = vmax.f32 %v5927_v30, %v3825_v45  ;;  %v3777_v49 = vpop.permute.xlu0 %3776  ;;  %v3967_v56 = vrot.slane %v3859_v12, %v5851_v9  ;;  %v3971_v19 = vrot.slane %v3859_v12, %v5854_v21  ;;  %v3993_v35 = vsel %vm357_vm3, %v3911_v38, %v3992_v61 }
 0x334   :  { %v3798_v10 = vrot.slane %v3777_v49, 2  ;;  %v3812_v17 = vrot.slane %v3777_v49, 4  ;;  %v3832_v7 = vsel %vm680_vm7, %v3804_v1, %v3818_v37  ;;  %v4000_v0 = vsel %vm357_vm3, %v3915_v2, %v3999_v27 }
 0x335   :  { %v3919_v23 = vrot.slane %v3853_v39, %v5851_v9  ;;  %v3860_v14 = vmax.f32 %v5933_v26, %v3832_v7  ;;  %v3791_v20 = vpop.permute.xlu1 %3790  ;;  %v3923_v25 = vrot.slane %v3853_v39, %v5854_v21  ;;  %v4006_v52 = vsel %vm357_vm3, %v3967_v56, %v4005_v48 }
 0x336   :  { %v3826_v30 = vsel %vm680_vm7, %v3798_v10, %v3812_v17  ;;  %v3805_v33 = vrot.slane %v3791_v20, 2  ;;  %v3819_v16 = vrot.slane %v3791_v20, 4  ;;  %v4012_v13 = vsel %vm357_vm3, %v3971_v19, %v4011_v42 }
 0x337   :  { %v3854_v28 = vmax.f32 %v5935_v24, %v3826_v30  ;;  %v3975_v41 = vrot.slane %v3860_v14, %v5851_v9  ;;  %v3979_v26 = vrot.slane %v3860_v14, %v5854_v21  ;;  %v3995_v62 = vsel %vm3994_vm10, %v3919_v23, %v3993_v35 }
 0x338   :  { %v3833_v55 = vsel %vm680_vm7, %v3805_v33, %v3819_v16  ;;  %v4001_v24 = vsel %vm3994_vm10, %v3923_v25, %v4000_v0 }
 0x339   :  { %v3927_v51 = vrot.slane %v3854_v28, %v5851_v9  ;;  %v3931_v29 = vrot.slane %v3854_v28, %v5854_v21  ;;  %v3861_v63 = vmax.f32 %v5941_v32, %v3833_v55  ;;  %v4007_v32 = vsel %vm3994_vm10, %v3975_v41, %v4006_v52 }
 0x33a   :  { %v4013_v46 = vsel %vm3994_vm10, %v3979_v26, %v4012_v13 }
 0x33b   :  { %v3996_v36 = vsel %vm359_vm5, %v3927_v51, %v3995_v62  ;;  %v4002_v34 = vsel %vm359_vm5, %v3931_v29, %v4001_v24  ;;  %v3983_v57 = vrot.slane %v3861_v63, %v5851_v9  ;;  %v3987_v6 = vrot.slane %v3861_v63, %v5854_v21 }
 0x33c   :  { %4019 = vst [vmem:[%s6039_s3] sm:$0x7f] %v3996_v36  ;;  %4021 = vst.msk [vmem:[%s6039_s3 + $0x8] sm:$0x7f] %vm4020_vm11, %v4002_v34 }
 0x33d   :  { %v4008_v59 = vsel %vm359_vm5, %v3983_v57, %v4007_v32  ;;  %v4014_v4 = vsel %vm359_vm5, %v3987_v6, %v4013_v46 }
 0x33e   :  { %4022 = vst [vmem:[%s6039_s3 + $0x10] sm:$0x7f] %v4008_v59  ;;  %4023 = vst.msk [vmem:[%s6039_s3 + $0x18] sm:$0x7f] %vm4020_vm11, %v4014_v4 }
 0x33f   :  { %4028 = vsyncpa [#allocation3], 1 }
 0x340   :  { %4029 = vsyncpa [#allocation5], 1 }

</bundles_post_ra>
